<compile_context>
chip_gen: v5e
topology: v5e:2x2
jax: 0.10.0
libtpu: 0.0.40
codegen_flags: <defaults>
</compile_context>

<pallas_src>
import jax
import jax.numpy as jnp
from jax.experimental import pallas as pl
from jax.experimental.pallas import tpu as pltpu


EMBEDDING_DIM = 64
BERT_HIDDEN = 768
NUM_EMBEDDINGS = 100     # nn.Embedding(num_embeddings, 64)
BERT_VOCAB = 1000        # surrogate token-embedding vocab
MLP_PAD = 128            # lane-dense padding for the 64-wide / 1-wide dims


# -----------------------------------------------------------------------------
# Fused kernel: 2x (masked mean-pool + pooler dense+tanh)  ->  fc1..fc4 MLP.
# -----------------------------------------------------------------------------
def fused_forward_kernel(
    d1n_ref, d2n_ref,            # (TB, 64)      f32  name embeddings
    d1t_ref, d2t_ref,            # (TB, S, 768)  f32  token embeddings
    d1m_ref, d2m_ref,            # (TB, S, 1)    f32  attention masks
    wp_ref, bp_ref,              # (768, 768) bf16, (1, 768) f32  pooler
    w1n1_ref, w1n2_ref,          # (64, 256)  bf16  fc1 row-blocks (names)
    w1d1_ref, w1d2_ref,          # (768, 256) bf16  fc1 row-blocks (descs)
    b1_ref,                      # (1, 256)   f32
    w2_ref, b2_ref,              # (256, 128) bf16, (1, 128) f32
    w3_ref, b3_ref,              # (128, 128) bf16 (zero-padded), (1, 128) f32
    w4_ref, b4_ref,              # (128, 128) bf16 (zero-padded), (1, 128) f32
    out_ref,                     # (TB, 128)  f32 ; column 0 = risk score
):
    f32 = jnp.float32
    bf16 = jnp.bfloat16

    def bert_pool(tok_ref, mask_ref):
        emb = tok_ref[...]                                # (TB, S, H) f32
        mask = mask_ref[...]                              # (TB, S, 1) f32
        summed = jnp.sum(emb * mask, axis=1)              # (TB, H)  sublane reduce
        denom = jnp.maximum(jnp.sum(mask, axis=1), 1.0)   # (TB, 1), no div-by-0
        mean = summed * pl.reciprocal(denom, approx=True)
        p = jnp.dot(mean.astype(bf16), wp_ref[...],
                    preferred_element_type=f32) + bp_ref[...]
        return jnp.tanh(p)                                # (TB, H) f32

    p1 = bert_pool(d1t_ref, d1m_ref)
    p2 = bert_pool(d2t_ref, d2m_ref)

    # fc1 over the concat [d1n | d2n | p1 | p2], decomposed over W1 row-blocks
    # so no in-kernel concatenation / lane re-layout is needed.
    h = (
        jnp.dot(d1n_ref[...].astype(bf16), w1n1_ref[...], preferred_element_type=f32)
        + jnp.dot(d2n_ref[...].astype(bf16), w1n2_ref[...], preferred_element_type=f32)
        + jnp.dot(p1.astype(bf16), w1d1_ref[...], preferred_element_type=f32)
        + jnp.dot(p2.astype(bf16), w1d2_ref[...], preferred_element_type=f32)
        + b1_ref[...]
    )
    h = jnp.maximum(h, 0.0)                                               # relu1
    h = jnp.dot(h.astype(bf16), w2_ref[...], preferred_element_type=f32) + b2_ref[...]
    h = jnp.maximum(h, 0.0)                                               # relu2
    h = jnp.dot(h.astype(bf16), w3_ref[...], preferred_element_type=f32) + b3_ref[...]
    h = jnp.maximum(h, 0.0)                                               # relu3
    out_ref[...] = (
        jnp.dot(h.astype(bf16), w4_ref[...], preferred_element_type=f32) + b4_ref[...]
    )


def fused_forward(d1n, d2n, d1t, d2t, d1m, d2m, params):
    B, S, H = d1t.shape

    # Batch tile: whole batch in one step for small / non-8-aligned B;
    # 8-aligned tiles (with a "parallel" grid axis -> megacore sharding and
    # pipelined HBM loads of the big token-embedding slabs) otherwise.
    tb = min(B, 64) if (B % 8 == 0) else B
    nb = B // tb

    weights = (
        params["bert_pooler_w"], params["bert_pooler_b"],
        params["w1_n1"], params["w1_n2"], params["w1_d1"], params["w1_d2"],
        params["b1"], params["w2"], params["b2"],
        params["w3"], params["b3"], params["w4"], params["b4"],
    )

    def batch2(shape):
        return pl.BlockSpec((tb,) + tuple(shape[1:]), lambda b: (b, 0))

    def batch3(shape):
        return pl.BlockSpec((tb,) + tuple(shape[1:]), lambda b: (b, 0, 0))

    def full2(shape):
        # Constant index_map -> weight tile stays resident across the grid.
        return pl.BlockSpec(tuple(shape), lambda b: (0, 0))

    in_specs = [
        batch2(d1n.shape), batch2(d2n.shape),
        batch3(d1t.shape), batch3(d2t.shape),
        batch3(d1m.shape), batch3(d2m.shape),
    ] + [full2(w.shape) for w in weights]

    d_in = 2 * EMBEDDING_DIM + 2 * BERT_HIDDEN
    flops = 2 * B * (2 * H * H + d_in * 256 + 256 * 128
                     + 128 * MLP_PAD + MLP_PAD * MLP_PAD)
    transcendentals = B * (2 * H + 2)
    bytes_accessed = sum(int(x.size) * int(x.dtype.itemsize)
                         for x in (d1n, d2n, d1t, d2t, d1m, d2m) + weights)
    bytes_accessed += B * MLP_PAD * 4

    return pl.pallas_call(
        fused_forward_kernel,
        out_shape=jax.ShapeDtypeStruct((B, MLP_PAD), jnp.float32),
        grid=(nb,),
        in_specs=in_specs,
        out_specs=pl.BlockSpec((tb, MLP_PAD), lambda b: (b, 0)),
        compiler_params=pltpu.CompilerParams(
            dimension_semantics=("parallel",),
            vmem_limit_bytes=64 << 20),
        cost_estimate=pl.CostEstimate(
            flops=int(flops),
            transcendentals=int(transcendentals),
            bytes_accessed=int(bytes_accessed)),
    )(d1n, d2n, d1t, d2t, d1m, d2m, *weights)


# -----------------------------------------------------------------------------
# Parameters
# -----------------------------------------------------------------------------
def init_params(key):
    ks = jax.random.split(key, 8)
    scale = 0.02
    f32, bf16 = jnp.float32, jnp.bfloat16
    d_in = EMBEDDING_DIM * 2 + BERT_HIDDEN * 2    # 1664

    name_emb = scale * jax.random.normal(ks[0], (NUM_EMBEDDINGS, EMBEDDING_DIM), f32)
    bert_word_emb = scale * jax.random.normal(ks[1], (BERT_VOCAB, BERT_HIDDEN), f32)
    wp = scale * jax.random.normal(ks[2], (BERT_HIDDEN, BERT_HIDDEN), f32)

    w1 = scale * jax.random.normal(ks[3], (d_in, 256), f32)
    w2 = scale * jax.random.normal(ks[4], (256, 128), f32)
    w3 = scale * jax.random.normal(ks[5], (128, 64), f32)
    w4 = scale * jax.random.normal(ks[6], (64, 1), f32)

    # Lane-dense zero-padding of the narrow tail (64 / 1 wide -> 128 lanes).
    w3_pad = jnp.zeros((128, MLP_PAD), f32).at[:, :64].set(w3)
    b3_pad = jnp.zeros((1, MLP_PAD), f32)
    w4_pad = jnp.zeros((MLP_PAD, MLP_PAD), f32).at[:64, :1].set(w4)
    b4_pad = jnp.zeros((1, MLP_PAD), f32)

    return {
        "name_emb": name_emb,
        "bert_word_emb": bert_word_emb,
        "bert_pooler_w": wp.astype(bf16),
        "bert_pooler_b": jnp.zeros((1, BERT_HIDDEN), f32),
        # fc1 split into row-blocks matching [d1_name | d2_name | pooled1 | pooled2]
        "w1_n1": w1[0:EMBEDDING_DIM].astype(bf16),
        "w1_n2": w1[EMBEDDING_DIM:2 * EMBEDDING_DIM].astype(bf16),
        "w1_d1": w1[2 * EMBEDDING_DIM:2 * EMBEDDING_DIM + BERT_HIDDEN].astype(bf16),
        "w1_d2": w1[2 * EMBEDDING_DIM + BERT_HIDDEN:].astype(bf16),
        "b1": jnp.zeros((1, 256), f32),
        "w2": w2.astype(bf16),
        "b2": jnp.zeros((1, 128), f32),
        "w3": w3_pad.astype(bf16),
        "b3": b3_pad,
        "w4": w4_pad.astype(bf16),
        "b4": b4_pad,
    }


# -----------------------------------------------------------------------------
# Model wrapper (plain-JAX glue: embedding gathers only)
# -----------------------------------------------------------------------------
def drug_interaction_forward(params, drug1, drug2,
                             drug1_description, drug2_description,
                             drug1_desc_attention_mask, drug2_desc_attention_mask):
    # name embeddings (gather = glue)
    d1_name = jnp.take(params["name_emb"], drug1, axis=0)                  # (B, 64)
    d2_name = jnp.take(params["name_emb"], drug2, axis=0)                  # (B, 64)

    # surrogate BERT token embeddings (gather = glue)
    d1_tok = jnp.take(params["bert_word_emb"], drug1_description, axis=0)  # (B, S, 768)
    d2_tok = jnp.take(params["bert_word_emb"], drug2_description, axis=0)

    # (B, S, 1) f32 masks: keeps S on sublanes, lane-broadcast inside kernel.
    d1_mask = drug1_desc_attention_mask.astype(jnp.float32)[:, :, None]
    d2_mask = drug2_desc_attention_mask.astype(jnp.float32)[:, :, None]

    out_padded = fused_forward(d1_name, d2_name, d1_tok, d2_tok,
                               d1_mask, d2_mask, params)                   # (B, 128)
    return out_padded[:, :1]                                               # (B, 1)


if __name__ == "__main__":
    params = init_params(jax.random.PRNGKey(0))

    B, S = 2, 8
    k1, k2, k3, k4 = jax.random.split(jax.random.PRNGKey(0), 4)
    drug1 = jax.random.randint(k1, (B,), 0, NUM_EMBEDDINGS, dtype=jnp.int32)
    drug2 = jax.random.randint(k2, (B,), 0, NUM_EMBEDDINGS, dtype=jnp.int32)
    drug1_description = jax.random.randint(k3, (B, S), 0, BERT_VOCAB, dtype=jnp.int32)
    drug2_description = jax.random.randint(k4, (B, S), 0, BERT_VOCAB, dtype=jnp.int32)
    drug1_desc_attention_mask = jnp.ones((B, S), jnp.int32)
    drug2_desc_attention_mask = jnp.ones((B, S), jnp.int32)

    out = drug_interaction_forward(
        params, drug1, drug2,
        drug1_description, drug2_description,
        drug1_desc_attention_mask, drug2_desc_attention_mask)
    out = jax.block_until_ready(out)
    assert out.shape == (B, 1) and out.dtype == jnp.float32
    assert bool(jnp.all(jnp.isfinite(out)))
    print("KERNEL_OK")
</pallas_src>

<mosaic_0001>
module attributes {stable_mosaic.version = 11 : i64} {
  func.func @fused_forward_kernel(%arg0: i32, %arg1: memref<2x64xf32, #tpu.memory_space<vmem>>, %arg2: memref<2x64xf32, #tpu.memory_space<vmem>>, %arg3: memref<2x8x768xf32, #tpu.memory_space<vmem>>, %arg4: memref<2x8x768xf32, #tpu.memory_space<vmem>>, %arg5: memref<2x8x1xf32, #tpu.memory_space<vmem>>, %arg6: memref<2x8x1xf32, #tpu.memory_space<vmem>>, %arg7: memref<768x768xbf16, #tpu.memory_space<vmem>>, %arg8: memref<1x768xf32, #tpu.memory_space<vmem>>, %arg9: memref<64x256xbf16, #tpu.memory_space<vmem>>, %arg10: memref<64x256xbf16, #tpu.memory_space<vmem>>, %arg11: memref<768x256xbf16, #tpu.memory_space<vmem>>, %arg12: memref<768x256xbf16, #tpu.memory_space<vmem>>, %arg13: memref<1x256xf32, #tpu.memory_space<vmem>>, %arg14: memref<256x128xbf16, #tpu.memory_space<vmem>>, %arg15: memref<1x128xf32, #tpu.memory_space<vmem>>, %arg16: memref<128x128xbf16, #tpu.memory_space<vmem>>, %arg17: memref<1x128xf32, #tpu.memory_space<vmem>>, %arg18: memref<128x128xbf16, #tpu.memory_space<vmem>>, %arg19: memref<1x128xf32, #tpu.memory_space<vmem>>, %arg20: memref<2x128xf32, #tpu.memory_space<vmem>>) attributes {dimension_semantics = [#tpu.dimension_semantics<parallel>], iteration_bounds = array<i64: 1>, scalar_prefetch = 0 : i64, scratch_operands = 0 : i64, tpu.core_type = #tpu.core_type<tc>, window_params = [{transform_indices = @transform_0, window_bounds = array<i64: 2, 64>}, {transform_indices = @transform_1, window_bounds = array<i64: 2, 64>}, {transform_indices = @transform_2, window_bounds = array<i64: 2, 8, 768>}, {transform_indices = @transform_3, window_bounds = array<i64: 2, 8, 768>}, {transform_indices = @transform_4, window_bounds = array<i64: 2, 8, 1>}, {transform_indices = @transform_5, window_bounds = array<i64: 2, 8, 1>}, {pipeline_mode = #tpu.pipeline_mode<synchronous>, transform_indices = @transform_6, window_bounds = array<i64: 768, 768>}, {pipeline_mode = #tpu.pipeline_mode<synchronous>, transform_indices = @transform_7, window_bounds = array<i64: 1, 768>}, {pipeline_mode = #tpu.pipeline_mode<synchronous>, transform_indices = @transform_8, window_bounds = array<i64: 64, 256>}, {pipeline_mode = #tpu.pipeline_mode<synchronous>, transform_indices = @transform_9, window_bounds = array<i64: 64, 256>}, {pipeline_mode = #tpu.pipeline_mode<synchronous>, transform_indices = @transform_10, window_bounds = array<i64: 768, 256>}, {pipeline_mode = #tpu.pipeline_mode<synchronous>, transform_indices = @transform_11, window_bounds = array<i64: 768, 256>}, {pipeline_mode = #tpu.pipeline_mode<synchronous>, transform_indices = @transform_12, window_bounds = array<i64: 1, 256>}, {pipeline_mode = #tpu.pipeline_mode<synchronous>, transform_indices = @transform_13, window_bounds = array<i64: 256, 128>}, {pipeline_mode = #tpu.pipeline_mode<synchronous>, transform_indices = @transform_14, window_bounds = array<i64: 1, 128>}, {pipeline_mode = #tpu.pipeline_mode<synchronous>, transform_indices = @transform_15, window_bounds = array<i64: 128, 128>}, {pipeline_mode = #tpu.pipeline_mode<synchronous>, transform_indices = @transform_16, window_bounds = array<i64: 1, 128>}, {pipeline_mode = #tpu.pipeline_mode<synchronous>, transform_indices = @transform_17, window_bounds = array<i64: 128, 128>}, {pipeline_mode = #tpu.pipeline_mode<synchronous>, transform_indices = @transform_18, window_bounds = array<i64: 1, 128>}, {transform_indices = @transform_19, window_bounds = array<i64: 2, 128>}]} {
    %c0 = arith.constant 0 : index
    %c0_0 = arith.constant 0 : index
    %c0_1 = arith.constant 0 : index
    %0 = vector.load %arg3[%c0, %c0_0, %c0_1] : memref<2x8x768xf32, #tpu.memory_space<vmem>>, vector<2x8x768xf32>
    %c0_2 = arith.constant 0 : index
    %c0_3 = arith.constant 0 : index
    %c0_4 = arith.constant 0 : index
    %1 = vector.load %arg5[%c0_2, %c0_3, %c0_4] : memref<2x8x1xf32, #tpu.memory_space<vmem>>, vector<2x8x1xf32>
    %2 = vector.broadcast %1 : vector<2x8x1xf32> to vector<2x8x768xf32>
    %3 = arith.mulf %0, %2 : vector<2x8x768xf32>
    %cst = arith.constant dense<0.000000e+00> : vector<2x768xf32>
    %4 = vector.multi_reduction <add>, %3, %cst [1] : vector<2x8x768xf32> to vector<2x768xf32>
    %cst_5 = arith.constant dense<0.000000e+00> : vector<2x1xf32>
    %5 = vector.multi_reduction <add>, %1, %cst_5 [1] : vector<2x8x1xf32> to vector<2x1xf32>
    %cst_6 = arith.constant 1.000000e+00 : f32
    %6 = vector.broadcast %cst_6 : f32 to vector<2x1xf32>
    %7 = arith.maximumf %5, %6 : vector<2x1xf32>
    %8 = tpu.reciprocal %7 {approx = true} : vector<2x1xf32> -> vector<2x1xf32>
    %9 = vector.broadcast %8 : vector<2x1xf32> to vector<2x768xf32>
    %10 = arith.mulf %4, %9 : vector<2x768xf32>
    %11 = arith.truncf %10 : vector<2x768xf32> to vector<2x768xbf16>
    %c0_7 = arith.constant 0 : index
    %c0_8 = arith.constant 0 : index
    %12 = vector.load %arg7[%c0_7, %c0_8] : memref<768x768xbf16, #tpu.memory_space<vmem>>, vector<768x768xbf16>
    %cst_9 = arith.constant dense<0.000000e+00> : vector<2x768xf32>
    %13 = tpu.matmul %11, %12, %cst_9 {dimension_numbers = #tpu.dot_dimension_numbers<[1], [0], [0], [1], [0, 0, 1, 1], [], []>} : vector<2x768xbf16>, vector<768x768xbf16>, vector<2x768xf32> -> vector<2x768xf32>
    %c0_10 = arith.constant 0 : index
    %c0_11 = arith.constant 0 : index
    %14 = vector.load %arg8[%c0_10, %c0_11] : memref<1x768xf32, #tpu.memory_space<vmem>>, vector<1x768xf32>
    %15 = vector.broadcast %14 : vector<1x768xf32> to vector<2x768xf32>
    %16 = arith.addf %13, %15 : vector<2x768xf32>
    %17 = math.tanh %16 : vector<2x768xf32>
    %c0_12 = arith.constant 0 : index
    %c0_13 = arith.constant 0 : index
    %c0_14 = arith.constant 0 : index
    %18 = vector.load %arg4[%c0_12, %c0_13, %c0_14] : memref<2x8x768xf32, #tpu.memory_space<vmem>>, vector<2x8x768xf32>
    %c0_15 = arith.constant 0 : index
    %c0_16 = arith.constant 0 : index
    %c0_17 = arith.constant 0 : index
    %19 = vector.load %arg6[%c0_15, %c0_16, %c0_17] : memref<2x8x1xf32, #tpu.memory_space<vmem>>, vector<2x8x1xf32>
    %20 = vector.broadcast %19 : vector<2x8x1xf32> to vector<2x8x768xf32>
    %21 = arith.mulf %18, %20 : vector<2x8x768xf32>
    %cst_18 = arith.constant dense<0.000000e+00> : vector<2x768xf32>
    %22 = vector.multi_reduction <add>, %21, %cst_18 [1] : vector<2x8x768xf32> to vector<2x768xf32>
    %cst_19 = arith.constant dense<0.000000e+00> : vector<2x1xf32>
    %23 = vector.multi_reduction <add>, %19, %cst_19 [1] : vector<2x8x1xf32> to vector<2x1xf32>
    %cst_20 = arith.constant 1.000000e+00 : f32
    %24 = vector.broadcast %cst_20 : f32 to vector<2x1xf32>
    %25 = arith.maximumf %23, %24 : vector<2x1xf32>
    %26 = tpu.reciprocal %25 {approx = true} : vector<2x1xf32> -> vector<2x1xf32>
    %27 = vector.broadcast %26 : vector<2x1xf32> to vector<2x768xf32>
    %28 = arith.mulf %22, %27 : vector<2x768xf32>
    %29 = arith.truncf %28 : vector<2x768xf32> to vector<2x768xbf16>
    %c0_21 = arith.constant 0 : index
    %c0_22 = arith.constant 0 : index
    %30 = vector.load %arg7[%c0_21, %c0_22] : memref<768x768xbf16, #tpu.memory_space<vmem>>, vector<768x768xbf16>
    %cst_23 = arith.constant dense<0.000000e+00> : vector<2x768xf32>
    %31 = tpu.matmul %29, %30, %cst_23 {dimension_numbers = #tpu.dot_dimension_numbers<[1], [0], [0], [1], [0, 0, 1, 1], [], []>} : vector<2x768xbf16>, vector<768x768xbf16>, vector<2x768xf32> -> vector<2x768xf32>
    %c0_24 = arith.constant 0 : index
    %c0_25 = arith.constant 0 : index
    %32 = vector.load %arg8[%c0_24, %c0_25] : memref<1x768xf32, #tpu.memory_space<vmem>>, vector<1x768xf32>
    %33 = vector.broadcast %32 : vector<1x768xf32> to vector<2x768xf32>
    %34 = arith.addf %31, %33 : vector<2x768xf32>
    %35 = math.tanh %34 : vector<2x768xf32>
    %c0_26 = arith.constant 0 : index
    %c0_27 = arith.constant 0 : index
    %36 = vector.load %arg1[%c0_26, %c0_27] : memref<2x64xf32, #tpu.memory_space<vmem>>, vector<2x64xf32>
    %37 = arith.truncf %36 : vector<2x64xf32> to vector<2x64xbf16>
    %c0_28 = arith.constant 0 : index
    %c0_29 = arith.constant 0 : index
    %38 = vector.load %arg9[%c0_28, %c0_29] : memref<64x256xbf16, #tpu.memory_space<vmem>>, vector<64x256xbf16>
    %cst_30 = arith.constant dense<0.000000e+00> : vector<2x256xf32>
    %39 = tpu.matmul %37, %38, %cst_30 {dimension_numbers = #tpu.dot_dimension_numbers<[1], [0], [0], [1], [0, 0, 1, 1], [], []>} : vector<2x64xbf16>, vector<64x256xbf16>, vector<2x256xf32> -> vector<2x256xf32>
    %c0_31 = arith.constant 0 : index
    %c0_32 = arith.constant 0 : index
    %40 = vector.load %arg2[%c0_31, %c0_32] : memref<2x64xf32, #tpu.memory_space<vmem>>, vector<2x64xf32>
    %41 = arith.truncf %40 : vector<2x64xf32> to vector<2x64xbf16>
    %c0_33 = arith.constant 0 : index
    %c0_34 = arith.constant 0 : index
    %42 = vector.load %arg10[%c0_33, %c0_34] : memref<64x256xbf16, #tpu.memory_space<vmem>>, vector<64x256xbf16>
    %cst_35 = arith.constant dense<0.000000e+00> : vector<2x256xf32>
    %43 = tpu.matmul %41, %42, %cst_35 {dimension_numbers = #tpu.dot_dimension_numbers<[1], [0], [0], [1], [0, 0, 1, 1], [], []>} : vector<2x64xbf16>, vector<64x256xbf16>, vector<2x256xf32> -> vector<2x256xf32>
    %44 = arith.addf %39, %43 : vector<2x256xf32>
    %45 = arith.truncf %17 : vector<2x768xf32> to vector<2x768xbf16>
    %c0_36 = arith.constant 0 : index
    %c0_37 = arith.constant 0 : index
    %46 = vector.load %arg11[%c0_36, %c0_37] : memref<768x256xbf16, #tpu.memory_space<vmem>>, vector<768x256xbf16>
    %cst_38 = arith.constant dense<0.000000e+00> : vector<2x256xf32>
    %47 = tpu.matmul %45, %46, %cst_38 {dimension_numbers = #tpu.dot_dimension_numbers<[1], [0], [0], [1], [0, 0, 1, 1], [], []>} : vector<2x768xbf16>, vector<768x256xbf16>, vector<2x256xf32> -> vector<2x256xf32>
    %48 = arith.addf %44, %47 : vector<2x256xf32>
    %49 = arith.truncf %35 : vector<2x768xf32> to vector<2x768xbf16>
    %c0_39 = arith.constant 0 : index
    %c0_40 = arith.constant 0 : index
    %50 = vector.load %arg12[%c0_39, %c0_40] : memref<768x256xbf16, #tpu.memory_space<vmem>>, vector<768x256xbf16>
    %cst_41 = arith.constant dense<0.000000e+00> : vector<2x256xf32>
    %51 = tpu.matmul %49, %50, %cst_41 {dimension_numbers = #tpu.dot_dimension_numbers<[1], [0], [0], [1], [0, 0, 1, 1], [], []>} : vector<2x768xbf16>, vector<768x256xbf16>, vector<2x256xf32> -> vector<2x256xf32>
    %52 = arith.addf %48, %51 : vector<2x256xf32>
    %c0_42 = arith.constant 0 : index
    %c0_43 = arith.constant 0 : index
    %53 = vector.load %arg13[%c0_42, %c0_43] : memref<1x256xf32, #tpu.memory_space<vmem>>, vector<1x256xf32>
    %54 = vector.broadcast %53 : vector<1x256xf32> to vector<2x256xf32>
    %55 = arith.addf %52, %54 : vector<2x256xf32>
    %cst_44 = arith.constant 0.000000e+00 : f32
    %56 = vector.broadcast %cst_44 : f32 to vector<2x256xf32>
    %57 = arith.maximumf %55, %56 : vector<2x256xf32>
    %58 = arith.truncf %57 : vector<2x256xf32> to vector<2x256xbf16>
    %c0_45 = arith.constant 0 : index
    %c0_46 = arith.constant 0 : index
    %59 = vector.load %arg14[%c0_45, %c0_46] : memref<256x128xbf16, #tpu.memory_space<vmem>>, vector<256x128xbf16>
    %cst_47 = arith.constant dense<0.000000e+00> : vector<2x128xf32>
    %60 = tpu.matmul %58, %59, %cst_47 {dimension_numbers = #tpu.dot_dimension_numbers<[1], [0], [0], [1], [0, 0, 1, 1], [], []>} : vector<2x256xbf16>, vector<256x128xbf16>, vector<2x128xf32> -> vector<2x128xf32>
    %c0_48 = arith.constant 0 : index
    %c0_49 = arith.constant 0 : index
    %61 = vector.load %arg15[%c0_48, %c0_49] : memref<1x128xf32, #tpu.memory_space<vmem>>, vector<1x128xf32>
    %62 = vector.broadcast %61 : vector<1x128xf32> to vector<2x128xf32>
    %63 = arith.addf %60, %62 : vector<2x128xf32>
    %cst_50 = arith.constant 0.000000e+00 : f32
    %64 = vector.broadcast %cst_50 : f32 to vector<2x128xf32>
    %65 = arith.maximumf %63, %64 : vector<2x128xf32>
    %66 = arith.truncf %65 : vector<2x128xf32> to vector<2x128xbf16>
    %c0_51 = arith.constant 0 : index
    %c0_52 = arith.constant 0 : index
    %67 = vector.load %arg16[%c0_51, %c0_52] : memref<128x128xbf16, #tpu.memory_space<vmem>>, vector<128x128xbf16>
    %cst_53 = arith.constant dense<0.000000e+00> : vector<2x128xf32>
    %68 = tpu.matmul %66, %67, %cst_53 {dimension_numbers = #tpu.dot_dimension_numbers<[1], [0], [0], [1], [0, 0, 1, 1], [], []>} : vector<2x128xbf16>, vector<128x128xbf16>, vector<2x128xf32> -> vector<2x128xf32>
    %c0_54 = arith.constant 0 : index
    %c0_55 = arith.constant 0 : index
    %69 = vector.load %arg17[%c0_54, %c0_55] : memref<1x128xf32, #tpu.memory_space<vmem>>, vector<1x128xf32>
    %70 = vector.broadcast %69 : vector<1x128xf32> to vector<2x128xf32>
    %71 = arith.addf %68, %70 : vector<2x128xf32>
    %cst_56 = arith.constant 0.000000e+00 : f32
    %72 = vector.broadcast %cst_56 : f32 to vector<2x128xf32>
    %73 = arith.maximumf %71, %72 : vector<2x128xf32>
    %74 = arith.truncf %73 : vector<2x128xf32> to vector<2x128xbf16>
    %c0_57 = arith.constant 0 : index
    %c0_58 = arith.constant 0 : index
    %75 = vector.load %arg18[%c0_57, %c0_58] : memref<128x128xbf16, #tpu.memory_space<vmem>>, vector<128x128xbf16>
    %cst_59 = arith.constant dense<0.000000e+00> : vector<2x128xf32>
    %76 = tpu.matmul %74, %75, %cst_59 {dimension_numbers = #tpu.dot_dimension_numbers<[1], [0], [0], [1], [0, 0, 1, 1], [], []>} : vector<2x128xbf16>, vector<128x128xbf16>, vector<2x128xf32> -> vector<2x128xf32>
    %c0_60 = arith.constant 0 : index
    %c0_61 = arith.constant 0 : index
    %77 = vector.load %arg19[%c0_60, %c0_61] : memref<1x128xf32, #tpu.memory_space<vmem>>, vector<1x128xf32>
    %78 = vector.broadcast %77 : vector<1x128xf32> to vector<2x128xf32>
    %79 = arith.addf %76, %78 : vector<2x128xf32>
    %c0_62 = arith.constant 0 : index
    %c0_63 = arith.constant 0 : index
    %80 = vector.load %arg20[%c0_62, %c0_63] : memref<2x128xf32, #tpu.memory_space<vmem>>, vector<2x128xf32>
    tpu.vector_store %arg20[%c0_62, %c0_63], %79 {strides = array<i32>} : memref<2x128xf32, #tpu.memory_space<vmem>>, vector<2x128xf32>,
    return
  }
  func.func @transform_0(%arg0: i32) -> (i32, i32) {
    %c0_i32 = arith.constant 0 : i32
    %c0_i32_0 = arith.constant 0 : i32
    return %arg0, %c0_i32 : i32, i32
  }
  func.func @transform_1(%arg0: i32) -> (i32, i32) {
    %c0_i32 = arith.constant 0 : i32
    %c0_i32_0 = arith.constant 0 : i32
    return %arg0, %c0_i32 : i32, i32
  }
  func.func @transform_2(%arg0: i32) -> (i32, i32, i32) {
    %c0_i32 = arith.constant 0 : i32
    %c0_i32_0 = arith.constant 0 : i32
    %c0_i32_1 = arith.constant 0 : i32
    return %arg0, %c0_i32, %c0_i32_0 : i32, i32, i32
  }
  func.func @transform_3(%arg0: i32) -> (i32, i32, i32) {
    %c0_i32 = arith.constant 0 : i32
    %c0_i32_0 = arith.constant 0 : i32
    %c0_i32_1 = arith.constant 0 : i32
    return %arg0, %c0_i32, %c0_i32_0 : i32, i32, i32
  }
  func.func @transform_4(%arg0: i32) -> (i32, i32, i32) {
    %c0_i32 = arith.constant 0 : i32
    %c0_i32_0 = arith.constant 0 : i32
    %c0_i32_1 = arith.constant 0 : i32
    return %arg0, %c0_i32, %c0_i32_0 : i32, i32, i32
  }
  func.func @transform_5(%arg0: i32) -> (i32, i32, i32) {
    %c0_i32 = arith.constant 0 : i32
    %c0_i32_0 = arith.constant 0 : i32
    %c0_i32_1 = arith.constant 0 : i32
    return %arg0, %c0_i32, %c0_i32_0 : i32, i32, i32
  }
  func.func @transform_6(%arg0: i32) -> (i32, i32) {
    %c0_i32 = arith.constant 0 : i32
    %c0_i32_0 = arith.constant 0 : i32
    %c0_i32_1 = arith.constant 0 : i32
    return %c0_i32, %c0_i32_0 : i32, i32
  }
  func.func @transform_7(%arg0: i32) -> (i32, i32) {
    %c0_i32 = arith.constant 0 : i32
    %c0_i32_0 = arith.constant 0 : i32
    %c0_i32_1 = arith.constant 0 : i32
    return %c0_i32, %c0_i32_0 : i32, i32
  }
  func.func @transform_8(%arg0: i32) -> (i32, i32) {
    %c0_i32 = arith.constant 0 : i32
    %c0_i32_0 = arith.constant 0 : i32
    %c0_i32_1 = arith.constant 0 : i32
    return %c0_i32, %c0_i32_0 : i32, i32
  }
  func.func @transform_9(%arg0: i32) -> (i32, i32) {
    %c0_i32 = arith.constant 0 : i32
    %c0_i32_0 = arith.constant 0 : i32
    %c0_i32_1 = arith.constant 0 : i32
    return %c0_i32, %c0_i32_0 : i32, i32
  }
  func.func @transform_10(%arg0: i32) -> (i32, i32) {
    %c0_i32 = arith.constant 0 : i32
    %c0_i32_0 = arith.constant 0 : i32
    %c0_i32_1 = arith.constant 0 : i32
    return %c0_i32, %c0_i32_0 : i32, i32
  }
  func.func @transform_11(%arg0: i32) -> (i32, i32) {
    %c0_i32 = arith.constant 0 : i32
    %c0_i32_0 = arith.constant 0 : i32
    %c0_i32_1 = arith.constant 0 : i32
    return %c0_i32, %c0_i32_0 : i32, i32
  }
  func.func @transform_12(%arg0: i32) -> (i32, i32) {
    %c0_i32 = arith.constant 0 : i32
    %c0_i32_0 = arith.constant 0 : i32
    %c0_i32_1 = arith.constant 0 : i32
    return %c0_i32, %c0_i32_0 : i32, i32
  }
  func.func @transform_13(%arg0: i32) -> (i32, i32) {
    %c0_i32 = arith.constant 0 : i32
    %c0_i32_0 = arith.constant 0 : i32
    %c0_i32_1 = arith.constant 0 : i32
    return %c0_i32, %c0_i32_0 : i32, i32
  }
  func.func @transform_14(%arg0: i32) -> (i32, i32) {
    %c0_i32 = arith.constant 0 : i32
    %c0_i32_0 = arith.constant 0 : i32
    %c0_i32_1 = arith.constant 0 : i32
    return %c0_i32, %c0_i32_0 : i32, i32
  }
  func.func @transform_15(%arg0: i32) -> (i32, i32) {
    %c0_i32 = arith.constant 0 : i32
    %c0_i32_0 = arith.constant 0 : i32
    %c0_i32_1 = arith.constant 0 : i32
    return %c0_i32, %c0_i32_0 : i32, i32
  }
  func.func @transform_16(%arg0: i32) -> (i32, i32) {
    %c0_i32 = arith.constant 0 : i32
    %c0_i32_0 = arith.constant 0 : i32
    %c0_i32_1 = arith.constant 0 : i32
    return %c0_i32, %c0_i32_0 : i32, i32
  }
  func.func @transform_17(%arg0: i32) -> (i32, i32) {
    %c0_i32 = arith.constant 0 : i32
    %c0_i32_0 = arith.constant 0 : i32
    %c0_i32_1 = arith.constant 0 : i32
    return %c0_i32, %c0_i32_0 : i32, i32
  }
  func.func @transform_18(%arg0: i32) -> (i32, i32) {
    %c0_i32 = arith.constant 0 : i32
    %c0_i32_0 = arith.constant 0 : i32
    %c0_i32_1 = arith.constant 0 : i32
    return %c0_i32, %c0_i32_0 : i32, i32
  }
  func.func @transform_19(%arg0: i32) -> (i32, i32) {
    %c0_i32 = arith.constant 0 : i32
    %c0_i32_0 = arith.constant 0 : i32
    return %arg0, %c0_i32 : i32, i32
  }
}

</mosaic_0001>

<bundles_post_ra>
// kernel: tpu_custom_call.1
= control target key start
LH: loop header
LB: loop body
LE: loop exit
PB: predicated region body
PF: predicated region fallthrough
CT: control target
= control target key end

     0   :  { %s10270_s0 = inlined_call_operand.hbm [shape: f32[2,64], index: 0, kind: input, shape index: {}]   ;;  %s10271_s1 = inlined_call_operand.hbm [shape: f32[2,64], index: 1, kind: input, shape index: {}]   ;;  %s10272_s2 = inlined_call_operand.hbm [shape: f32[2,8,768], index: 2, kind: input, shape index: {}]   ;;  %s10273_s3 = inlined_call_operand.hbm [shape: f32[2,8,768], index: 3, kind: input, shape index: {}]   ;;  %s10274_s4 = inlined_call_operand.vmem [shape: f32[2,8,1], index: 4, kind: input, shape index: {}]   ;;  %s10275_s5 = inlined_call_operand.vmem [shape: f32[2,8,1], index: 5, kind: input, shape index: {}]   ;;  %s10276_s6 = inlined_call_operand.hbm [shape: bf16[768,768], index: 6, kind: input, shape index: {}]   ;;  %s10277_s7 = inlined_call_operand.hbm [shape: f32[1,768], index: 7, kind: input, shape index: {}]   ;;  %s10278_s8 = inlined_call_operand.hbm [shape: bf16[64,256], index: 8, kind: input, shape index: {}]   ;;  %s10279_s9 = inlined_call_operand.hbm [shape: bf16[64,256], index: 9, kind: input, shape index: {}]   ;;  %s10280_s10 = inlined_call_operand.hbm [shape: bf16[768,256], index: 10, kind: input, shape index: {}]   ;;  %s10281_s11 = inlined_call_operand.hbm [shape: bf16[768,256], index: 11, kind: input, shape index: {}]   ;;  %s10282_s12 = inlined_call_operand.hbm [shape: f32[1,256], index: 12, kind: input, shape index: {}]   ;;  %s10283_s13 = inlined_call_operand.hbm [shape: bf16[256,128], index: 13, kind: input, shape index: {}]   ;;  %s10284_s14 = inlined_call_operand.hbm [shape: f32[1,128], index: 14, kind: input, shape index: {}]   ;;  %s10285_s15 = inlined_call_operand.hbm [shape: bf16[128,128], index: 15, kind: input, shape index: {}]   ;;  %s10286_s16 = inlined_call_operand.hbm [shape: f32[1,128], index: 16, kind: input, shape index: {}]   ;;  %s10287_s17 = inlined_call_operand.hbm [shape: bf16[128,128], index: 17, kind: input, shape index: {}]   ;;  %s10288_s18 = inlined_call_operand.hbm [shape: f32[1,128], index: 18, kind: input, shape index: {}]   ;;  %s10289_s19 = inlined_call_operand.hbm [shape: f32[2,128], index: 19, kind: output, shape index: {}]  }
   0x1   :  { %10557 = sst [smem:[#allocation303_spill]] %s10270_s0 }
   0x2   :  { %10558 = sst [smem:[#allocation304_spill]] %s10271_s1 }
   0x3   :  { %10559 = sst [smem:[#allocation305_spill]] %s10272_s2 }
   0x4   :  { %10560 = sst [smem:[#allocation306_spill]] %s10273_s3 }
   0x5   :  { %10561 = sst [smem:[#allocation307_spill]] %s10289_s19 }
   0x6   :  { %24 = vsyncpa [#allocation3], 0 }
   0x7   :  { %25 = vsyncpa [#allocation6], 0 }
   0x8   :  { %26 = vsyncpa [#allocation9], 0 }
   0x9   :  { %27 = vsyncpa [#allocation12], 0 }
   0xa   :  { %28 = vsyncpa [#allocation15], 0 }
   0xb   :  { %29 = vsyncpa [#allocation18], 0 }
   0xc   :  { %30 = vsyncpa [#allocation21], 0 }
   0xd   :  { %31 = vsyncpa [#allocation24], 0 }
   0xe   :  { %32 = vsyncpa [#allocation27], 0  ;;  %s10562_s20 = sld [smem:[#allocation304_spill]] }
  0x14   :  { %s50_s21 = sshll.u32 %s10562_s20, 4  ;;  %s51_s21 = int_to_ptr.hbm [resolvable:$true] %s50_s21 }
  0x15   :  { %33 = vsyncpa [#allocation4], 0  ;;  %s8573_s1 = smov [#allocation5]   ;;  %s10563_s24 = sld [smem:[#allocation306_spill]] }
  0x16   :  { %s52_s22 = sshll.u32 %s8573_s1, 4  ;;  %s8574_s3 = smov [#allocation8]   ;;  %s53_s22 = int_to_ptr.vmem [resolvable:$true] %s52_s22 }
  0x17   :  { %55 = dma.hbm_to_vmem [thread:$0]  %s51_s21, 32, %s53_s22, [#allocation6]  }
  0x18   :  { %s75_s26 = sshll.u32 %s8574_s3, 4  ;;  %s104_s29 = sshll.u32 %s10277_s7, 4  ;;  %s76_s26 = int_to_ptr.vmem [resolvable:$true] %s75_s26  ;;  %s105_s29 = int_to_ptr.hbm [resolvable:$true] %s104_s29 }
  0x19   :  { %s8575_s0 = smov 768   ;;  %s8576_s30 = smov 48  }
  0x1a   :  { %s8577_s20 = smov [#allocation11]   ;;  %s127_s2 = sshll.u32 %s10279_s9, 4  ;;  %s128_s2 = int_to_ptr.hbm [resolvable:$true] %s127_s2 }
  0x1b   :  { %s73_s25 = sshll.u32 %s10563_s24, 4  ;;  %s106_s21 = sshll.u32 %s8577_s20, 4  ;;  %s74_s25 = int_to_ptr.hbm [resolvable:$true] %s73_s25  ;;  %s107_s21 = int_to_ptr.vmem [resolvable:$true] %s106_s21 }
  0x1c   :  { %81 = dma.hbm_to_vmem [thread:$0]  %s74_s25, 1536, %s76_s26, [#allocation9], %s8575_s0, %s8575_s0, %s8576_s30  }
  0x1d   :  { %109 = dma.hbm_to_vmem [thread:$0]  %s105_s29, 96, %s107_s21, [#allocation12]  }
  0x1e   :  { %s8578_s23 = smov [#allocation14]   ;;  %s153_s27 = sshll.u32 %s10281_s11, 4  ;;  %s154_s27 = int_to_ptr.hbm [resolvable:$true] %s153_s27 }
  0x1f   :  { %s129_s24 = sshll.u32 %s8578_s23, 4  ;;  %s10290_s28 = smov 128   ;;  %s130_s24 = int_to_ptr.vmem [resolvable:$true] %s129_s24 }
  0x20   :  { %s10292_s19 = smov 8   ;;  %s177_s9 = sshll.u32 %s10283_s13, 4  ;;  %s178_s9 = int_to_ptr.hbm [resolvable:$true] %s177_s9 }
  0x21   :  { %135 = dma.hbm_to_vmem [thread:$0]  %s128_s2, 1024, %s130_s24, [#allocation15], %s10290_s28, %s10290_s28, %s10292_s19  }
  0x22   :  { %s8581_s29 = smov [#allocation17]   ;;  %s8582_s11 = smov [#allocation20]  }
  0x23   :  { %s155_s20 = sshll.u32 %s8581_s29, 4  ;;  %s179_s21 = sshll.u32 %s8582_s11, 4  ;;  %s156_s20 = int_to_ptr.vmem [resolvable:$true] %s155_s20  ;;  %s180_s21 = int_to_ptr.vmem [resolvable:$true] %s179_s21 }
  0x24   :  { %161 = dma.hbm_to_vmem [thread:$0]  %s154_s27, 12288, %s156_s20, [#allocation18], %s10290_s28, %s10290_s28, %s10292_s19  }
  0x25   :  { %s8583_s1 = smov 64   ;;  %s8584_s22 = smov 4  }
  0x26   :  { %185 = dma.hbm_to_vmem [thread:$0]  %s178_s9, 2048, %s180_s21, [#allocation21], %s8583_s1, %s8583_s1, %s8584_s22  }
  0x27   :  { %s201_s24 = sshll.u32 %s10285_s15, 4  ;;  %s8585_s13 = smov [#allocation23]   ;;  %s202_s24 = int_to_ptr.hbm [resolvable:$true] %s201_s24 }
  0x28   :  { %s203_s7 = sshll.u32 %s8585_s13, 4  ;;  %s225_s26 = sshll.u32 %s10287_s17, 4  ;;  %s204_s7 = int_to_ptr.vmem [resolvable:$true] %s203_s7  ;;  %s226_s26 = int_to_ptr.hbm [resolvable:$true] %s225_s26 }
  0x29   :  { %209 = dma.hbm_to_vmem [thread:$0]  %s202_s24, 1024, %s204_s7, [#allocation24], %s8583_s1, %s8583_s1, %s8584_s22  }
  0x2a   :  { %s8586_s27 = smov [#allocation26]   ;;  %s10564_s28 = sld [smem:[#allocation303_spill]] }
  0x2b   :  { %s227_s29 = sshll.u32 %s8586_s27, 4  ;;  %s10565_s23 = sld [smem:[#allocation305_spill]]  ;;  %s228_s29 = int_to_ptr.vmem [resolvable:$true] %s227_s29 }
  0x2c   :  { %233 = dma.hbm_to_vmem [thread:$0]  %s226_s26, 1024, %s228_s29, [#allocation27], %s8583_s1, %s8583_s1, %s8584_s22  }
  0x2d   :  { %s8587_s13 = smov [#allocation2]   ;;  %s8588_s17 = smov [#allocation7]  }
  0x2e   :  { %s41_s19 = sshll.u32 %s8587_s13, 4  ;;  %s62_s24 = sshll.u32 %s8588_s17, 4  ;;  %s42_s19 = int_to_ptr.vmem [resolvable:$true] %s41_s19  ;;  %s63_s24 = int_to_ptr.vmem [resolvable:$true] %s62_s24 }
  0x2f   :  { %s90_s25 = sshll.u32 %s10276_s6, 4  ;;  %s114_s27 = sshll.u32 %s10278_s8, 4  ;;  %s91_s25 = int_to_ptr.hbm [resolvable:$true] %s90_s25  ;;  %s115_s27 = int_to_ptr.hbm [resolvable:$true] %s114_s27 }
  0x30   :  { %s39_s9 = sshll.u32 %s10564_s28, 4  ;;  %s8589_s28 = smov [#allocation10]   ;;  %s40_s9 = int_to_ptr.hbm [resolvable:$true] %s39_s9 }
  0x31   :  { %s60_s2 = sshll.u32 %s10565_s23, 4  ;;  %s92_s1 = sshll.u32 %s8589_s28, 4  ;;  %s61_s2 = int_to_ptr.hbm [resolvable:$true] %s60_s2  ;;  %s93_s1 = int_to_ptr.vmem [resolvable:$true] %s92_s1 }
  0x32   :  { %44 = dma.hbm_to_vmem [thread:$0]  %s40_s9, 32, %s42_s19, [#allocation3]  }
  0x33   :  { %68 = dma.hbm_to_vmem [thread:$0]  %s61_s2, 1536, %s63_s24, [#allocation6], %s8575_s0, %s8575_s0, %s8576_s30  }
  0x34   :  { %s8590_s19 = smov 384   ;;  %s8591_s29 = smov 24  }
  0x35   :  { %98 = dma.hbm_to_vmem [thread:$0]  %s91_s25, 36864, %s93_s1, [#allocation9], %s8590_s19, %s8590_s19, %s8591_s29  }
  0x36   :  { %s8592_s20 = smov [#allocation13]   ;;  %s140_s15 = sshll.u32 %s10280_s10, 4  ;;  %s141_s15 = int_to_ptr.hbm [resolvable:$true] %s140_s15 }
  0x37   :  { %s116_s11 = sshll.u32 %s8592_s20, 4  ;;  %s10566_s0 = smov 8   ;;  %s117_s11 = int_to_ptr.vmem [resolvable:$true] %s116_s11 }
  0x38   :  { %s10567_s30 = smov 128   ;;  %s167_s8 = sshll.u32 %s10282_s12, 4  ;;  %s168_s8 = int_to_ptr.hbm [resolvable:$true] %s167_s8 }
  0x39   :  { %122 = dma.hbm_to_vmem [thread:$0]  %s115_s27, 1024, %s117_s11, [#allocation12], %s10567_s30, %s10567_s30, %s10566_s0  }
  0x3a   :  { %s8593_s2 = smov [#allocation16]   ;;  %s8594_s17 = smov [#allocation19]  }
  0x3b   :  { %s142_s13 = sshll.u32 %s8593_s2, 4  ;;  %s169_s10 = sshll.u32 %s8594_s17, 4  ;;  %s143_s13 = int_to_ptr.vmem [resolvable:$true] %s142_s13  ;;  %s170_s10 = int_to_ptr.vmem [resolvable:$true] %s169_s10 }
  0x3c   :  { %148 = dma.hbm_to_vmem [thread:$0]  %s141_s15, 12288, %s143_s13, [#allocation15], %s10567_s30, %s10567_s30, %s10566_s0  }
  0x3d   :  { %s191_s3 = sshll.u32 %s10284_s14, 4  ;;  %s215_s12 = sshll.u32 %s10286_s16, 4  ;;  %s192_s3 = int_to_ptr.hbm [resolvable:$true] %s191_s3  ;;  %s216_s12 = int_to_ptr.hbm [resolvable:$true] %s215_s12 }
  0x3e   :  { %172 = dma.hbm_to_vmem [thread:$0]  %s168_s8, 32, %s170_s10, [#allocation18]  }
  0x3f   :  { %s8595_s1 = smov [#allocation22]   ;;  %s8596_s26 = smov [#allocation25]  }
  0x40   :  { %s193_s22 = sshll.u32 %s8595_s1, 4  ;;  %s217_s27 = sshll.u32 %s8596_s26, 4  ;;  %s194_s22 = int_to_ptr.vmem [resolvable:$true] %s193_s22  ;;  %s218_s27 = int_to_ptr.vmem [resolvable:$true] %s217_s27 }
  0x41   :  { %196 = dma.hbm_to_vmem [thread:$0]  %s192_s3, 16, %s194_s22, [#allocation21]  }
  0x42   :  { %s239_s20 = sshll.u32 %s10288_s18, 4  ;;  %s8597_s14 = smov [#allocation28]   ;;  %s240_s20 = int_to_ptr.hbm [resolvable:$true] %s239_s20 }
  0x43   :  { %220 = dma.hbm_to_vmem [thread:$0]  %s216_s12, 16, %s218_s27, [#allocation24]  }
  0x44   :  { %s241_s11 = sshll.u32 %s8597_s14, 4  ;;  %s242_s11 = int_to_ptr.vmem [resolvable:$true] %s241_s11 }
  0x45   :  { %244 = dma.hbm_to_vmem [thread:$0]  %s240_s20, 16, %s242_s11, [#allocation27]  }
  0x46   :  { %8553 = dma.done.wait [#allocation3], 32  }
  0x47   :  { %8554 = vsyncadd [#allocation3], 4294967264 }
  0x48   :  { %8555 = dma.done.wait [#allocation6], 1568  }
  0x49   :  { %8556 = vsyncadd [#allocation6], 4294965728 }
  0x4a   :  { %8557 = dma.done.wait [#allocation9], 38400  }
  0x4b   :  { %8558 = vsyncadd [#allocation9], 4294928896 }
  0x4c   :  { %8559 = dma.done.wait [#allocation12], 1120  }
  0x4d   :  { %8560 = vsyncadd [#allocation12], 4294966176 }
  0x4e   :  { %8561 = dma.done.wait [#allocation15], 13312  }
  0x4f   :  { %8562 = vsyncadd [#allocation15], 4294953984 }
  0x50   :  { %8563 = dma.done.wait [#allocation18], 12320  }
  0x51   :  { %8564 = vsyncadd [#allocation18], 4294954976 }
  0x52   :  { %8565 = dma.done.wait [#allocation21], 2064  }
  0x53   :  { %8566 = vsyncadd [#allocation21], 4294965232 }
  0x54   :  { %8567 = dma.done.wait [#allocation24], 1040  }
  0x55   :  { %8568 = vsyncadd [#allocation24], 4294966256 }
  0x56   :  { %8569 = dma.done.wait [#allocation27], 1040  }
  0x57   :  { %8570 = vsyncadd [#allocation27], 4294966256  ;;  %v8598_v0 = vmov 0   ;;  %vm422_vm0 = vcmask 7168   ;;  %v326_v1 = vld [vmem:[%s10274_s4] sm:$0xff]  ;;  %v2747_v3 = vld [vmem:[%s10275_s5 + $0x8] sm:$0xff] }
  0x58   :  { %8082 = vset.pattern.permute.xlu0 %v8598_v0  ;;  %8083 = vset.pattern.permute.xlu1 %v8598_v0  ;;  %v2746_v2 = vld [vmem:[%s10275_s5] sm:$0xff]  ;;  %v2849_v5 = vsel %vm422_vm0, %v2747_v3, 0.0  ;;  %v423_v6 = vsel %vm422_vm0, %v326_v1, 0.0  ;;  %v327_v7 = vld [vmem:[%s10274_s4 + $0x8] sm:$0xff]  ;;  %v5581_v24 = vld [vmem:[#allocation10 + $0x150] sm:$0xf] }
  0x59   :  { %8084 = vset.pattern.permute.xlu2 %v8598_v0  ;;  %v2842_v4 = vsel %vm422_vm0, %v2746_v2, 0.0  ;;  %330 = vperm.xlu0 %8082, %v326_v1   ;;  %v2850_v9 = vrot.slane %v2849_v5, 4  ;;  %v424_v10 = vrot.slane %v423_v6, 4  ;;  %v430_v11 = vsel %vm422_vm0, %v327_v7, 0.0  ;;  %v7572_v25 = vld [vmem:[#allocation10 + $0x164] sm:$0xf0] }
  0x5a   :  { %2750 = vperm.xlu2 %8084, %v2746_v2   ;;  %v2843_v8 = vrot.slane %v2842_v4, 4  ;;  %v431_v12 = vrot.slane %v430_v11, 4  ;;  %v5773_v26 = vld [vmem:[#allocation10 + $0x2d0] sm:$0xf]  ;;  %v8781_v29 = vor.u32 %v7572_v25, %v5581_v24  ;;  %v7620_v30 = vld [vmem:[#allocation10 + $0x2e4] sm:$0xf0] }
  0x5b   :  { %v2851_v14 = vadd.f32 %v2850_v9, %v2849_v5  ;;  %v425_v15 = vadd.f32 %v424_v10, %v423_v6  ;;  %v8785_v33 = vor.u32 %v7620_v30, %v5773_v26  ;;  %v5965_v34 = vld [vmem:[#allocation10 + $0x450] sm:$0xf]  ;;  %v7668_v35 = vld [vmem:[#allocation10 + $0x464] sm:$0xf0]  ;;  %v5557_v41 = vld [vmem:[#allocation10 + $0x120] sm:$0xf] }
  0x5c   :  { %v2844_v13 = vadd.f32 %v2843_v8, %v2842_v4  ;;  %v432_v16 = vadd.f32 %v431_v12, %v430_v11  ;;  %2260 = vmatpush.bf16.msra.mxu0 %v8781_v29  ;;  %v8788_v38 = vor.u32 %v7668_v35, %v5965_v34  ;;  %v6157_v39 = vld [vmem:[#allocation10 + $0x5d0] sm:$0xf]  ;;  %v7716_v40 = vld [vmem:[#allocation10 + $0x5e4] sm:$0xf0]  ;;  %v7566_v44 = vld [vmem:[#allocation10 + $0x134] sm:$0xf0] }
  0x5d   :  { %v426_v18 = vrot.slane %v425_v15, 2  ;;  %v2852_v19 = vrot.slane %v2851_v14, 2  ;;  %2273 = vmatpush.bf16.msra.mxu1 %v8785_v33  ;;  %v8793_v43 = vor.u32 %v7716_v40, %v6157_v39  ;;  %v5749_v45 = vld [vmem:[#allocation10 + $0x2a0] sm:$0xf]  ;;  %v7614_v46 = vld [vmem:[#allocation10 + $0x2b4] sm:$0xf0]  ;;  %v8796_v49 = vor.u32 %v7566_v44, %v5557_v41 }
  0x5e   :  { %v2845_v17 = vrot.slane %v2844_v13, 2  ;;  %v433_v20 = vrot.slane %v432_v16, 2  ;;  %2286 = vmatpush.bf16.msra.mxu2 %v8788_v38  ;;  %v5941_v50 = vld [vmem:[#allocation10 + $0x420] sm:$0xf]  ;;  %v8801_v53 = vor.u32 %v7614_v46, %v5749_v45  ;;  %v7662_v54 = vld [vmem:[#allocation10 + $0x434] sm:$0xf0] }
  0x5f   :  { %v427_v22 = vadd.f32 %v426_v18, %v425_v15  ;;  %v8783_v31 = vadd.f32 %v2852_v19, %v2851_v14  ;;  %2299 = vmatpush.bf16.msra.mxu3 %v8793_v43  ;;  %v6133_v55 = vld [vmem:[#allocation10 + $0x5a0] sm:$0xf]  ;;  %v8804_v56 = vor.u32 %v7662_v54, %v5941_v50  ;;  %v7710_v57 = vld [vmem:[#allocation10 + $0x5b4] sm:$0xf0]  ;;  %v5533_v58 = vld [vmem:[#allocation10 + $0xf0] sm:$0xf] }
  0x60   :  { %v2846_v21 = vadd.f32 %v2845_v17, %v2844_v13  ;;  %v434_v23 = vadd.f32 %v433_v20, %v432_v16  ;;  %2261 = vmatpush.bf16.msra.mxu0 %v8796_v49  ;;  %v7560_v59 = vld [vmem:[#allocation10 + $0x104] sm:$0xf0]  ;;  %v8807_v60 = vor.u32 %v7710_v57, %v6133_v55  ;;  %v5725_v62 = vld [vmem:[#allocation10 + $0x270] sm:$0xf]  ;;  %v7554_v8 = vld [vmem:[#allocation10 + $0xd4] sm:$0xf0] }
  0x61   :  { %335 = vperm.xlu0 %8082, %v327_v7   ;;  %v428_v28 = vrot.slane %v427_v22, 1  ;;  %v2854_v51 = vrot.slane %v8783_v31, 1  ;;  %2274 = vmatpush.bf16.msra.mxu1 %v8801_v53  ;;  %v8809_v61 = vor.u32 %v7560_v59, %v5533_v58  ;;  %v7608_v63 = vld [vmem:[#allocation10 + $0x284] sm:$0xf0]  ;;  %v5917_v0 = vld [vmem:[#allocation10 + $0x3f0] sm:$0xf] }
  0x62   :  { %2755 = vperm.xlu2 %8084, %v2747_v3   ;;  %v2847_v27 = vrot.slane %v2846_v21, 1  ;;  %v435_v32 = vrot.slane %v434_v23, 1  ;;  %2287 = vmatpush.bf16.msra.mxu2 %v8804_v56  ;;  %v8812_v1 = vor.u32 %v7608_v63, %v5725_v62  ;;  %v7656_v2 = vld [vmem:[#allocation10 + $0x404] sm:$0xf0]  ;;  %v6109_v3 = vld [vmem:[#allocation10 + $0x570] sm:$0xf] }
  0x63   :  { %v429_v37 = vadd.f32 %v428_v28, %v427_v22  ;;  %v7704_v4 = vld [vmem:[#allocation10 + $0x584] sm:$0xf0]  ;;  %2300 = vmatpush.bf16.msra.mxu3 %v8807_v60  ;;  %v8815_v5 = vor.u32 %v7656_v2, %v5917_v0  ;;  %v5509_v7 = vld [vmem:[#allocation10 + $0xc0] sm:$0xf]  ;;  %v7602_v11 = vld [vmem:[#allocation10 + $0x254] sm:$0xf0] }
  0x64   :  { %v2848_v36 = vadd.f32 %v2847_v27, %v2846_v21  ;;  %v8790_v42 = vadd.f32 %v435_v32, %v434_v23  ;;  %v8817_v6 = vor.u32 %v7704_v4, %v6109_v3  ;;  %v5701_v9 = vld [vmem:[#allocation10 + $0x240] sm:$0xf]  ;;  %2262 = vmatpush.bf16.msra.mxu0 %v8809_v61  ;;  %v8820_v10 = vor.u32 %v7554_v8, %v5509_v7  ;;  %v7650_v13 = vld [vmem:[#allocation10 + $0x3d4] sm:$0xf0]  ;;  %v5485_v17 = vld [vmem:[#allocation10 + $0x90] sm:$0xf] }
  0x65   :  { %v437_v48 = vmax.f32 %v429_v37, 1.0  ;;  %v5893_v12 = vld [vmem:[#allocation10 + $0x3c0] sm:$0xf]  ;;  %2275 = vmatpush.bf16.msra.mxu1 %v8812_v1  ;;  %v8823_v14 = vor.u32 %v7602_v11, %v5701_v9  ;;  %v7698_v16 = vld [vmem:[#allocation10 + $0x554] sm:$0xf0]  ;;  %v2855_v27 = vadd.f32 %v2854_v51, %v8783_v31  ;;  %vm801_vm1 = vcmask 1041409  }
  0x66   :  { %v2856_v47 = vmax.f32 %v2848_v36, 1.0  ;;  %v438_v52 = vmax.f32 %v8790_v42, 1.0  ;;  %v6085_v15 = vld [vmem:[#allocation10 + $0x540] sm:$0xf]  ;;  %2288 = vmatpush.bf16.msra.mxu2 %v8815_v5  ;;  %v8826_v19 = vor.u32 %v7650_v13, %v5893_v12  ;;  %v7548_v20 = vld [vmem:[#allocation10 + $0xa4] sm:$0xf0] }
  0x67   :  { %v5677_v21 = vld [vmem:[#allocation10 + $0x210] sm:$0xf]  ;;  %v7596_v22 = vld [vmem:[#allocation10 + $0x224] sm:$0xf0]  ;;  %2301 = vmatpush.bf16.msra.mxu3 %v8817_v6  ;;  %v8829_v23 = vor.u32 %v7698_v16, %v6085_v15  ;;  %v8833_v28 = vor.u32 %v7548_v20, %v5485_v17  ;;  %v2857_v31 = vmax.f32 %v2855_v27, 1.0  ;;  %vm3470_vm2 = vcmask 523264  }
  0x68   :  { %8088 = vrcp.f32 %v2856_v47  ;;  %v5869_v24 = vld [vmem:[#allocation10 + $0x390] sm:$0xf]  ;;  %v7644_v25 = vld [vmem:[#allocation10 + $0x3a4] sm:$0xf0]  ;;  %2263 = vmatpush.bf16.msra.mxu0 %v8820_v10  ;;  %v8836_v34 = vor.u32 %v7596_v22, %v5677_v21  ;;  %v5461_v40 = vld [vmem:[#allocation10 + $0x60] sm:$0xf] }
  0x69   :  { %8090 = vrcp.f32 %v437_v48  ;;  %v6061_v30 = vld [vmem:[#allocation10 + $0x510] sm:$0xf]  ;;  %v7692_v32 = vld [vmem:[#allocation10 + $0x524] sm:$0xf0]  ;;  %2276 = vmatpush.bf16.msra.mxu1 %v8823_v14  ;;  %v8839_v35 = vor.u32 %v7644_v25, %v5869_v24  ;;  %v7542_v41 = vld [vmem:[#allocation10 + $0x74] sm:$0xf0] }
  0x6a   :  { %8092 = vrcp.f32 %v438_v52  ;;  %2289 = vmatpush.bf16.msra.mxu2 %v8826_v19  ;;  %v8842_v36 = vor.u32 %v7692_v32, %v6061_v30  ;;  %v5653_v42 = vld [vmem:[#allocation10 + $0x1e0] sm:$0xf]  ;;  %v8848_v44 = vor.u32 %v7542_v41, %v5461_v40  ;;  %v7590_v45 = vld [vmem:[#allocation10 + $0x1f4] sm:$0xf0]  ;;  %v5437_v55 = vld [vmem:[#allocation10 + $0x30] sm:$0xf] }
  0x6b   :  { %2302 = vmatpush.bf16.msra.mxu3 %v8829_v23  ;;  %8094 = vrcp.f32 %v2857_v31  ;;  %v5845_v46 = vld [vmem:[#allocation10 + $0x360] sm:$0xf]  ;;  %v7638_v47 = vld [vmem:[#allocation10 + $0x374] sm:$0xf0]  ;;  %v8850_v48 = vor.u32 %v7590_v45, %v5653_v42  ;;  %v7536_v57 = vld [vmem:[#allocation10 + $0x44] sm:$0xf0] }
  0x6c   :  { %2264 = vmatpush.bf16.msra.mxu0 %v8833_v28  ;;  %10568 = vst [vmem:[#allocation40_spill] sm:$0xff] %v8848_v44  ;;  %v8852_v50 = vor.u32 %v7638_v47, %v5845_v46  ;;  %v6037_v51 = vld [vmem:[#allocation10 + $0x4e0] sm:$0xf]  ;;  %v7686_v52 = vld [vmem:[#allocation10 + $0x4f4] sm:$0xf0]  ;;  %v8859_v59 = vor.u32 %v7536_v57, %v5437_v55  ;;  %s8599_s4 = smov [#allocation29]  }
  0x6d   :  { %2277 = vmatpush.bf16.msra.mxu1 %v8836_v34  ;;  %10569 = vst [vmem:[#allocation41_spill] sm:$0xff] %v8850_v48  ;;  %v8855_v54 = vor.u32 %v7686_v52, %v6037_v51  ;;  %v5629_v58 = vld [vmem:[#allocation10 + $0x1b0] sm:$0xf]  ;;  %v7584_v62 = vld [vmem:[#allocation10 + $0x1c4] sm:$0xf0]  ;;  %s5391_s5 = sshll.u32 %s8599_s4, 4  ;;  %s5392_s5 = int_to_ptr.vmem [resolvable:$true] %s5391_s5 }
  0x6e   :  { %v8089_v18 = vpop.eup %8088  ;;  %2290 = vmatpush.bf16.msra.mxu2 %v8839_v35  ;;  %10570 = vst [vmem:[#allocation42_spill] sm:$0xff] %v8852_v50  ;;  %v5821_v63 = vld [vmem:[#allocation10 + $0x330] sm:$0xf]  ;;  %v7632_v0 = vld [vmem:[#allocation10 + $0x344] sm:$0xf0]  ;;  %v8862_v2 = vor.u32 %v7584_v62, %v5629_v58  ;;  %s11099_s2 = sld [smem:[#allocation307_spill]] }
  0x6f   :  { %2862 = vperm.xlu0 %8082, %v8089_v18   ;;  %v8091_v26 = vpop.eup %8090  ;;  %2303 = vmatpush.bf16.msra.mxu3 %v8842_v36  ;;  %10571 = vst [vmem:[#allocation43_spill] sm:$0xff] %v8855_v54  ;;  %v8864_v3 = vor.u32 %v7632_v0, %v5821_v63  ;;  %v6013_v4 = vld [vmem:[#allocation10 + $0x4b0] sm:$0xf]  ;;  %v7680_v7 = vld [vmem:[#allocation10 + $0x4c4] sm:$0xf0] }
  0x70   :  { %443 = vperm.xlu1 %8083, %v8091_v26   ;;  %v8093_v37 = vpop.eup %8092  ;;  %2265 = vmatpush.bf16.msra.mxu0 %v8848_v44  ;;  %10572 = vst [vmem:[#allocation44_spill] sm:$0xff] %v8859_v59  ;;  %v8866_v8 = vor.u32 %v7680_v7, %v6013_v4  ;;  %v5413_v9 = vld [vmem:[#allocation10] sm:$0xf]  ;;  %v7530_v11 = vld [vmem:[#allocation10 + $0x14] sm:$0xf0] }
  0x71   :  { %v8095_v39 = vpop.eup %8094  ;;  %2278 = vmatpush.bf16.msra.mxu1 %v8850_v48  ;;  %10573 = vst [vmem:[#allocation45_spill] sm:$0xff] %v8862_v2  ;;  %v5605_v12 = vld [vmem:[#allocation10 + $0x180] sm:$0xf]  ;;  %v7578_v13 = vld [vmem:[#allocation10 + $0x194] sm:$0xf0]  ;;  %v8872_v15 = vor.u32 %v7530_v11, %v5413_v9 }
  0x72   :  { %2291 = vmatpush.bf16.msra.mxu2 %v8852_v50  ;;  %10574 = vst [vmem:[#allocation46_spill] sm:$0xff] %v8864_v3  ;;  %v5797_v16 = vld [vmem:[#allocation10 + $0x300] sm:$0xf]  ;;  %v7626_v17 = vld [vmem:[#allocation10 + $0x314] sm:$0xf0]  ;;  %v8874_v20 = vor.u32 %v7578_v13, %v5605_v12 }
  0x73   :  { %2304 = vmatpush.bf16.msra.mxu3 %v8855_v54  ;;  %10575 = vst [vmem:[#allocation47_spill] sm:$0xff] %v8866_v8  ;;  %v5989_v18 = vld [vmem:[#allocation10 + $0x480] sm:$0xf]  ;;  %v8876_v21 = vor.u32 %v7626_v17, %v5797_v16  ;;  %v7674_v22 = vld [vmem:[#allocation10 + $0x494] sm:$0xf0] }
  0x74   :  { %2266 = vmatpush.bf16.msra.mxu0 %v8859_v59  ;;  %10576 = vst [vmem:[#allocation48_spill] sm:$0xff] %v8872_v15  ;;  %v6349_v24 = vld [vmem:[#allocation10 + $0x750] sm:$0xf]  ;;  %v7764_v25 = vld [vmem:[#allocation10 + $0x764] sm:$0xf0]  ;;  %v8879_v26 = vor.u32 %v7674_v22, %v5989_v18  ;;  %s5393_s13 = sshll.u32 %s11099_s2, 4  ;;  %s5394_s13 = int_to_ptr.hbm [resolvable:$true] %s5393_s13 }
  0x75   :  { %2279 = vmatpush.bf16.msra.mxu1 %v8862_v2  ;;  %10577 = vst [vmem:[#allocation49_spill] sm:$0xff] %v8874_v20  ;;  %v8881_v27 = vor.u32 %v7764_v25, %v6349_v24  ;;  %v6541_v30 = vld [vmem:[#allocation10 + $0x8d0] sm:$0xf]  ;;  %v7812_v32 = vld [vmem:[#allocation10 + $0x8e4] sm:$0xf0] }
  0x76   :  { %2292 = vmatpush.bf16.msra.mxu2 %v8864_v3  ;;  %10578 = vst [vmem:[#allocation50_spill] sm:$0xff] %v8876_v21  ;;  %v7569_v31 = vld [vmem:[#allocation10 + $0x154] sm:$0xf]  ;;  %v5775_v41 = vld [vmem:[#allocation10 + $0x2e8] sm:$0xf0] }
  0x77   :  { %2305 = vmatpush.bf16.msra.mxu3 %v8866_v8  ;;  %10579 = vst [vmem:[#allocation51_spill] sm:$0xff] %v8879_v26  ;;  %v7617_v40 = vld [vmem:[#allocation10 + $0x2d4] sm:$0xf]  ;;  %v6325_v46 = vld [vmem:[#allocation10 + $0x720] sm:$0xf] }
  0x78   :  { %448 = vperm.xlu1 %8083, %v8093_v37   ;;  %2267 = vmatpush.bf16.msra.mxu0 %v8872_v15  ;;  %10580 = vst [vmem:[#allocation52_spill] sm:$0xff] %v8881_v27  ;;  %v8885_v37 = vor.u32 %v7812_v32, %v6541_v30  ;;  %v8891_v45 = vor.u32 %v7617_v40, %v5775_v41  ;;  %v7758_v47 = vld [vmem:[#allocation10 + $0x734] sm:$0xf0]  ;;  %v6517_v51 = vld [vmem:[#allocation10 + $0x8a0] sm:$0xf] }
  0x79   :  { %2280 = vmatpush.bf16.msra.mxu1 %v8874_v20  ;;  %v8894_v52 = vor.u32 %v7758_v47, %v6325_v46  ;;  %v7806_v55 = vld [vmem:[#allocation10 + $0x8b4] sm:$0xf0]  ;;  %v7563_v57 = vld [vmem:[#allocation10 + $0x124] sm:$0xf]  ;;  %v5559_v58 = vld [vmem:[#allocation10 + $0x138] sm:$0xf0] }
  0x7a   :  { %2293 = vmatpush.bf16.msra.mxu2 %v8876_v21  ;;  %10581 = vst [vmem:[#allocation53_spill] sm:$0xff] %v8885_v37  ;;  %v8898_v62 = vor.u32 %v7806_v55, %v6517_v51  ;;  %v8900_v63 = vor.u32 %v7563_v57, %v5559_v58  ;;  %v7611_v0 = vld [vmem:[#allocation10 + $0x2a4] sm:$0xf]  ;;  %v5751_v4 = vld [vmem:[#allocation10 + $0x2b8] sm:$0xf0] }
  0x7b   :  { %2306 = vmatpush.bf16.msra.mxu3 %v8879_v26  ;;  %10583 = vst [vmem:[#allocation55_spill] sm:$0xff] %v8891_v45  ;;  %v6301_v7 = vld [vmem:[#allocation10 + $0x6f0] sm:$0xf]  ;;  %v8902_v9 = vor.u32 %v7611_v0, %v5751_v4  ;;  %v7752_v11 = vld [vmem:[#allocation10 + $0x704] sm:$0xf0] }
  0x7c   :  { %2312 = vmatpush.bf16.msrb.mxu0 %v8881_v27  ;;  %10584 = vst [vmem:[#allocation56_spill] sm:$0xff] %v8894_v52  ;;  %v6493_v12 = vld [vmem:[#allocation10 + $0x870] sm:$0xf]  ;;  %v7800_v13 = vld [vmem:[#allocation10 + $0x884] sm:$0xf0]  ;;  %v8905_v16 = vor.u32 %v7752_v11, %v6301_v7  ;;  %v314_v11 = vld [vmem:[#allocation7] sm:$0xff] }
  0x7d   :  { %2325 = vmatpush.bf16.msrb.mxu1 %v8885_v37  ;;  %10585 = vst [vmem:[#allocation57_spill] sm:$0xff] %v8898_v62  ;;  %v7557_v17 = vld [vmem:[#allocation10 + $0xf4] sm:$0xf]  ;;  %v5535_v18 = vld [vmem:[#allocation10 + $0x108] sm:$0xf0]  ;;  %v8908_v24 = vor.u32 %v7800_v13, %v6493_v12  ;;  %v318_v37 = vld [vmem:[#allocation7 + $0x20] sm:$0xff] }
  0x7e   :  { %10586 = vst [vmem:[#allocation58_spill] sm:$0xff] %v8900_v63  ;;  %v7605_v22 = vld [vmem:[#allocation10 + $0x274] sm:$0xf]  ;;  %v5727_v25 = vld [vmem:[#allocation10 + $0x288] sm:$0xf0]  ;;  %v8912_v30 = vor.u32 %v7557_v17, %v5535_v18 }
  0x7f   :  { %2351 = vmatpush.bf16.msrb.mxu3 %v8891_v45  ;;  %10587 = vst [vmem:[#allocation59_spill] sm:$0xff] %v8902_v9  ;;  %v8914_v32 = vor.u32 %v7605_v22, %v5727_v25  ;;  %v6469_v40 = vld [vmem:[#allocation10 + $0x840] sm:$0xf]  ;;  %v7794_v46 = vld [vmem:[#allocation10 + $0x854] sm:$0xf0]  ;;  %v320_v13 = vld [vmem:[#allocation7 + $0x30] sm:$0xff] }
  0x80   :  { %2867 = vperm.xlu1 %8083, %v8095_v39   ;;  %v5583_v39 = vld [vmem:[#allocation10 + $0x168] sm:$0xf0]  ;;  %2313 = vmatpush.bf16.msrb.mxu0 %v8894_v52  ;;  %10588 = vst [vmem:[#allocation60_spill] sm:$0xff] %v8905_v16  ;;  %v8922_v47 = vor.u32 %v7794_v46, %v6469_v40  ;;  %v7551_v51 = vld [vmem:[#allocation10 + $0xc4] sm:$0xf]  ;;  %v316_v18 = vld [vmem:[#allocation7 + $0x10] sm:$0xff] }
  0x81   :  { %v8889_v42 = vor.u32 %v7569_v31, %v5583_v39  ;;  %2326 = vmatpush.bf16.msrb.mxu1 %v8898_v62  ;;  %10589 = vst [vmem:[#allocation61_spill] sm:$0xff] %v8908_v24  ;;  %v6277_v31 = vld [vmem:[#allocation10 + $0x6c0] sm:$0xf]  ;;  %v7746_v39 = vld [vmem:[#allocation10 + $0x6d4] sm:$0xf0]  ;;  %v315_v17 = vld [vmem:[#allocation7 + $0x8] sm:$0xff] }
  0x82   :  { %10590 = vst [vmem:[#allocation62_spill] sm:$0xff] %v8912_v30  ;;  %v8918_v41 = vor.u32 %v7746_v39, %v6277_v31  ;;  %v5511_v55 = vld [vmem:[#allocation10 + $0xd8] sm:$0xf0]  ;;  %v7599_v57 = vld [vmem:[#allocation10 + $0x244] sm:$0xf] }
  0x83   :  { %10582 = vst [vmem:[#allocation54_spill] sm:$0xff] %v8889_v42  ;;  %2338 = vmatpush.bf16.msrb.mxu2 %v8889_v42  ;;  %2352 = vmatpush.bf16.msrb.mxu3 %v8902_v9  ;;  %v5703_v58 = vld [vmem:[#allocation10 + $0x258] sm:$0xf0]  ;;  %v8925_v0 = vor.u32 %v7551_v51, %v5511_v55  ;;  %v322_v51 = vld [vmem:[#allocation7 + $0x40] sm:$0xff]  ;;  %v323_v55 = vld [vmem:[#allocation7 + $0x48] sm:$0xff] }
  0x84   :  { %10591 = vst [vmem:[#allocation63_spill] sm:$0xff] %v8914_v32  ;;  %2314 = vmatpush.bf16.msrb.mxu0 %v8905_v16  ;;  %v8928_v4 = vor.u32 %v7599_v57, %v5703_v58  ;;  %v321_v25 = vld [vmem:[#allocation7 + $0x38] sm:$0xff]  ;;  %v6445_v16 = vld [vmem:[#allocation10 + $0x810] sm:$0xf]  ;;  %v7545_v62 = vld [vmem:[#allocation10 + $0x94] sm:$0xf] }
  0x85   :  { %2327 = vmatpush.bf16.msrb.mxu1 %v8908_v24  ;;  %10592 = vst [vmem:[#allocation64_spill] sm:$0xff] %v8918_v41  ;;  %v317_v40 = vld [vmem:[#allocation7 + $0x18] sm:$0xff]  ;;  %v7740_v24 = vld [vmem:[#allocation10 + $0x6a4] sm:$0xf0]  ;;  %v5487_v52 = vld [vmem:[#allocation10 + $0xa8] sm:$0xf0] }
  0x86   :  { %10593 = vst [vmem:[#allocation65_spill] sm:$0xff] %v8922_v47  ;;  %v5679_v45 = vld [vmem:[#allocation10 + $0x228] sm:$0xf0]  ;;  %v8936_v15 = vor.u32 %v7545_v62, %v5487_v52  ;;  %v7587_v48 = vld [vmem:[#allocation10 + $0x1e4] sm:$0xf] }
  0x87   :  { %2339 = vmatpush.bf16.msrb.mxu2 %v8900_v63  ;;  %2353 = vmatpush.bf16.msrb.mxu3 %v8914_v32  ;;  %10594 = vst [vmem:[#allocation66_spill] sm:$0xff] %v8925_v0 }
  0x88   :  { %2315 = vmatpush.bf16.msrb.mxu0 %v8918_v41  ;;  %10595 = vst [vmem:[#allocation67_spill] sm:$0xff] %v8928_v4 }
  0x89   :  { %2328 = vmatpush.bf16.msrb.mxu1 %v8922_v47  ;;  %10598 = vst [vmem:[#allocation70_spill] sm:$0xff] %v8936_v15 }
  0x8b   :  { %2340 = vmatpush.bf16.msrb.mxu2 %v8912_v30  ;;  %2354 = vmatpush.bf16.msrb.mxu3 %v8928_v4  ;;  %v6253_v30 = vld [vmem:[#allocation10 + $0x690] sm:$0xf] }
  0x8c   :  { %v8932_v26 = vor.u32 %v7740_v24, %v6253_v30 }
  0x8e   :  { %10596 = vst [vmem:[#allocation68_spill] sm:$0xff] %v8932_v26  ;;  %2316 = vmatpush.bf16.msrb.mxu0 %v8932_v26 }
  0x8f   :  { %2341 = vmatpush.bf16.msrb.mxu2 %v8925_v0 }
  0x93   :  { %2342 = vmatpush.bf16.msrb.mxu2 %v8936_v15 }
  0xcb   :  { %v331_v7 = vpop.permute.xlu0 %330 }
  0xcc   :  { %v338_v22 = vmul.f32 %v331_v7, %v314_v11  ;;  %v339_v39 = vmul.f32 %v331_v7, %v315_v17  ;;  %v340_v46 = vmul.f32 %v331_v7, %v316_v18  ;;  %v341_v41 = vmul.f32 %v331_v7, %v317_v40  ;;  %v7788_v11 = vld [vmem:[#allocation10 + $0x824] sm:$0xf0]  ;;  %v7593_v18 = vld [vmem:[#allocation10 + $0x214] sm:$0xf] }
  0xcd   :  { %v8938_v8 = vor.u32 %v7593_v18, %v5679_v45 }
  0xce   :  { %v350_v58 = vrot.slane %v338_v22, 4  ;;  %v356_v0 = vrot.slane %v339_v39, 4  ;;  %v362_v9 = vrot.slane %v340_v46, 4 }
  0xcf   :  { %10599 = vst [vmem:[#allocation71_spill] sm:$0xff] %v8938_v8  ;;  %2355 = vmatpush.bf16.msrb.mxu3 %v8938_v8 }
  0xd0   :  { %v357_v42 = vadd.f32 %v356_v0, %v339_v39  ;;  %v363_v21 = vadd.f32 %v362_v9, %v340_v46  ;;  %v342_v0 = vmul.f32 %v331_v7, %v318_v37 }
  0xd2   :  { %v358_v39 = vrot.slane %v357_v42, 2  ;;  %v364_v45 = vrot.slane %v363_v21, 2  ;;  %v374_v37 = vrot.slane %v342_v0, 4 }
  0xd3   :  { %v336_v12 = vpop.permute.xlu0 %335 }
  0xd4   :  { %v344_v31 = vmul.f32 %v336_v12, %v320_v13  ;;  %v345_v57 = vmul.f32 %v336_v12, %v321_v25  ;;  %v346_v32 = vmul.f32 %v336_v12, %v322_v51  ;;  %v347_v4 = vmul.f32 %v336_v12, %v323_v55  ;;  %v319_v55 = vld [vmem:[#allocation7 + $0x28] sm:$0xff] }
  0xd5   :  { %v351_v13 = vadd.f32 %v350_v58, %v338_v22  ;;  %v368_v25 = vrot.slane %v341_v41, 4  ;;  %v8934_v51 = vor.u32 %v7788_v11, %v6445_v16  ;;  %v324_v22 = vld [vmem:[#allocation7 + $0x50] sm:$0xff]  ;;  %v343_v9 = vmul.f32 %v331_v7, %v319_v55 }
  0xd6   :  { %v386_v47 = vrot.slane %v344_v31, 4  ;;  %v392_v63 = vrot.slane %v345_v57, 4  ;;  %v398_v27 = vrot.slane %v346_v32, 4  ;;  %v404_v40 = vrot.slane %v347_v4, 4 }
  0xd7   :  { %10597 = vst [vmem:[#allocation69_spill] sm:$0xff] %v8934_v51  ;;  %2329 = vmatpush.bf16.msrb.mxu1 %v8934_v51  ;;  %v348_v16 = vmul.f32 %v336_v12, %v324_v22  ;;  %v359_v11 = vadd.f32 %v358_v39, %v357_v42  ;;  %v380_v26 = vrot.slane %v343_v9, 4  ;;  %v365_v7 = vadd.f32 %v364_v45, %v363_v21  ;;  %v7782_v22 = vld [vmem:[#allocation10 + $0x7f4] sm:$0xf0]  ;;  %v7539_v21 = vld [vmem:[#allocation10 + $0x64] sm:$0xf] }
  0xd8   :  { %v387_v17 = vadd.f32 %v386_v47, %v344_v31  ;;  %v393_v20 = vadd.f32 %v392_v63, %v345_v57  ;;  %v352_v47 = vrot.slane %v351_v13, 2  ;;  %v325_v31 = vld [vmem:[#allocation7 + $0x58] sm:$0xff]  ;;  %v369_v63 = vadd.f32 %v368_v25, %v341_v41 }
  0xd9   :  { %v399_v52 = vadd.f32 %v398_v27, %v346_v32  ;;  %v405_v62 = vadd.f32 %v404_v40, %v347_v4  ;;  %v349_v24 = vmul.f32 %v336_v12, %v325_v31  ;;  %v410_v59 = vrot.slane %v348_v16, 4  ;;  %v6229_v4 = vld [vmem:[#allocation10 + $0x660] sm:$0xf]  ;;  %v7734_v25 = vld [vmem:[#allocation10 + $0x674] sm:$0xf0] }
  0xda   :  { %v388_v58 = vrot.slane %v387_v17, 2  ;;  %v394_v30 = vrot.slane %v393_v20, 2  ;;  %v353_v46 = vadd.f32 %v352_v47, %v351_v13  ;;  %v370_v18 = vrot.slane %v369_v63, 2  ;;  %v6421_v12 = vld [vmem:[#allocation10 + $0x7e0] sm:$0xf] }
  0xdb   :  { %v400_v2 = vrot.slane %v399_v52, 2  ;;  %v406_v51 = vrot.slane %v405_v62, 2  ;;  %v416_v15 = vrot.slane %v349_v24, 4  ;;  %v360_v40 = vrot.slane %v359_v11, 1 }
  0xdc   :  { %v389_v57 = vadd.f32 %v388_v58, %v387_v17  ;;  %v395_v41 = vadd.f32 %v394_v30, %v393_v20  ;;  %v354_v27 = vrot.slane %v353_v46, 1  ;;  %v375_v13 = vadd.f32 %v374_v37, %v342_v0  ;;  %v5463_v20 = vld [vmem:[#allocation10 + $0x78] sm:$0xf0] }
  0xdd   :  { %v401_v17 = vadd.f32 %v400_v2, %v399_v52  ;;  %v407_v47 = vadd.f32 %v406_v51, %v405_v62  ;;  %v8946_v42 = vadd.f32 %v380_v26, %v343_v9  ;;  %v411_v31 = vadd.f32 %v410_v59, %v348_v16  ;;  %v5655_v26 = vld [vmem:[#allocation10 + $0x1f8] sm:$0xf0]  ;;  %v6205_v9 = vld [vmem:[#allocation10 + $0x630] sm:$0xf]  ;;  %v7728_v59 = vld [vmem:[#allocation10 + $0x644] sm:$0xf0] }
  0xde   :  { %v390_v32 = vrot.slane %v389_v57, 1  ;;  %v396_v55 = vrot.slane %v395_v41, 1  ;;  %v366_v58 = vrot.slane %v365_v7, 1  ;;  %v371_v39 = vadd.f32 %v370_v18, %v369_v63 }
  0xdf   :  { %v402_v30 = vrot.slane %v401_v17, 1  ;;  %v8950_v54 = vor.u32 %v7734_v25, %v6229_v4  ;;  %v8952_v50 = vor.u32 %v7782_v22, %v6421_v12  ;;  %v417_v44 = vadd.f32 %v416_v15, %v349_v24  ;;  %v6397_v24 = vld [vmem:[#allocation10 + $0x7b0] sm:$0xf]  ;;  %v7533_v4 = vld [vmem:[#allocation10 + $0x34] sm:$0xf] }
  0xe0   :  { %v391_v45 = vadd.f32 %v390_v32, %v389_v57  ;;  %v355_v0 = vadd.f32 %v354_v27, %v353_v46  ;;  %v361_v2 = vadd.f32 %v360_v40, %v359_v11  ;;  %v397_v51 = vadd.f32 %v396_v55, %v395_v41  ;;  %v7776_v46 = vld [vmem:[#allocation10 + $0x7c4] sm:$0xf0]  ;;  %v5439_v25 = vld [vmem:[#allocation10 + $0x48] sm:$0xf0]  ;;  %v7581_v22 = vld [vmem:[#allocation10 + $0x1b4] sm:$0xf] }
  0xe1   :  { %10600 = vst [vmem:[#allocation72_spill] sm:$0xff] %v8952_v50  ;;  %v403_v52 = vadd.f32 %v402_v30, %v401_v17  ;;  %v408_v63 = vrot.slane %v407_v47, 1  ;;  %2317 = vmatpush.bf16.msrb.mxu0 %v8950_v54  ;;  %2330 = vmatpush.bf16.msrb.mxu1 %v8952_v50  ;;  %v8957_v16 = vor.u32 %v7539_v21, %v5463_v20  ;;  %v412_v57 = vrot.slane %v411_v31, 2  ;;  %v5631_v17 = vld [vmem:[#allocation10 + $0x1c8] sm:$0xf0] }
  0xe2   :  { %v8941_v3 = vpop.permute.xlu1 %443  ;;  %v367_v37 = vadd.f32 %v366_v58, %v365_v7  ;;  %v372_v18 = vrot.slane %v371_v39, 1  ;;  %v8963_v27 = vor.u32 %v7587_v48, %v5655_v26  ;;  %v8965_v32 = vor.u32 %v7728_v59, %v6205_v9 }
  0xe3   :  { %10601 = vst [vmem:[#allocation73_spill] sm:$0xff] %v8957_v16  ;;  %v451_v15 = vmul.f32 %v8941_v3, %v355_v0  ;;  %2343 = vmatpush.bf16.msrb.mxu2 %v8957_v16  ;;  %v376_v40 = vrot.slane %v375_v13, 2  ;;  %v382_v7 = vrot.slane %v8946_v42, 2  ;;  %v452_v55 = vmul.f32 %v8941_v3, %v361_v2 }
  0xe4   :  { %10602 = vst [vmem:[#allocation74_spill] sm:$0xff] %v8963_v27  ;;  %v453_v12 = vmul.f32 %v8941_v3, %v367_v37  ;;  %v418_v58 = vrot.slane %v417_v44, 2  ;;  %v409_v21 = vadd.f32 %v408_v63, %v407_v47  ;;  %2356 = vmatpush.bf16.msrb.mxu3 %v8963_v27  ;;  %v8972_v48 = vor.u32 %v7776_v46, %v6397_v24  ;;  %v6181_v63 = vld [vmem:[#allocation10 + $0x600] sm:$0xf]  ;;  %v7769_v27 = vld [vmem:[#allocation10 + $0x794] sm:$0xf] }
  0xe5   :  { %10603 = vst [vmem:[#allocation75_spill] sm:$0xff] %v8965_v32  ;;  %2318 = vmatpush.bf16.msrb.mxu0 %v8965_v32  ;;  %v463_v30 = vpack.c.bf16 %v451_v15, %v451_v15  ;;  %v413_v0 = vadd.f32 %v412_v57, %v411_v31  ;;  %v8978_v59 = vor.u32 %v7581_v22, %v5631_v17  ;;  %v7722_v57 = vld [vmem:[#allocation10 + $0x614] sm:$0xf0] }
  0xe6   :  { %10604 = vst [vmem:[#allocation76_spill] sm:$0xff] %v8972_v48  ;;  %2331 = vmatpush.bf16.msrb.mxu1 %v8972_v48  ;;  %v377_v47 = vadd.f32 %v376_v40, %v375_v13  ;;  %v419_v37 = vadd.f32 %v418_v58, %v417_v44  ;;  %v7770_v15 = vld [vmem:[#allocation10 + $0x794] sm:$0xf0]  ;;  %v383_v24 = vadd.f32 %v382_v7, %v8946_v42  ;;  %v5415_v40 = vld [vmem:[#allocation10 + $0x18] sm:$0xf0] }
  0xe7   :  { %10606 = vst [vmem:[#allocation78_spill] sm:$0xff] %v8978_v59  ;;  %v789_v46 = vunpack.c.l.b16 %v463_v30  ;;  %v7575_v42 = vld [vmem:[#allocation10 + $0x184] sm:$0xf]  ;;  %v5607_v7 = vld [vmem:[#allocation10 + $0x198] sm:$0xf0] }
  0xe8   :  { %2357 = vmatpush.bf16.msrb.mxu3 %v8978_v59  ;;  %v378_v22 = vrot.slane %v377_v47, 1  ;;  %v5839_v59 = vld [vmem:[#allocation10 + $0x358] sm:$0xf0]  ;;  %v6199_v48 = vld [vmem:[#allocation10 + $0x628] sm:$0xf0] }
  0xea   :  { %v8948_v8 = vpop.permute.xlu1 %448 }
  0xeb   :  { %v457_v62 = vmul.f32 %v8948_v8, %v391_v45  ;;  %v458_v11 = vmul.f32 %v8948_v8, %v397_v51  ;;  %v459_v41 = vmul.f32 %v8948_v8, %v403_v52  ;;  %v373_v45 = vadd.f32 %v372_v18, %v371_v39  ;;  %v6373_v18 = vld [vmem:[#allocation10 + $0x780] sm:$0xf] }
  0xec   :  { %v8974_v51 = vor.u32 %v7533_v4, %v5439_v25  ;;  %v460_v2 = vmul.f32 %v8948_v8, %v409_v21  ;;  %v465_v39 = vpack.c.bf16 %v453_v12, %v453_v12  ;;  %v7527_v25 = vld [vmem:[#allocation10 + $0x4] sm:$0xf]  ;;  %v8984_v12 = vor.u32 %v7722_v57, %v6181_v63 }
  0xed   :  { %v469_v20 = vpack.c.bf16 %v457_v62, %v457_v62  ;;  %v470_v26 = vpack.c.bf16 %v458_v11, %v458_v11  ;;  %v471_v9 = vpack.c.bf16 %v459_v41, %v459_v41  ;;  %v454_v52 = vmul.f32 %v8941_v3, %v373_v45 }
  0xee   :  { %10605 = vst [vmem:[#allocation77_spill] sm:$0xff] %v8974_v51  ;;  %2344 = vmatpush.bf16.msrb.mxu2 %v8974_v51  ;;  %v464_v62 = vpack.c.bf16 %v452_v55, %v452_v55  ;;  %v414_v11 = vrot.slane %v413_v0, 1  ;;  %v472_v13 = vpack.c.bf16 %v460_v2, %v460_v2  ;;  %v8986_v44 = vor.u32 %v7770_v15, %v6373_v18 }
  0xef   :  { %v795_v31 = vunpack.c.l.b16 %v469_v20  ;;  %v796_v41 = vunpack.c.l.b16 %v470_v26  ;;  %v797_v4 = vunpack.c.l.b16 %v471_v9  ;;  %v466_v55 = vpack.c.bf16 %v454_v52, %v454_v52  ;;  %10607 = vst [vmem:[#allocation79_spill] sm:$0xff] %v8984_v12  ;;  %2319 = vmatpush.bf16.msrb.mxu0 %v8984_v12 }
  0xf0   :  { %10608 = vst [vmem:[#allocation80_spill] sm:$0xff] %v8986_v44  ;;  %v790_v17 = vunpack.c.l.b16 %v464_v62  ;;  %v791_v58 = vunpack.c.l.b16 %v465_v39  ;;  %v420_v21 = vrot.slane %v419_v37, 1  ;;  %v384_v45 = vrot.slane %v383_v24, 1  ;;  %2332 = vmatpush.bf16.msrb.mxu1 %v8986_v44 }
  0xf1   :  { %v802_v20 = vsel %vm801_vm1, %v795_v31, %v789_v46  ;;  %v8991_v30 = vor.u32 %v7527_v25, %v5415_v40  ;;  %v415_v2 = vadd.f32 %v414_v11, %v413_v0  ;;  %v798_v26 = vunpack.c.l.b16 %v472_v13  ;;  %v7665_v11 = vld [vmem:[#allocation10 + $0x454] sm:$0xf]  ;;  %v5967_v13 = vld [vmem:[#allocation10 + $0x468] sm:$0xf0] }
  0xf2   :  { %v803_v9 = vsel %vm801_vm1, %v796_v41, %v790_v17  ;;  %v804_v52 = vsel %vm801_vm1, %v797_v4, %v791_v58  ;;  %v8996_v63 = vor.u32 %v7575_v42, %v5607_v7  ;;  %v8998_v62 = vpack.c.b16 %v802_v20, %v802_v20  ;;  %v6159_v25 = vld [vmem:[#allocation10 + $0x5e8] sm:$0xf0]  ;;  %v7761_v40 = vld [vmem:[#allocation10 + $0x754] sm:$0xf]  ;;  %v5943_v20 = vld [vmem:[#allocation10 + $0x438] sm:$0xf0] }
  0xf3   :  { %10609 = vst [vmem:[#allocation81_spill] sm:$0xff] %v8991_v30  ;;  %2345 = vmatpush.bf16.msrb.mxu2 %v8991_v30  ;;  %v379_v39 = vadd.f32 %v378_v22, %v377_v47  ;;  %v792_v31 = vunpack.c.l.b16 %v466_v55  ;;  %v421_v57 = vadd.f32 %v420_v21, %v419_v37  ;;  %v461_v18 = vmul.f32 %v8948_v8, %v415_v2  ;;  %v7713_v37 = vld [vmem:[#allocation10 + $0x5d4] sm:$0xf]  ;;  %v6351_v22 = vld [vmem:[#allocation10 + $0x768] sm:$0xf0] }
  0xf4   :  { %10610 = vst [vmem:[#allocation82_spill] sm:$0xff] %v8996_v63  ;;  %v385_v15 = vadd.f32 %v384_v45, %v383_v24  ;;  %2358 = vmatpush.bf16.msrb.mxu3 %v8996_v63  ;;  %2268 = vmatmul.bf16.vlgmr.msra.gmra.mxu0 %v8998_v62  ;;  %v9003_v0 = vpack.c.b16 %v803_v9, %v803_v9  ;;  %v7809_v55 = vld [vmem:[#allocation10 + $0x8d4] sm:$0xf]  ;;  %v6543_v17 = vld [vmem:[#allocation10 + $0x8e8] sm:$0xf0] }
  0xf5   :  { %v9005_v46 = vpack.c.b16 %v804_v52, %v804_v52  ;;  %v455_v41 = vmul.f32 %v8941_v3, %v379_v39  ;;  %v462_v4 = vmul.f32 %v8948_v8, %v421_v57  ;;  %v805_v47 = vsel %vm801_vm1, %v798_v26, %v792_v31  ;;  %v7659_v21 = vld [vmem:[#allocation10 + $0x424] sm:$0xf]  ;;  %v6135_v45 = vld [vmem:[#allocation10 + $0x5b8] sm:$0xf0]  ;;  %v2743_v30 = vld [vmem:[#allocation8 + $0x48] sm:$0xff] }
  0xf6   :  { %v456_v24 = vmul.f32 %v8941_v3, %v385_v15  ;;  %2281 = vmatmul.bf16.vlgmr.msra.gmra.mxu1 %v9003_v0  ;;  %v473_v58 = vpack.c.bf16 %v461_v18, %v461_v18  ;;  %v7707_v42 = vld [vmem:[#allocation10 + $0x5a4] sm:$0xf]  ;;  %v9013_v7 = vpack.c.b16 %v805_v47, %v805_v47  ;;  %v9015_v8 = vor.u32 %v7665_v11, %v5967_v13  ;;  %v6327_v26 = vld [vmem:[#allocation10 + $0x738] sm:$0xf0]  ;;  %v7653_v47 = vld [vmem:[#allocation10 + $0x3f4] sm:$0xf] }
  0xf7   :  { %2294 = vmatmul.bf16.vlgmr.msra.gmra.mxu2 %v9005_v46  ;;  %v7755_v2 = vld [vmem:[#allocation10 + $0x724] sm:$0xf]  ;;  %v467_v9 = vpack.c.bf16 %v455_v41, %v455_v41  ;;  %v474_v3 = vpack.c.bf16 %v462_v4, %v462_v4  ;;  %v9017_v52 = vor.u32 %v7713_v37, %v6159_v25  ;;  %v9019_v39 = vor.u32 %v7761_v40, %v6351_v22  ;;  %v6519_v57 = vld [vmem:[#allocation10 + $0x8b8] sm:$0xf0]  ;;  %v5919_v37 = vld [vmem:[#allocation10 + $0x408] sm:$0xf0] }
  0xf8   :  { %10611 = vst [vmem:[#allocation83_spill] sm:$0xff] %v9015_v8  ;;  %v7803_v31 = vld [vmem:[#allocation10 + $0x8a4] sm:$0xf]  ;;  %v468_v15 = vpack.c.bf16 %v456_v24, %v456_v24  ;;  %2307 = vmatmul.bf16.vlgmr.msra.gmra.mxu3 %v9013_v7  ;;  %2364 = vmatpush.bf16.msra.mxu0 %v9015_v8  ;;  %v9023_v18 = vor.u32 %v7809_v55, %v6543_v17  ;;  %v799_v11 = vunpack.c.l.b16 %v473_v58  ;;  %v7701_v25 = vld [vmem:[#allocation10 + $0x574] sm:$0xf] }
  0xf9   :  { %10612 = vst [vmem:[#allocation84_spill] sm:$0xff] %v9017_v52  ;;  %2377 = vmatpush.bf16.msra.mxu1 %v9017_v52  ;;  %2390 = vmatpush.bf16.msra.mxu2 %v9019_v39  ;;  %v9027_v13 = vor.u32 %v7659_v21, %v5943_v20  ;;  %v9029_v41 = vor.u32 %v7707_v42, %v6135_v45  ;;  %v6111_v24 = vld [vmem:[#allocation10 + $0x588] sm:$0xf0]  ;;  %v7749_v22 = vld [vmem:[#allocation10 + $0x6f4] sm:$0xf]  ;;  %v793_v17 = vunpack.c.l.b16 %v467_v9  ;;  %v800_v58 = vunpack.c.l.b16 %v474_v3 }
  0xfa   :  { %10613 = vst [vmem:[#allocation85_spill] sm:$0xff] %v9019_v39  ;;  %v9031_v4 = vor.u32 %v7755_v2, %v6327_v26  ;;  %2403 = vmatpush.bf16.msra.mxu3 %v9023_v18  ;;  %v9034_v40 = vor.u32 %v7803_v31, %v6519_v57  ;;  %v6303_v55 = vld [vmem:[#allocation10 + $0x708] sm:$0xf0]  ;;  %v7797_v52 = vld [vmem:[#allocation10 + $0x874] sm:$0xf]  ;;  %v9037_v21 = vor.u32 %v7653_v47, %v5919_v37  ;;  %v794_v20 = vunpack.c.l.b16 %v468_v15 }
  0xfb   :  { %10614 = vst [vmem:[#allocation86_spill] sm:$0xff] %v9023_v18  ;;  %v6495_v39 = vld [vmem:[#allocation10 + $0x888] sm:$0xf0]  ;;  %v806_v42 = vsel %vm801_vm1, %v799_v11, %v793_v17  ;;  %v9042_v45 = vor.u32 %v7701_v25, %v6111_v24  ;;  %v9044_v2 = vor.u32 %v7749_v22, %v6303_v55  ;;  %v7647_v26 = vld [vmem:[#allocation10 + $0x3c4] sm:$0xf] }
  0xfc   :  { %10615 = vst [vmem:[#allocation87_spill] sm:$0xff] %v9027_v13  ;;  %2365 = vmatpush.bf16.msra.mxu0 %v9027_v13  ;;  %v5895_v9 = vld [vmem:[#allocation10 + $0x3d8] sm:$0xf0]  ;;  %v7695_v3 = vld [vmem:[#allocation10 + $0x544] sm:$0xf]  ;;  %v9047_v31 = vor.u32 %v7797_v52, %v6495_v39  ;;  %v807_v11 = vsel %vm801_vm1, %v800_v58, %v794_v20  ;;  %v9053_v24 = vpack.c.b16 %v806_v42, %v806_v42 }
  0xfd   :  { %10616 = vst [vmem:[#allocation88_spill] sm:$0xff] %v9029_v41  ;;  %2378 = vmatpush.bf16.msra.mxu1 %v9029_v41  ;;  %2391 = vmatpush.bf16.msra.mxu2 %v9031_v4  ;;  %v6087_v57 = vld [vmem:[#allocation10 + $0x558] sm:$0xf0]  ;;  %v7743_v47 = vld [vmem:[#allocation10 + $0x6c4] sm:$0xf]  ;;  %v9051_v25 = vor.u32 %v7647_v26, %v5895_v9  ;;  %v9065_v20 = vpack.c.b16 %v807_v11, %v807_v11 }
  0xfe   :  { %10617 = vst [vmem:[#allocation89_spill] sm:$0xff] %v9031_v4  ;;  %2404 = vmatpush.bf16.msra.mxu3 %v9034_v40  ;;  %v6279_v15 = vld [vmem:[#allocation10 + $0x6d8] sm:$0xf0]  ;;  %v7791_v37 = vld [vmem:[#allocation10 + $0x844] sm:$0xf]  ;;  %v9057_v22 = vor.u32 %v7695_v3, %v6087_v57 }
  0xff   :  { %10618 = vst [vmem:[#allocation90_spill] sm:$0xff] %v9034_v40  ;;  %v6471_v17 = vld [vmem:[#allocation10 + $0x858] sm:$0xf0]  ;;  %v9059_v52 = vor.u32 %v7743_v47, %v6279_v15  ;;  %v7641_v39 = vld [vmem:[#allocation10 + $0x394] sm:$0xf] }
 0x100   :  { %10619 = vst [vmem:[#allocation91_spill] sm:$0xff] %v9037_v21  ;;  %2366 = vmatpush.bf16.msra.mxu0 %v9037_v21  ;;  %v5871_v55 = vld [vmem:[#allocation10 + $0x3a8] sm:$0xf0]  ;;  %v7689_v40 = vld [vmem:[#allocation10 + $0x514] sm:$0xf]  ;;  %v9062_v58 = vor.u32 %v7791_v37, %v6471_v17 }
 0x101   :  { %10620 = vst [vmem:[#allocation92_spill] sm:$0xff] %v9042_v45  ;;  %2379 = vmatpush.bf16.msra.mxu1 %v9042_v45  ;;  %2392 = vmatpush.bf16.msra.mxu2 %v9044_v2  ;;  %v6063_v42 = vld [vmem:[#allocation10 + $0x528] sm:$0xf0]  ;;  %v7737_v26 = vld [vmem:[#allocation10 + $0x694] sm:$0xf]  ;;  %v9069_v3 = vor.u32 %v7641_v39, %v5871_v55 }
 0x102   :  { %10621 = vst [vmem:[#allocation93_spill] sm:$0xff] %v9044_v2  ;;  %2405 = vmatpush.bf16.msra.mxu3 %v9047_v31  ;;  %v6255_v9 = vld [vmem:[#allocation10 + $0x6a8] sm:$0xf0]  ;;  %v7785_v45 = vld [vmem:[#allocation10 + $0x814] sm:$0xf]  ;;  %v9073_v57 = vor.u32 %v7689_v40, %v6063_v42 }
 0x103   :  { %10622 = vst [vmem:[#allocation94_spill] sm:$0xff] %v9047_v31  ;;  %v6447_v2 = vld [vmem:[#allocation10 + $0x828] sm:$0xf0]  ;;  %v9075_v47 = vor.u32 %v7737_v26, %v6255_v9  ;;  %v7635_v15 = vld [vmem:[#allocation10 + $0x364] sm:$0xf] }
 0x104   :  { %10623 = vst [vmem:[#allocation95_spill] sm:$0xff] %v9051_v25  ;;  %2320 = vmatmul.bf16.vlgmr.msrb.gmra.mxu0 %v9053_v24  ;;  %v5847_v11 = vld [vmem:[#allocation10 + $0x378] sm:$0xf0]  ;;  %v7683_v37 = vld [vmem:[#allocation10 + $0x4e4] sm:$0xf]  ;;  %v9079_v17 = vor.u32 %v7785_v45, %v6447_v2 }
 0x105   :  { %10624 = vst [vmem:[#allocation96_spill] sm:$0xff] %v9057_v22  ;;  %2367 = vmatpush.bf16.msra.mxu0 %v9051_v25  ;;  %2380 = vmatpush.bf16.msra.mxu1 %v9057_v22  ;;  %v6039_v25 = vld [vmem:[#allocation10 + $0x4f8] sm:$0xf0]  ;;  %v7731_v39 = vld [vmem:[#allocation10 + $0x664] sm:$0xf]  ;;  %v9083_v40 = vor.u32 %v7635_v15, %v5847_v11 }
 0x106   :  { %10625 = vst [vmem:[#allocation97_spill] sm:$0xff] %v9059_v52  ;;  %2333 = vmatmul.bf16.vlgmr.msrb.gmra.mxu1 %v9065_v20  ;;  %2393 = vmatpush.bf16.msra.mxu2 %v9059_v52  ;;  %v6231_v55 = vld [vmem:[#allocation10 + $0x678] sm:$0xf0]  ;;  %v7779_v31 = vld [vmem:[#allocation10 + $0x7e4] sm:$0xf]  ;;  %v9087_v42 = vor.u32 %v7683_v37, %v6039_v25 }
 0x107   :  { %10626 = vst [vmem:[#allocation98_spill] sm:$0xff] %v9062_v58  ;;  %2406 = vmatpush.bf16.msra.mxu3 %v9062_v58  ;;  %2346 = vmatmul.bf16.vlgmr.msrb.gmra.mxu2 %v8998_v62  ;;  %v6423_v22 = vld [vmem:[#allocation10 + $0x7f8] sm:$0xf0]  ;;  %v9089_v26 = vor.u32 %v7731_v39, %v6231_v55  ;;  %v7629_v45 = vld [vmem:[#allocation10 + $0x334] sm:$0xf] }
 0x108   :  { %10627 = vst [vmem:[#allocation99_spill] sm:$0xff] %v9069_v3  ;;  %2359 = vmatmul.bf16.vlgmr.msrb.gmra.mxu3 %v9003_v0  ;;  %v5823_v2 = vld [vmem:[#allocation10 + $0x348] sm:$0xf0]  ;;  %v7677_v9 = vld [vmem:[#allocation10 + $0x4b4] sm:$0xf]  ;;  %v9092_v58 = vor.u32 %v7779_v31, %v6423_v22 }
 0x109   :  { %10628 = vst [vmem:[#allocation100_spill] sm:$0xff] %v9073_v57  ;;  %2368 = vmatpush.bf16.msra.mxu0 %v9069_v3  ;;  %2381 = vmatpush.bf16.msra.mxu1 %v9073_v57  ;;  %v6015_v52 = vld [vmem:[#allocation10 + $0x4c8] sm:$0xf0]  ;;  %v7725_v21 = vld [vmem:[#allocation10 + $0x634] sm:$0xf]  ;;  %v9095_v57 = vor.u32 %v7629_v45, %v5823_v2 }
 0x10a   :  { %10629 = vst [vmem:[#allocation101_spill] sm:$0xff] %v9075_v47  ;;  %2394 = vmatpush.bf16.msra.mxu2 %v9075_v47  ;;  %v6207_v3 = vld [vmem:[#allocation10 + $0x648] sm:$0xf0]  ;;  %v7773_v15 = vld [vmem:[#allocation10 + $0x7b4] sm:$0xf]  ;;  %v9099_v39 = vor.u32 %v7677_v9, %v6015_v52 }
 0x10b   :  { %10630 = vst [vmem:[#allocation102_spill] sm:$0xff] %v9079_v17  ;;  %2407 = vmatpush.bf16.msra.mxu3 %v9079_v17  ;;  %v6399_v11 = vld [vmem:[#allocation10 + $0x7c8] sm:$0xf0]  ;;  %v7623_v25 = vld [vmem:[#allocation10 + $0x304] sm:$0xf]  ;;  %v9101_v55 = vor.u32 %v7725_v21, %v6207_v3 }
 0x10c   :  { %10631 = vst [vmem:[#allocation103_spill] sm:$0xff] %v9083_v40  ;;  %v5799_v37 = vld [vmem:[#allocation10 + $0x318] sm:$0xf0]  ;;  %v7671_v31 = vld [vmem:[#allocation10 + $0x484] sm:$0xf]  ;;  %v9104_v47 = vor.u32 %v7773_v15, %v6399_v11 }
 0x10d   :  { %10632 = vst [vmem:[#allocation104_spill] sm:$0xff] %v9087_v42  ;;  %2369 = vmatpush.bf16.msra.mxu0 %v9083_v40  ;;  %2382 = vmatpush.bf16.msra.mxu1 %v9087_v42  ;;  %v5991_v22 = vld [vmem:[#allocation10 + $0x498] sm:$0xf0]  ;;  %v7719_v17 = vld [vmem:[#allocation10 + $0x604] sm:$0xf] }
 0x10e   :  { %10633 = vst [vmem:[#allocation105_spill] sm:$0xff] %v9089_v26  ;;  %2395 = vmatpush.bf16.msra.mxu2 %v9089_v26  ;;  %v6183_v40 = vld [vmem:[#allocation10 + $0x618] sm:$0xf0]  ;;  %v7767_v45 = vld [vmem:[#allocation10 + $0x784] sm:$0xf]  ;;  %v9107_v26 = vor.u32 %v7623_v25, %v5799_v37  ;;  %v9111_v9 = vor.u32 %v7671_v31, %v5991_v22 }
 0x10f   :  { %10634 = vst [vmem:[#allocation106_spill] sm:$0xff] %v9092_v58  ;;  %2408 = vmatpush.bf16.msra.mxu3 %v9092_v58  ;;  %v6375_v2 = vld [vmem:[#allocation10 + $0x798] sm:$0xf0]  ;;  %v5589_v4 = vld [vmem:[#allocation10 + $0x158] sm:$0xf]  ;;  %v9113_v15 = vor.u32 %v7719_v17, %v6183_v40 }
 0x110   :  { %10635 = vst [vmem:[#allocation107_spill] sm:$0xff] %v9095_v57  ;;  %v7573_v41 = vld [vmem:[#allocation10 + $0x16c] sm:$0xf0]  ;;  %v5781_v13 = vld [vmem:[#allocation10 + $0x2d8] sm:$0xf]  ;;  %v9116_v42 = vor.u32 %v7767_v45, %v6375_v2 }
 0x111   :  { %10636 = vst [vmem:[#allocation108_spill] sm:$0xff] %v9099_v39  ;;  %2370 = vmatpush.bf16.msra.mxu0 %v9095_v57  ;;  %v7621_v52 = vld [vmem:[#allocation10 + $0x2ec] sm:$0xf0]  ;;  %v5973_v21 = vld [vmem:[#allocation10 + $0x458] sm:$0xf]  ;;  %2383 = vmatpush.bf16.msra.mxu1 %v9099_v39  ;;  %v9118_v57 = vor.u32 %v7573_v41, %v5589_v4 }
 0x112   :  { %10637 = vst [vmem:[#allocation109_spill] sm:$0xff] %v9101_v55  ;;  %v7669_v3 = vld [vmem:[#allocation10 + $0x46c] sm:$0xf0]  ;;  %2396 = vmatpush.bf16.msra.mxu2 %v9101_v55  ;;  %v6165_v11 = vld [vmem:[#allocation10 + $0x5d8] sm:$0xf]  ;;  %v9120_v25 = vor.u32 %v7621_v52, %v5781_v13 }
 0x113   :  { %10638 = vst [vmem:[#allocation110_spill] sm:$0xff] %v9104_v47  ;;  %v7717_v58 = vld [vmem:[#allocation10 + $0x5ec] sm:$0xf0]  ;;  %2409 = vmatpush.bf16.msra.mxu3 %v9104_v47  ;;  %v9122_v37 = vor.u32 %v7669_v3, %v5973_v21  ;;  %v5565_v18 = vld [vmem:[#allocation10 + $0x128] sm:$0xf] }
 0x114   :  { %10639 = vst [vmem:[#allocation111_spill] sm:$0xff] %v9107_v26  ;;  %v7567_v39 = vld [vmem:[#allocation10 + $0x13c] sm:$0xf0]  ;;  %v5757_v8 = vld [vmem:[#allocation10 + $0x2a8] sm:$0xf]  ;;  %v9125_v31 = vor.u32 %v7717_v58, %v6165_v11 }
 0x115   :  { %10640 = vst [vmem:[#allocation112_spill] sm:$0xff] %v9111_v9  ;;  %2371 = vmatpush.bf16.msra.mxu0 %v9107_v26  ;;  %v7615_v17 = vld [vmem:[#allocation10 + $0x2bc] sm:$0xf0]  ;;  %v5949_v40 = vld [vmem:[#allocation10 + $0x428] sm:$0xf]  ;;  %2384 = vmatpush.bf16.msra.mxu1 %v9111_v9  ;;  %v9131_v13 = vor.u32 %v7567_v39, %v5565_v18 }
 0x116   :  { %10641 = vst [vmem:[#allocation113_spill] sm:$0xff] %v9113_v15  ;;  %v7663_v22 = vld [vmem:[#allocation10 + $0x43c] sm:$0xf0]  ;;  %2397 = vmatpush.bf16.msra.mxu2 %v9113_v15  ;;  %v6141_v41 = vld [vmem:[#allocation10 + $0x5a8] sm:$0xf]  ;;  %v9135_v58 = vor.u32 %v7615_v17, %v5757_v8 }
 0x117   :  { %10642 = vst [vmem:[#allocation114_spill] sm:$0xff] %v9116_v42  ;;  %v7711_v4 = vld [vmem:[#allocation10 + $0x5bc] sm:$0xf0]  ;;  %2410 = vmatpush.bf16.msra.mxu3 %v9116_v42  ;;  %v9137_v45 = vor.u32 %v7663_v22, %v5949_v40  ;;  %v5541_v2 = vld [vmem:[#allocation10 + $0xf8] sm:$0xf] }
 0x118   :  { %10643 = vst [vmem:[#allocation115_spill] sm:$0xff] %v9118_v57  ;;  %v7561_v52 = vld [vmem:[#allocation10 + $0x10c] sm:$0xf0]  ;;  %v5733_v21 = vld [vmem:[#allocation10 + $0x278] sm:$0xf]  ;;  %2372 = vmatmul.bf16.vlgmr.msra.gmra.mxu0 %v9005_v46  ;;  %v9141_v3 = vor.u32 %v7711_v4, %v6141_v41  ;;  %2385 = vmatmul.bf16.vlgmr.msra.gmra.mxu1 %v9013_v7 }
 0x119   :  { %10644 = vst [vmem:[#allocation116_spill] sm:$0xff] %v9120_v25  ;;  %2416 = vmatpush.bf16.msrb.mxu0 %v9118_v57  ;;  %2429 = vmatpush.bf16.msrb.mxu1 %v9120_v25  ;;  %v7609_v11 = vld [vmem:[#allocation10 + $0x28c] sm:$0xf0]  ;;  %v5925_v18 = vld [vmem:[#allocation10 + $0x3f8] sm:$0xf]  ;;  %v9147_v40 = vor.u32 %v7561_v52, %v5541_v2 }
 0x11a   :  { %10645 = vst [vmem:[#allocation117_spill] sm:$0xff] %v9122_v37  ;;  %2442 = vmatpush.bf16.msrb.mxu2 %v9122_v37  ;;  %v7657_v39 = vld [vmem:[#allocation10 + $0x40c] sm:$0xf0]  ;;  %v6117_v8 = vld [vmem:[#allocation10 + $0x578] sm:$0xf]  ;;  %2411 = vmatmul.bf16.vlgmr.msra.gmra.mxu3 %v9065_v20  ;;  %v9151_v22 = vor.u32 %v7609_v11, %v5733_v21 }
 0x11b   :  { %10646 = vst [vmem:[#allocation118_spill] sm:$0xff] %v9125_v31  ;;  %2455 = vmatpush.bf16.msrb.mxu3 %v9125_v31  ;;  %2398 = vmatmul.bf16.vlgmr.msra.gmra.mxu2 %v9053_v24  ;;  %v7705_v17 = vld [vmem:[#allocation10 + $0x58c] sm:$0xf0]  ;;  %v9153_v41 = vor.u32 %v7657_v39, %v5925_v18  ;;  %v5517_v4 = vld [vmem:[#allocation10 + $0xc8] sm:$0xf] }
 0x11c   :  { %10647 = vst [vmem:[#allocation119_spill] sm:$0xff] %v9131_v13  ;;  %v7555_v31 = vld [vmem:[#allocation10 + $0xdc] sm:$0xf0]  ;;  %v5709_v37 = vld [vmem:[#allocation10 + $0x248] sm:$0xf]  ;;  %v9156_v25 = vor.u32 %v7705_v17, %v6117_v8 }
 0x11d   :  { %10648 = vst [vmem:[#allocation120_spill] sm:$0xff] %v9135_v58  ;;  %2417 = vmatpush.bf16.msrb.mxu0 %v9131_v13  ;;  %2430 = vmatpush.bf16.msrb.mxu1 %v9135_v58  ;;  %v7603_v57 = vld [vmem:[#allocation10 + $0x25c] sm:$0xf0]  ;;  %v5901_v42 = vld [vmem:[#allocation10 + $0x3c8] sm:$0xf]  ;;  %v9159_v58 = vor.u32 %v7555_v31, %v5517_v4 }
 0x11e   :  { %10649 = vst [vmem:[#allocation121_spill] sm:$0xff] %v9137_v45  ;;  %2443 = vmatpush.bf16.msrb.mxu2 %v9137_v45  ;;  %v7651_v13 = vld [vmem:[#allocation10 + $0x3dc] sm:$0xf0]  ;;  %v6093_v2 = vld [vmem:[#allocation10 + $0x548] sm:$0xf]  ;;  %v9163_v21 = vor.u32 %v7603_v57, %v5709_v37 }
 0x11f   :  { %10650 = vst [vmem:[#allocation122_spill] sm:$0xff] %v9141_v3  ;;  %2456 = vmatpush.bf16.msrb.mxu3 %v9141_v3  ;;  %v7699_v52 = vld [vmem:[#allocation10 + $0x55c] sm:$0xf0]  ;;  %v9165_v11 = vor.u32 %v7651_v13, %v5901_v42  ;;  %v5493_v18 = vld [vmem:[#allocation10 + $0x98] sm:$0xf] }
 0x120   :  { %10651 = vst [vmem:[#allocation123_spill] sm:$0xff] %v9147_v40  ;;  %v7549_v39 = vld [vmem:[#allocation10 + $0xac] sm:$0xf0]  ;;  %v5685_v8 = vld [vmem:[#allocation10 + $0x218] sm:$0xf]  ;;  %v9168_v17 = vor.u32 %v7699_v52, %v6093_v2 }
 0x121   :  { %10652 = vst [vmem:[#allocation124_spill] sm:$0xff] %v9151_v22  ;;  %2418 = vmatpush.bf16.msrb.mxu0 %v9147_v40  ;;  %2431 = vmatpush.bf16.msrb.mxu1 %v9151_v22  ;;  %v7597_v3 = vld [vmem:[#allocation10 + $0x22c] sm:$0xf0]  ;;  %v5877_v45 = vld [vmem:[#allocation10 + $0x398] sm:$0xf]  ;;  %v9171_v22 = vor.u32 %v7549_v39, %v5493_v18 }
 0x122   :  { %10653 = vst [vmem:[#allocation125_spill] sm:$0xff] %v9153_v41  ;;  %2444 = vmatpush.bf16.msrb.mxu2 %v9153_v41  ;;  %v7645_v40 = vld [vmem:[#allocation10 + $0x3ac] sm:$0xf0]  ;;  %v6069_v31 = vld [vmem:[#allocation10 + $0x518] sm:$0xf]  ;;  %v9175_v57 = vor.u32 %v7597_v3, %v5685_v8 }
 0x123   :  { %10654 = vst [vmem:[#allocation126_spill] sm:$0xff] %v9156_v25  ;;  %2457 = vmatpush.bf16.msrb.mxu3 %v9156_v25  ;;  %v7693_v4 = vld [vmem:[#allocation10 + $0x52c] sm:$0xf0]  ;;  %v9177_v42 = vor.u32 %v7645_v40, %v5877_v45  ;;  %v5469_v37 = vld [vmem:[#allocation10 + $0x68] sm:$0xf] }
 0x124   :  { %10655 = vst [vmem:[#allocation127_spill] sm:$0xff] %v9159_v58  ;;  %v7543_v13 = vld [vmem:[#allocation10 + $0x7c] sm:$0xf0]  ;;  %v5661_v2 = vld [vmem:[#allocation10 + $0x1e8] sm:$0xf]  ;;  %v9180_v52 = vor.u32 %v7693_v4, %v6069_v31 }
 0x125   :  { %10656 = vst [vmem:[#allocation128_spill] sm:$0xff] %v9163_v21  ;;  %2419 = vmatpush.bf16.msrb.mxu0 %v9159_v58  ;;  %2432 = vmatpush.bf16.msrb.mxu1 %v9163_v21  ;;  %v7591_v25 = vld [vmem:[#allocation10 + $0x1fc] sm:$0xf0]  ;;  %v5853_v41 = vld [vmem:[#allocation10 + $0x368] sm:$0xf]  ;;  %v9183_v21 = vor.u32 %v7543_v13, %v5469_v37 }
 0x126   :  { %10657 = vst [vmem:[#allocation129_spill] sm:$0xff] %v9165_v11  ;;  %2445 = vmatpush.bf16.msrb.mxu2 %v9165_v11  ;;  %v7639_v58 = vld [vmem:[#allocation10 + $0x37c] sm:$0xf0]  ;;  %v6045_v18 = vld [vmem:[#allocation10 + $0x4e8] sm:$0xf]  ;;  %v9187_v45 = vor.u32 %v7591_v25, %v5661_v2 }
 0x127   :  { %10658 = vst [vmem:[#allocation130_spill] sm:$0xff] %v9168_v17  ;;  %2458 = vmatpush.bf16.msrb.mxu3 %v9168_v17  ;;  %v7687_v39 = vld [vmem:[#allocation10 + $0x4fc] sm:$0xf0]  ;;  %v9189_v3 = vor.u32 %v7639_v58, %v5853_v41  ;;  %v5445_v40 = vld [vmem:[#allocation10 + $0x38] sm:$0xf] }
 0x128   :  { %10659 = vst [vmem:[#allocation131_spill] sm:$0xff] %v9171_v22  ;;  %v7537_v8 = vld [vmem:[#allocation10 + $0x4c] sm:$0xf0]  ;;  %v5637_v31 = vld [vmem:[#allocation10 + $0x1b8] sm:$0xf]  ;;  %v9192_v4 = vor.u32 %v7687_v39, %v6045_v18 }
 0x129   :  { %10660 = vst [vmem:[#allocation132_spill] sm:$0xff] %v9175_v57  ;;  %2420 = vmatpush.bf16.msrb.mxu0 %v9171_v22  ;;  %2433 = vmatpush.bf16.msrb.mxu1 %v9175_v57  ;;  %v7585_v17 = vld [vmem:[#allocation10 + $0x1cc] sm:$0xf0]  ;;  %v5829_v11 = vld [vmem:[#allocation10 + $0x338] sm:$0xf]  ;;  %v9195_v57 = vor.u32 %v7537_v8, %v5445_v40 }
 0x12a   :  { %10661 = vst [vmem:[#allocation133_spill] sm:$0xff] %v9177_v42  ;;  %2446 = vmatpush.bf16.msrb.mxu2 %v9177_v42  ;;  %v7633_v22 = vld [vmem:[#allocation10 + $0x34c] sm:$0xf0]  ;;  %v6021_v37 = vld [vmem:[#allocation10 + $0x4b8] sm:$0xf]  ;;  %v9199_v58 = vor.u32 %v7585_v17, %v5637_v31 }
 0x12b   :  { %10662 = vst [vmem:[#allocation134_spill] sm:$0xff] %v9180_v52  ;;  %2459 = vmatpush.bf16.msrb.mxu3 %v9180_v52  ;;  %v7681_v13 = vld [vmem:[#allocation10 + $0x4cc] sm:$0xf0]  ;;  %v5421_v25 = vld [vmem:[#allocation10 + $0x8] sm:$0xf]  ;;  %v9201_v41 = vor.u32 %v7633_v22, %v5829_v11 }
 0x12c   :  { %10663 = vst [vmem:[#allocation135_spill] sm:$0xff] %v9183_v21  ;;  %v7531_v2 = vld [vmem:[#allocation10 + $0x1c] sm:$0xf0]  ;;  %v5613_v18 = vld [vmem:[#allocation10 + $0x188] sm:$0xf]  ;;  %v9204_v42 = vor.u32 %v7681_v13, %v6021_v37 }
 0x12d   :  { %10664 = vst [vmem:[#allocation136_spill] sm:$0xff] %v9187_v45  ;;  %2421 = vmatpush.bf16.msrb.mxu0 %v9183_v21  ;;  %2434 = vmatpush.bf16.msrb.mxu1 %v9187_v45  ;;  %v7579_v39 = vld [vmem:[#allocation10 + $0x19c] sm:$0xf0]  ;;  %v5805_v52 = vld [vmem:[#allocation10 + $0x308] sm:$0xf] }
 0x12e   :  { %10665 = vst [vmem:[#allocation137_spill] sm:$0xff] %v9189_v3  ;;  %2447 = vmatpush.bf16.msrb.mxu2 %v9189_v3  ;;  %v7627_v21 = vld [vmem:[#allocation10 + $0x31c] sm:$0xf0]  ;;  %v5997_v40 = vld [vmem:[#allocation10 + $0x488] sm:$0xf]  ;;  %v9207_v3 = vor.u32 %v7531_v2, %v5421_v25  ;;  %v9211_v31 = vor.u32 %v7579_v39, %v5613_v18 }
 0x12f   :  { %10666 = vst [vmem:[#allocation138_spill] sm:$0xff] %v9192_v4  ;;  %2460 = vmatpush.bf16.msrb.mxu3 %v9192_v4  ;;  %v7675_v8 = vld [vmem:[#allocation10 + $0x49c] sm:$0xf0]  ;;  %v6357_v15 = vld [vmem:[#allocation10 + $0x758] sm:$0xf]  ;;  %v9213_v37 = vor.u32 %v7627_v21, %v5805_v52 }
 0x130   :  { %10667 = vst [vmem:[#allocation139_spill] sm:$0xff] %v9195_v57  ;;  %v7765_v9 = vld [vmem:[#allocation10 + $0x76c] sm:$0xf0]  ;;  %v6549_v26 = vld [vmem:[#allocation10 + $0x8d8] sm:$0xf]  ;;  %v9216_v45 = vor.u32 %v7675_v8, %v5997_v40 }
 0x131   :  { %10668 = vst [vmem:[#allocation140_spill] sm:$0xff] %v9199_v58  ;;  %2422 = vmatpush.bf16.msrb.mxu0 %v9195_v57  ;;  %v7813_v17 = vld [vmem:[#allocation10 + $0x8ec] sm:$0xf0]  ;;  %v7570_v22 = vld [vmem:[#allocation10 + $0x15c] sm:$0xf]  ;;  %2435 = vmatpush.bf16.msrb.mxu1 %v9199_v58  ;;  %v9218_v57 = vor.u32 %v7765_v9, %v6357_v15 }
 0x132   :  { %10669 = vst [vmem:[#allocation141_spill] sm:$0xff] %v9201_v41  ;;  %v5591_v11 = vld [vmem:[#allocation10 + $0x170] sm:$0xf0]  ;;  %2448 = vmatpush.bf16.msrb.mxu2 %v9201_v41  ;;  %v7618_v13 = vld [vmem:[#allocation10 + $0x2dc] sm:$0xf]  ;;  %v9220_v25 = vor.u32 %v7813_v17, %v6549_v26 }
 0x133   :  { %10670 = vst [vmem:[#allocation142_spill] sm:$0xff] %v9204_v42  ;;  %v5783_v4 = vld [vmem:[#allocation10 + $0x2f0] sm:$0xf0]  ;;  %2461 = vmatpush.bf16.msrb.mxu3 %v9204_v42  ;;  %v9222_v2 = vor.u32 %v7570_v22, %v5591_v11  ;;  %v6333_v47 = vld [vmem:[#allocation10 + $0x728] sm:$0xf] }
 0x134   :  { %10671 = vst [vmem:[#allocation143_spill] sm:$0xff] %v9207_v3  ;;  %v7759_v58 = vld [vmem:[#allocation10 + $0x73c] sm:$0xf0]  ;;  %v6525_v55 = vld [vmem:[#allocation10 + $0x8a8] sm:$0xf]  ;;  %v9225_v18 = vor.u32 %v7618_v13, %v5783_v4 }
 0x135   :  { %10672 = vst [vmem:[#allocation144_spill] sm:$0xff] %v9211_v31  ;;  %2423 = vmatpush.bf16.msrb.mxu0 %v9207_v3  ;;  %v7807_v21 = vld [vmem:[#allocation10 + $0x8bc] sm:$0xf0]  ;;  %v7564_v52 = vld [vmem:[#allocation10 + $0x12c] sm:$0xf]  ;;  %2436 = vmatpush.bf16.msrb.mxu1 %v9211_v31  ;;  %v9231_v26 = vor.u32 %v7759_v58, %v6333_v47 }
 0x136   :  { %10673 = vst [vmem:[#allocation145_spill] sm:$0xff] %v9213_v37  ;;  %v5567_v39 = vld [vmem:[#allocation10 + $0x140] sm:$0xf0]  ;;  %2449 = vmatpush.bf16.msrb.mxu2 %v9213_v37  ;;  %v7612_v9 = vld [vmem:[#allocation10 + $0x2ac] sm:$0xf]  ;;  %v9235_v4 = vor.u32 %v7807_v21, %v6525_v55 }
 0x137   :  { %10674 = vst [vmem:[#allocation146_spill] sm:$0xff] %v9216_v45  ;;  %v5759_v15 = vld [vmem:[#allocation10 + $0x2c0] sm:$0xf0]  ;;  %2462 = vmatpush.bf16.msrb.mxu3 %v9216_v45  ;;  %v9237_v40 = vor.u32 %v7564_v52, %v5567_v39  ;;  %v6309_v8 = vld [vmem:[#allocation10 + $0x6f8] sm:$0xf] }
 0x138   :  { %10675 = vst [vmem:[#allocation147_spill] sm:$0xff] %v9218_v57  ;;  %v7753_v17 = vld [vmem:[#allocation10 + $0x70c] sm:$0xf0]  ;;  %v6501_v22 = vld [vmem:[#allocation10 + $0x878] sm:$0xf]  ;;  %2424 = vmatmul.bf16.vlgmr.msrb.gmra.mxu0 %v8998_v62  ;;  %v9241_v11 = vor.u32 %v7612_v9, %v5759_v15  ;;  %2437 = vmatmul.bf16.vlgmr.msrb.gmra.mxu1 %v9003_v0 }
 0x139   :  { %10676 = vst [vmem:[#allocation148_spill] sm:$0xff] %v9220_v25  ;;  %2468 = vmatpush.bf16.msra.mxu0 %v9218_v57  ;;  %2481 = vmatpush.bf16.msra.mxu1 %v9220_v25  ;;  %v7801_v13 = vld [vmem:[#allocation10 + $0x88c] sm:$0xf0]  ;;  %v7558_v47 = vld [vmem:[#allocation10 + $0xfc] sm:$0xf]  ;;  %v9247_v52 = vor.u32 %v7753_v17, %v6309_v8 }
 0x13a   :  { %10677 = vst [vmem:[#allocation149_spill] sm:$0xff] %v9222_v2  ;;  %2494 = vmatpush.bf16.msra.mxu2 %v9222_v2  ;;  %v5543_v58 = vld [vmem:[#allocation10 + $0x110] sm:$0xf0]  ;;  %v7606_v55 = vld [vmem:[#allocation10 + $0x27c] sm:$0xf]  ;;  %2463 = vmatmul.bf16.vlgmr.msrb.gmra.mxu3 %v9013_v7  ;;  %v9251_v39 = vor.u32 %v7801_v13, %v6501_v22 }
 0x13b   :  { %10678 = vst [vmem:[#allocation150_spill] sm:$0xff] %v9225_v18  ;;  %2507 = vmatpush.bf16.msra.mxu3 %v9225_v18  ;;  %2450 = vmatmul.bf16.vlgmr.msrb.gmra.mxu2 %v9005_v46  ;;  %v5735_v21 = vld [vmem:[#allocation10 + $0x290] sm:$0xf0]  ;;  %v9253_v9 = vor.u32 %v7558_v47, %v5543_v58  ;;  %v6285_v15 = vld [vmem:[#allocation10 + $0x6c8] sm:$0xf] }
 0x13c   :  { %10679 = vst [vmem:[#allocation151_spill] sm:$0xff] %v9231_v26  ;;  %v7747_v18 = vld [vmem:[#allocation10 + $0x6dc] sm:$0xf0]  ;;  %v6477_v2 = vld [vmem:[#allocation10 + $0x848] sm:$0xf]  ;;  %v9256_v25 = vor.u32 %v7606_v55, %v5735_v21 }
 0x13d   :  { %10680 = vst [vmem:[#allocation152_spill] sm:$0xff] %v9235_v4  ;;  %2469 = vmatpush.bf16.msra.mxu0 %v9231_v26  ;;  %2482 = vmatpush.bf16.msra.mxu1 %v9235_v4  ;;  %v7795_v57 = vld [vmem:[#allocation10 + $0x85c] sm:$0xf0]  ;;  %v7552_v45 = vld [vmem:[#allocation10 + $0xcc] sm:$0xf]  ;;  %v9259_v4 = vor.u32 %v7747_v18, %v6285_v15 }
 0x13e   :  { %10681 = vst [vmem:[#allocation153_spill] sm:$0xff] %v9237_v40  ;;  %2495 = vmatpush.bf16.msra.mxu2 %v9237_v40  ;;  %v5519_v26 = vld [vmem:[#allocation10 + $0xe0] sm:$0xf0]  ;;  %v7600_v8 = vld [vmem:[#allocation10 + $0x24c] sm:$0xf]  ;;  %v9263_v22 = vor.u32 %v7795_v57, %v6477_v2 }
 0x13f   :  { %10682 = vst [vmem:[#allocation154_spill] sm:$0xff] %v9241_v11  ;;  %2508 = vmatpush.bf16.msra.mxu3 %v9241_v11  ;;  %v5711_v17 = vld [vmem:[#allocation10 + $0x260] sm:$0xf0]  ;;  %v9265_v13 = vor.u32 %v7552_v45, %v5519_v26  ;;  %v6261_v47 = vld [vmem:[#allocation10 + $0x698] sm:$0xf] }
 0x140   :  { %10683 = vst [vmem:[#allocation155_spill] sm:$0xff] %v9247_v52  ;;  %v7741_v58 = vld [vmem:[#allocation10 + $0x6ac] sm:$0xf0]  ;;  %v6453_v55 = vld [vmem:[#allocation10 + $0x818] sm:$0xf]  ;;  %v9268_v21 = vor.u32 %v7600_v8, %v5711_v17 }
 0x141   :  { %10684 = vst [vmem:[#allocation156_spill] sm:$0xff] %v9251_v39  ;;  %2470 = vmatpush.bf16.msra.mxu0 %v9247_v52  ;;  %2483 = vmatpush.bf16.msra.mxu1 %v9251_v39  ;;  %v7789_v11 = vld [vmem:[#allocation10 + $0x82c] sm:$0xf0]  ;;  %v7546_v40 = vld [vmem:[#allocation10 + $0x9c] sm:$0xf]  ;;  %v9271_v39 = vor.u32 %v7741_v58, %v6261_v47 }
 0x142   :  { %10685 = vst [vmem:[#allocation157_spill] sm:$0xff] %v9253_v9  ;;  %2496 = vmatpush.bf16.msra.mxu2 %v9253_v9  ;;  %v5495_v52 = vld [vmem:[#allocation10 + $0xb0] sm:$0xf0]  ;;  %v7594_v18 = vld [vmem:[#allocation10 + $0x21c] sm:$0xf]  ;;  %v9275_v57 = vor.u32 %v7789_v11, %v6453_v55 }
 0x143   :  { %10686 = vst [vmem:[#allocation158_spill] sm:$0xff] %v9256_v25  ;;  %2509 = vmatpush.bf16.msra.mxu3 %v9256_v25  ;;  %v5687_v15 = vld [vmem:[#allocation10 + $0x230] sm:$0xf0]  ;;  %v9277_v45 = vor.u32 %v7546_v40, %v5495_v52  ;;  %v6237_v2 = vld [vmem:[#allocation10 + $0x668] sm:$0xf] }
 0x144   :  { %10687 = vst [vmem:[#allocation159_spill] sm:$0xff] %v9259_v4  ;;  %v7735_v26 = vld [vmem:[#allocation10 + $0x67c] sm:$0xf0]  ;;  %v6429_v8 = vld [vmem:[#allocation10 + $0x7e8] sm:$0xf]  ;;  %v9280_v17 = vor.u32 %v7594_v18, %v5687_v15 }
 0x145   :  { %10688 = vst [vmem:[#allocation160_spill] sm:$0xff] %v9263_v22  ;;  %2471 = vmatpush.bf16.msra.mxu0 %v9259_v4  ;;  %2484 = vmatpush.bf16.msra.mxu1 %v9263_v22  ;;  %v7783_v25 = vld [vmem:[#allocation10 + $0x7fc] sm:$0xf0]  ;;  %v7540_v9 = vld [vmem:[#allocation10 + $0x6c] sm:$0xf]  ;;  %v9283_v22 = vor.u32 %v7735_v26, %v6237_v2 }
 0x146   :  { %10689 = vst [vmem:[#allocation161_spill] sm:$0xff] %v9265_v13  ;;  %2497 = vmatpush.bf16.msra.mxu2 %v9265_v13  ;;  %v5471_v4 = vld [vmem:[#allocation10 + $0x80] sm:$0xf0]  ;;  %v7588_v47 = vld [vmem:[#allocation10 + $0x1ec] sm:$0xf]  ;;  %v9287_v40 = vor.u32 %v7783_v25, %v6429_v8 }
 0x147   :  { %10690 = vst [vmem:[#allocation162_spill] sm:$0xff] %v9268_v21  ;;  %2510 = vmatpush.bf16.msra.mxu3 %v9268_v21  ;;  %v5663_v58 = vld [vmem:[#allocation10 + $0x200] sm:$0xf0]  ;;  %v9289_v11 = vor.u32 %v7540_v9, %v5471_v4  ;;  %v6213_v52 = vld [vmem:[#allocation10 + $0x638] sm:$0xf] }
 0x148   :  { %10691 = vst [vmem:[#allocation163_spill] sm:$0xff] %v9271_v39  ;;  %v7729_v55 = vld [vmem:[#allocation10 + $0x64c] sm:$0xf0]  ;;  %v6405_v18 = vld [vmem:[#allocation10 + $0x7b8] sm:$0xf]  ;;  %v9292_v15 = vor.u32 %v7588_v47, %v5663_v58 }
 0x149   :  { %10692 = vst [vmem:[#allocation164_spill] sm:$0xff] %v9275_v57  ;;  %2472 = vmatpush.bf16.msra.mxu0 %v9271_v39  ;;  %2485 = vmatpush.bf16.msra.mxu1 %v9275_v57  ;;  %v7777_v21 = vld [vmem:[#allocation10 + $0x7cc] sm:$0xf0]  ;;  %v7534_v13 = vld [vmem:[#allocation10 + $0x3c] sm:$0xf]  ;;  %v9295_v57 = vor.u32 %v7729_v55, %v6213_v52 }
 0x14a   :  { %10693 = vst [vmem:[#allocation165_spill] sm:$0xff] %v9277_v45  ;;  %2498 = vmatpush.bf16.msra.mxu2 %v9277_v45  ;;  %v5447_v39 = vld [vmem:[#allocation10 + $0x50] sm:$0xf0]  ;;  %v7582_v2 = vld [vmem:[#allocation10 + $0x1bc] sm:$0xf]  ;;  %v9299_v4 = vor.u32 %v7777_v21, %v6405_v18 }
 0x14b   :  { %10694 = vst [vmem:[#allocation166_spill] sm:$0xff] %v9280_v17  ;;  %2511 = vmatpush.bf16.msra.mxu3 %v9280_v17  ;;  %v5639_v26 = vld [vmem:[#allocation10 + $0x1d0] sm:$0xf0]  ;;  %v6189_v25 = vld [vmem:[#allocation10 + $0x608] sm:$0xf]  ;;  %v9301_v9 = vor.u32 %v7534_v13, %v5447_v39 }
 0x14c   :  { %10695 = vst [vmem:[#allocation167_spill] sm:$0xff] %v9283_v22  ;;  %v7723_v8 = vld [vmem:[#allocation10 + $0x61c] sm:$0xf0]  ;;  %v6381_v47 = vld [vmem:[#allocation10 + $0x788] sm:$0xf]  ;;  %v9304_v45 = vor.u32 %v7582_v2, %v5639_v26 }
 0x14d   :  { %10696 = vst [vmem:[#allocation168_spill] sm:$0xff] %v9287_v40  ;;  %2473 = vmatpush.bf16.msra.mxu0 %v9283_v22  ;;  %2486 = vmatpush.bf16.msra.mxu1 %v9287_v40  ;;  %v7771_v58 = vld [vmem:[#allocation10 + $0x79c] sm:$0xf0]  ;;  %v7528_v17 = vld [vmem:[#allocation10 + $0xc] sm:$0xf] }
 0x14e   :  { %10697 = vst [vmem:[#allocation169_spill] sm:$0xff] %v9289_v11  ;;  %2499 = vmatpush.bf16.msra.mxu2 %v9289_v11  ;;  %v5423_v22 = vld [vmem:[#allocation10 + $0x20] sm:$0xf0]  ;;  %v7576_v52 = vld [vmem:[#allocation10 + $0x18c] sm:$0xf]  ;;  %v9307_v11 = vor.u32 %v7723_v8, %v6189_v25  ;;  %v9311_v18 = vor.u32 %v7771_v58, %v6381_v47 }
 0x14f   :  { %10698 = vst [vmem:[#allocation170_spill] sm:$0xff] %v9292_v15  ;;  %2512 = vmatpush.bf16.msra.mxu3 %v9292_v15  ;;  %v5615_v55 = vld [vmem:[#allocation10 + $0x1a0] sm:$0xf0]  ;;  %v7666_v37 = vld [vmem:[#allocation10 + $0x45c] sm:$0xf]  ;;  %v9313_v2 = vor.u32 %v7528_v17, %v5423_v22 }
 0x150   :  { %10699 = vst [vmem:[#allocation171_spill] sm:$0xff] %v9295_v57  ;;  %v5975_v31 = vld [vmem:[#allocation10 + $0x470] sm:$0xf0]  ;;  %v7714_v3 = vld [vmem:[#allocation10 + $0x5dc] sm:$0xf]  ;;  %v9316_v40 = vor.u32 %v7576_v52, %v5615_v55 }
 0x151   :  { %10700 = vst [vmem:[#allocation172_spill] sm:$0xff] %v9299_v4  ;;  %2474 = vmatpush.bf16.msra.mxu0 %v9295_v57  ;;  %v6167_v21 = vld [vmem:[#allocation10 + $0x5f0] sm:$0xf0]  ;;  %v7762_v39 = vld [vmem:[#allocation10 + $0x75c] sm:$0xf]  ;;  %2487 = vmatpush.bf16.msra.mxu1 %v9299_v4  ;;  %v9318_v57 = vor.u32 %v7666_v37, %v5975_v31 }
 0x152   :  { %10701 = vst [vmem:[#allocation173_spill] sm:$0xff] %v9301_v9  ;;  %v6359_v13 = vld [vmem:[#allocation10 + $0x770] sm:$0xf0]  ;;  %2500 = vmatpush.bf16.msra.mxu2 %v9301_v9  ;;  %v7810_v26 = vld [vmem:[#allocation10 + $0x8dc] sm:$0xf]  ;;  %v9320_v25 = vor.u32 %v7714_v3, %v6167_v21 }
 0x153   :  { %10702 = vst [vmem:[#allocation174_spill] sm:$0xff] %v9304_v45  ;;  %v6551_v15 = vld [vmem:[#allocation10 + $0x8f0] sm:$0xf0]  ;;  %2513 = vmatpush.bf16.msra.mxu3 %v9304_v45  ;;  %v9322_v8 = vor.u32 %v7762_v39, %v6359_v13  ;;  %v7660_v42 = vld [vmem:[#allocation10 + $0x42c] sm:$0xf] }
 0x154   :  { %10703 = vst [vmem:[#allocation175_spill] sm:$0xff] %v9307_v11  ;;  %v5951_v4 = vld [vmem:[#allocation10 + $0x440] sm:$0xf0]  ;;  %v7708_v41 = vld [vmem:[#allocation10 + $0x5ac] sm:$0xf]  ;;  %v9325_v47 = vor.u32 %v7810_v26, %v6551_v15 }
 0x155   :  { %10704 = vst [vmem:[#allocation176_spill] sm:$0xff] %v9311_v18  ;;  %2475 = vmatpush.bf16.msra.mxu0 %v9307_v11  ;;  %v6143_v22 = vld [vmem:[#allocation10 + $0x5c0] sm:$0xf0]  ;;  %v7756_v17 = vld [vmem:[#allocation10 + $0x72c] sm:$0xf]  ;;  %2488 = vmatpush.bf16.msra.mxu1 %v9311_v18  ;;  %v9331_v3 = vor.u32 %v7660_v42, %v5951_v4 }
 0x156   :  { %10705 = vst [vmem:[#allocation177_spill] sm:$0xff] %v9313_v2  ;;  %v6335_v58 = vld [vmem:[#allocation10 + $0x740] sm:$0xf0]  ;;  %2501 = vmatpush.bf16.msra.mxu2 %v9313_v2  ;;  %v7804_v31 = vld [vmem:[#allocation10 + $0x8ac] sm:$0xf]  ;;  %v9335_v15 = vor.u32 %v7708_v41, %v6143_v22 }
 0x157   :  { %10706 = vst [vmem:[#allocation178_spill] sm:$0xff] %v9316_v40  ;;  %v6527_v37 = vld [vmem:[#allocation10 + $0x8c0] sm:$0xf0]  ;;  %2514 = vmatpush.bf16.msra.mxu3 %v9316_v40  ;;  %v9337_v52 = vor.u32 %v7756_v17, %v6335_v58  ;;  %v7654_v55 = vld [vmem:[#allocation10 + $0x3fc] sm:$0xf] }
 0x158   :  { %10707 = vst [vmem:[#allocation179_spill] sm:$0xff] %v9318_v57  ;;  %v5927_v21 = vld [vmem:[#allocation10 + $0x410] sm:$0xf0]  ;;  %v7702_v39 = vld [vmem:[#allocation10 + $0x57c] sm:$0xf]  ;;  %2476 = vmatmul.bf16.vlgmr.msra.gmra.mxu0 %v9053_v24  ;;  %v9341_v13 = vor.u32 %v7804_v31, %v6527_v37  ;;  %2489 = vmatmul.bf16.vlgmr.msra.gmra.mxu1 %v9065_v20 }
 0x159   :  { %10708 = vst [vmem:[#allocation180_spill] sm:$0xff] %v9320_v25  ;;  %2520 = vmatpush.bf16.msrb.mxu0 %v9318_v57  ;;  %2533 = vmatpush.bf16.msrb.mxu1 %v9320_v25  ;;  %v6119_v26 = vld [vmem:[#allocation10 + $0x590] sm:$0xf0]  ;;  %v7750_v42 = vld [vmem:[#allocation10 + $0x6fc] sm:$0xf]  ;;  %v9347_v17 = vor.u32 %v7654_v55, %v5927_v21 }
 0x15a   :  { %10709 = vst [vmem:[#allocation181_spill] sm:$0xff] %v9322_v8  ;;  %2546 = vmatpush.bf16.msrb.mxu2 %v9322_v8  ;;  %v6311_v4 = vld [vmem:[#allocation10 + $0x710] sm:$0xf0]  ;;  %v7798_v41 = vld [vmem:[#allocation10 + $0x87c] sm:$0xf]  ;;  %2515 = vmatmul.bf16.vlgmr.msra.gmra.mxu3 %v9003_v0  ;;  %v9351_v58 = vor.u32 %v7702_v39, %v6119_v26 }
 0x15b   :  { %10710 = vst [vmem:[#allocation182_spill] sm:$0xff] %v9325_v47  ;;  %2559 = vmatpush.bf16.msrb.mxu3 %v9325_v47  ;;  %2502 = vmatmul.bf16.vlgmr.msra.gmra.mxu2 %v8998_v62  ;;  %v6503_v22 = vld [vmem:[#allocation10 + $0x890] sm:$0xf0]  ;;  %v9353_v31 = vor.u32 %v7750_v42, %v6311_v4  ;;  %v7648_v37 = vld [vmem:[#allocation10 + $0x3cc] sm:$0xf] }
 0x15c   :  { %10711 = vst [vmem:[#allocation183_spill] sm:$0xff] %v9331_v3  ;;  %v5903_v47 = vld [vmem:[#allocation10 + $0x3e0] sm:$0xf0]  ;;  %v7696_v8 = vld [vmem:[#allocation10 + $0x54c] sm:$0xf]  ;;  %v9356_v25 = vor.u32 %v7798_v41, %v6503_v22 }
 0x15d   :  { %10712 = vst [vmem:[#allocation184_spill] sm:$0xff] %v9335_v15  ;;  %2521 = vmatpush.bf16.msrb.mxu0 %v9331_v3  ;;  %2534 = vmatpush.bf16.msrb.mxu1 %v9335_v15  ;;  %v6095_v57 = vld [vmem:[#allocation10 + $0x560] sm:$0xf0]  ;;  %v7744_v40 = vld [vmem:[#allocation10 + $0x6cc] sm:$0xf]  ;;  %v9359_v15 = vor.u32 %v7648_v37, %v5903_v47 }
 0x15e   :  { %10713 = vst [vmem:[#allocation185_spill] sm:$0xff] %v9337_v52  ;;  %2547 = vmatpush.bf16.msrb.mxu2 %v9337_v52  ;;  %v6287_v3 = vld [vmem:[#allocation10 + $0x6e0] sm:$0xf0]  ;;  %v7792_v55 = vld [vmem:[#allocation10 + $0x84c] sm:$0xf]  ;;  %v9363_v39 = vor.u32 %v7696_v8, %v6095_v57 }
 0x15f   :  { %10714 = vst [vmem:[#allocation186_spill] sm:$0xff] %v9341_v13  ;;  %2560 = vmatpush.bf16.msrb.mxu3 %v9341_v13  ;;  %v6479_v21 = vld [vmem:[#allocation10 + $0x860] sm:$0xf0]  ;;  %v9365_v26 = vor.u32 %v7744_v40, %v6287_v3  ;;  %v7642_v42 = vld [vmem:[#allocation10 + $0x39c] sm:$0xf] }
 0x160   :  { %10715 = vst [vmem:[#allocation187_spill] sm:$0xff] %v9347_v17  ;;  %v5879_v4 = vld [vmem:[#allocation10 + $0x3b0] sm:$0xf0]  ;;  %v7690_v41 = vld [vmem:[#allocation10 + $0x51c] sm:$0xf]  ;;  %v9368_v22 = vor.u32 %v7792_v55, %v6479_v21 }
 0x161   :  { %10716 = vst [vmem:[#allocation188_spill] sm:$0xff] %v9351_v58  ;;  %2522 = vmatpush.bf16.msrb.mxu0 %v9347_v17  ;;  %2535 = vmatpush.bf16.msrb.mxu1 %v9351_v58  ;;  %v6071_v13 = vld [vmem:[#allocation10 + $0x530] sm:$0xf0]  ;;  %v7738_v52 = vld [vmem:[#allocation10 + $0x69c] sm:$0xf]  ;;  %v9371_v58 = vor.u32 %v7642_v42, %v5879_v4 }
 0x162   :  { %10717 = vst [vmem:[#allocation189_spill] sm:$0xff] %v9353_v31  ;;  %2548 = vmatpush.bf16.msrb.mxu2 %v9353_v31  ;;  %v6263_v17 = vld [vmem:[#allocation10 + $0x6b0] sm:$0xf0]  ;;  %v7786_v47 = vld [vmem:[#allocation10 + $0x81c] sm:$0xf]  ;;  %v9375_v57 = vor.u32 %v7690_v41, %v6071_v13 }
 0x163   :  { %10718 = vst [vmem:[#allocation190_spill] sm:$0xff] %v9356_v25  ;;  %2561 = vmatpush.bf16.msrb.mxu3 %v9356_v25  ;;  %v6455_v37 = vld [vmem:[#allocation10 + $0x830] sm:$0xf0]  ;;  %v9377_v40 = vor.u32 %v7738_v52, %v6263_v17  ;;  %v7636_v8 = vld [vmem:[#allocation10 + $0x36c] sm:$0xf] }
 0x164   :  { %10719 = vst [vmem:[#allocation191_spill] sm:$0xff] %v9359_v15  ;;  %v5855_v3 = vld [vmem:[#allocation10 + $0x380] sm:$0xf0]  ;;  %v7684_v55 = vld [vmem:[#allocation10 + $0x4ec] sm:$0xf]  ;;  %v9380_v21 = vor.u32 %v7786_v47, %v6455_v37 }
 0x165   :  { %10720 = vst [vmem:[#allocation192_spill] sm:$0xff] %v9363_v39  ;;  %2523 = vmatpush.bf16.msrb.mxu0 %v9359_v15  ;;  %2536 = vmatpush.bf16.msrb.mxu1 %v9363_v39  ;;  %v6047_v25 = vld [vmem:[#allocation10 + $0x500] sm:$0xf0]  ;;  %v7732_v31 = vld [vmem:[#allocation10 + $0x66c] sm:$0xf]  ;;  %v9383_v39 = vor.u32 %v7636_v8, %v5855_v3 }
 0x166   :  { %10721 = vst [vmem:[#allocation193_spill] sm:$0xff] %v9365_v26  ;;  %2549 = vmatpush.bf16.msrb.mxu2 %v9365_v26  ;;  %v6239_v15 = vld [vmem:[#allocation10 + $0x680] sm:$0xf0]  ;;  %v7780_v42 = vld [vmem:[#allocation10 + $0x7ec] sm:$0xf]  ;;  %v9387_v52 = vor.u32 %v7684_v55, %v6047_v25 }
 0x167   :  { %10722 = vst [vmem:[#allocation194_spill] sm:$0xff] %v9368_v22  ;;  %2562 = vmatpush.bf16.msrb.mxu3 %v9368_v22  ;;  %v6431_v4 = vld [vmem:[#allocation10 + $0x800] sm:$0xf0]  ;;  %v9389_v13 = vor.u32 %v7732_v31, %v6239_v15  ;;  %v7630_v17 = vld [vmem:[#allocation10 + $0x33c] sm:$0xf] }
 0x168   :  { %10723 = vst [vmem:[#allocation195_spill] sm:$0xff] %v9371_v58  ;;  %v5831_v41 = vld [vmem:[#allocation10 + $0x350] sm:$0xf0]  ;;  %v7678_v47 = vld [vmem:[#allocation10 + $0x4bc] sm:$0xf]  ;;  %v9392_v37 = vor.u32 %v7780_v42, %v6431_v4 }
 0x169   :  { %10724 = vst [vmem:[#allocation196_spill] sm:$0xff] %v9375_v57  ;;  %2524 = vmatpush.bf16.msrb.mxu0 %v9371_v58  ;;  %2537 = vmatpush.bf16.msrb.mxu1 %v9375_v57  ;;  %v6023_v22 = vld [vmem:[#allocation10 + $0x4d0] sm:$0xf0]  ;;  %v7726_v26 = vld [vmem:[#allocation10 + $0x63c] sm:$0xf]  ;;  %v9395_v57 = vor.u32 %v7630_v17, %v5831_v41 }
 0x16a   :  { %10725 = vst [vmem:[#allocation197_spill] sm:$0xff] %v9377_v40  ;;  %2550 = vmatpush.bf16.msrb.mxu2 %v9377_v40  ;;  %v6215_v58 = vld [vmem:[#allocation10 + $0x650] sm:$0xf0]  ;;  %v7774_v8 = vld [vmem:[#allocation10 + $0x7bc] sm:$0xf]  ;;  %v9399_v31 = vor.u32 %v7678_v47, %v6023_v22 }
 0x16b   :  { %10726 = vst [vmem:[#allocation198_spill] sm:$0xff] %v9380_v21  ;;  %2563 = vmatpush.bf16.msrb.mxu3 %v9380_v21  ;;  %v6407_v3 = vld [vmem:[#allocation10 + $0x7d0] sm:$0xf0]  ;;  %v7624_v25 = vld [vmem:[#allocation10 + $0x30c] sm:$0xf]  ;;  %v9401_v42 = vor.u32 %v7726_v26, %v6215_v58 }
 0x16c   :  { %10727 = vst [vmem:[#allocation199_spill] sm:$0xff] %v9383_v39  ;;  %v5807_v55 = vld [vmem:[#allocation10 + $0x320] sm:$0xf0]  ;;  %v7672_v15 = vld [vmem:[#allocation10 + $0x48c] sm:$0xf]  ;;  %v9404_v2 = vor.u32 %v7774_v8, %v6407_v3 }
 0x16d   :  { %10728 = vst [vmem:[#allocation200_spill] sm:$0xff] %v9387_v52  ;;  %2525 = vmatpush.bf16.msrb.mxu0 %v9383_v39  ;;  %2538 = vmatpush.bf16.msrb.mxu1 %v9387_v52  ;;  %v5999_v4 = vld [vmem:[#allocation10 + $0x4a0] sm:$0xf0]  ;;  %v7720_v21 = vld [vmem:[#allocation10 + $0x60c] sm:$0xf]  ;;  %v9409_v22 = vor.u32 %v7624_v25, %v5807_v55 }
 0x16e   :  { %10729 = vst [vmem:[#allocation201_spill] sm:$0xff] %v9389_v13  ;;  %2551 = vmatpush.bf16.msrb.mxu2 %v9389_v13  ;;  %v6191_v40 = vld [vmem:[#allocation10 + $0x620] sm:$0xf0]  ;;  %v7768_v17 = vld [vmem:[#allocation10 + $0x78c] sm:$0xf]  ;;  %v9413_v8 = vor.u32 %v7672_v15, %v5999_v4 }
 0x16f   :  { %10730 = vst [vmem:[#allocation202_spill] sm:$0xff] %v9392_v37  ;;  %2564 = vmatpush.bf16.msrb.mxu3 %v9392_v37  ;;  %v6383_v41 = vld [vmem:[#allocation10 + $0x7a0] sm:$0xf0]  ;;  %v5597_v39 = vld [vmem:[#allocation10 + $0x160] sm:$0xf]  ;;  %v9415_v3 = vor.u32 %v7720_v21, %v6191_v40 }
 0x170   :  { %10731 = vst [vmem:[#allocation203_spill] sm:$0xff] %v9395_v57  ;;  %v7574_v18 = vld [vmem:[#allocation10 + $0x174] sm:$0xf0]  ;;  %v5789_v11 = vld [vmem:[#allocation10 + $0x2e0] sm:$0xf]  ;;  %v9418_v52 = vor.u32 %v7768_v17, %v6383_v41 }
 0x171   :  { %10732 = vst [vmem:[#allocation204_spill] sm:$0xff] %v9399_v31  ;;  %v9406_v45 = vld [vmem:[#allocation11] sm:$0x3f]  ;;  %2526 = vmatpush.bf16.msrb.mxu0 %v9395_v57  ;;  %v7622_v58 = vld [vmem:[#allocation10 + $0x2f4] sm:$0xf0]  ;;  %2539 = vmatpush.bf16.msrb.mxu1 %v9399_v31  ;;  %v9420_v57 = vor.u32 %v7574_v18, %v5597_v39 }
 0x172   :  { %10733 = vst [vmem:[#allocation205_spill] sm:$0xff] %v9401_v42  ;;  %v5981_v26 = vld [vmem:[#allocation10 + $0x460] sm:$0xf]  ;;  %v7670_v47 = vld [vmem:[#allocation10 + $0x474] sm:$0xf0]  ;;  %2552 = vmatpush.bf16.msrb.mxu2 %v9401_v42  ;;  %v10451_v25 = vperm.slane %v9406_v45, 0  ;;  %v9423_v55 = vor.u32 %v7622_v58, %v5789_v11  ;;  %v2269_v11 = vpop.f32.mrf.mxu0 }
 0x173   :  { %10734 = vst [vmem:[#allocation206_spill] sm:$0xff] %v9404_v2  ;;  %v6173_v37 = vld [vmem:[#allocation10 + $0x5e0] sm:$0xf]  ;;  %v7718_v13 = vld [vmem:[#allocation10 + $0x5f4] sm:$0xf0]  ;;  %2565 = vmatpush.bf16.msrb.mxu3 %v9404_v2  ;;  %v9425_v9 = vor.u32 %v7670_v47, %v5981_v26 }
 0x174   :  { %10735 = vst [vmem:[#allocation207_spill] sm:$0xff] %v9406_v45  ;;  %v5573_v31 = vld [vmem:[#allocation10 + $0x130] sm:$0xf]  ;;  %v7568_v42 = vld [vmem:[#allocation10 + $0x144] sm:$0xf0]  ;;  %v9428_v40 = vor.u32 %v7718_v13, %v6173_v37  ;;  %v2270_v13 = vadd.f32 %v2269_v11, %v10451_v25 }
 0x175   :  { %10736 = vst [vmem:[#allocation208_spill] sm:$0xff] %v9409_v22  ;;  %v5765_v15 = vld [vmem:[#allocation10 + $0x2b0] sm:$0xf]  ;;  %2527 = vmatpush.bf16.msrb.mxu0 %v9409_v22  ;;  %v7616_v21 = vld [vmem:[#allocation10 + $0x2c4] sm:$0xf0]  ;;  %2540 = vmatpush.bf16.msrb.mxu1 %v9413_v8  ;;  %v9434_v17 = vor.u32 %v7568_v42, %v5573_v31 }
 0x176   :  { %10737 = vst [vmem:[#allocation209_spill] sm:$0xff] %v9413_v8  ;;  %v5957_v4 = vld [vmem:[#allocation10 + $0x430] sm:$0xf]  ;;  %v7664_v2 = vld [vmem:[#allocation10 + $0x444] sm:$0xf0]  ;;  %2553 = vmatpush.bf16.msrb.mxu2 %v9415_v3  ;;  %v9440_v37 = vor.u32 %v7616_v21, %v5765_v15 }
 0x177   :  { %10738 = vst [vmem:[#allocation210_spill] sm:$0xff] %v9415_v3  ;;  %v6149_v18 = vld [vmem:[#allocation10 + $0x5b0] sm:$0xf]  ;;  %v7712_v39 = vld [vmem:[#allocation10 + $0x5c4] sm:$0xf0]  ;;  %2566 = vmatpush.bf16.msrb.mxu3 %v9418_v52  ;;  %v9442_v41 = vor.u32 %v7664_v2, %v5957_v4  ;;  %v2282_v3 = vpop.f32.mrf.mxu1 }
 0x178   :  { %10739 = vst [vmem:[#allocation211_spill] sm:$0xff] %v9418_v52  ;;  %v5549_v58 = vld [vmem:[#allocation10 + $0x100] sm:$0xf]  ;;  %v7562_v26 = vld [vmem:[#allocation10 + $0x114] sm:$0xf0]  ;;  %2528 = vmatmul.bf16.vlgmr.msrb.gmra.mxu0 %v9005_v46  ;;  %v9446_v31 = vor.u32 %v7712_v39, %v6149_v18  ;;  %2541 = vmatmul.bf16.vlgmr.msrb.gmra.mxu1 %v9013_v7 }
 0x179   :  { %10740 = vst [vmem:[#allocation212_spill] sm:$0xff] %v9420_v57  ;;  %2572 = vmatpush.bf16.msra.mxu0 %v9420_v57  ;;  %2585 = vmatpush.bf16.msra.mxu1 %v9423_v55  ;;  %v5741_v47 = vld [vmem:[#allocation10 + $0x280] sm:$0xf]  ;;  %v7610_v42 = vld [vmem:[#allocation10 + $0x294] sm:$0xf0]  ;;  %v9452_v21 = vor.u32 %v7562_v26, %v5549_v58 }
 0x17a   :  { %10741 = vst [vmem:[#allocation213_spill] sm:$0xff] %v9423_v55  ;;  %2598 = vmatpush.bf16.msra.mxu2 %v9425_v9  ;;  %v5933_v11 = vld [vmem:[#allocation10 + $0x400] sm:$0xf]  ;;  %v7658_v25 = vld [vmem:[#allocation10 + $0x414] sm:$0xf0]  ;;  %v2283_v55 = vadd.f32 %v2282_v3, %v2270_v13  ;;  %2567 = vmatmul.bf16.vlgmr.msrb.gmra.mxu3 %v9065_v20  ;;  %v9456_v4 = vor.u32 %v7610_v42, %v5741_v47  ;;  %v2295_v52 = vpop.f32.mrf.mxu2 }
 0x17b   :  { %10742 = vst [vmem:[#allocation214_spill] sm:$0xff] %v9425_v9  ;;  %2611 = vmatpush.bf16.msra.mxu3 %v9428_v40  ;;  %2554 = vmatmul.bf16.vlgmr.msrb.gmra.mxu2 %v9053_v24  ;;  %v6125_v2 = vld [vmem:[#allocation10 + $0x580] sm:$0xf]  ;;  %v7706_v15 = vld [vmem:[#allocation10 + $0x594] sm:$0xf0]  ;;  %v9458_v18 = vor.u32 %v7658_v25, %v5933_v11 }
 0x17c   :  { %10743 = vst [vmem:[#allocation215_spill] sm:$0xff] %v9428_v40  ;;  %v5525_v3 = vld [vmem:[#allocation10 + $0xd0] sm:$0xf]  ;;  %v7556_v39 = vld [vmem:[#allocation10 + $0xe4] sm:$0xf0]  ;;  %v9461_v40 = vor.u32 %v7706_v15, %v6125_v2  ;;  %v2296_v25 = vadd.f32 %v2295_v52, %v2283_v55  ;;  %v2308_v52 = vpop.f32.mrf.mxu3 }
 0x17d   :  { %10744 = vst [vmem:[#allocation216_spill] sm:$0xff] %v9434_v17  ;;  %2573 = vmatpush.bf16.msra.mxu0 %v9434_v17  ;;  %2586 = vmatpush.bf16.msra.mxu1 %v9440_v37  ;;  %v5717_v13 = vld [vmem:[#allocation10 + $0x250] sm:$0xf]  ;;  %v7604_v9 = vld [vmem:[#allocation10 + $0x264] sm:$0xf0]  ;;  %v9464_v47 = vor.u32 %v7556_v39, %v5525_v3 }
 0x17e   :  { %10745 = vst [vmem:[#allocation217_spill] sm:$0xff] %v9440_v37  ;;  %2599 = vmatpush.bf16.msra.mxu2 %v9442_v41  ;;  %v5909_v57 = vld [vmem:[#allocation10 + $0x3d0] sm:$0xf]  ;;  %v7652_v17 = vld [vmem:[#allocation10 + $0x3e4] sm:$0xf0]  ;;  %v2271_v37 = vpop.f32.mrf.mxu0  ;;  %v9468_v42 = vor.u32 %v7604_v9, %v5717_v13  ;;  %v2309_v9 = vadd.f32 %v2308_v52, %v2296_v25 }
 0x17f   :  { %10746 = vst [vmem:[#allocation218_spill] sm:$0xff] %v9442_v41  ;;  %2612 = vmatpush.bf16.msra.mxu3 %v9446_v31  ;;  %v6101_v58 = vld [vmem:[#allocation10 + $0x550] sm:$0xf]  ;;  %v7700_v26 = vld [vmem:[#allocation10 + $0x564] sm:$0xf0]  ;;  %v9470_v11 = vor.u32 %v7652_v17, %v5909_v57  ;;  %v2284_v41 = vpop.f32.mrf.mxu1 }
 0x180   :  { %10747 = vst [vmem:[#allocation219_spill] sm:$0xff] %v9446_v31  ;;  %v5501_v2 = vld [vmem:[#allocation10 + $0xa0] sm:$0xf]  ;;  %v7550_v15 = vld [vmem:[#allocation10 + $0xb4] sm:$0xf0]  ;;  %v9473_v37 = vor.u32 %v7700_v26, %v6101_v58 }
 0x181   :  { %10748 = vst [vmem:[#allocation220_spill] sm:$0xff] %v9452_v21  ;;  %2574 = vmatpush.bf16.msra.mxu0 %v9452_v21  ;;  %2587 = vmatpush.bf16.msra.mxu1 %v9456_v4  ;;  %v5693_v31 = vld [vmem:[#allocation10 + $0x220] sm:$0xf]  ;;  %v7598_v21 = vld [vmem:[#allocation10 + $0x234] sm:$0xf0]  ;;  %v9476_v13 = vor.u32 %v7550_v15, %v5501_v2 }
 0x182   :  { %10749 = vst [vmem:[#allocation221_spill] sm:$0xff] %v9456_v4  ;;  %2600 = vmatpush.bf16.msra.mxu2 %v9458_v18  ;;  %v5885_v3 = vld [vmem:[#allocation10 + $0x3a0] sm:$0xf]  ;;  %v7646_v39 = vld [vmem:[#allocation10 + $0x3b4] sm:$0xf0]  ;;  %v9480_v57 = vor.u32 %v7598_v21, %v5693_v31  ;;  %v2297_v52 = vpop.f32.mrf.mxu2 }
 0x183   :  { %10750 = vst [vmem:[#allocation222_spill] sm:$0xff] %v9458_v18  ;;  %2613 = vmatpush.bf16.msra.mxu3 %v9461_v40  ;;  %v6077_v55 = vld [vmem:[#allocation10 + $0x520] sm:$0xf]  ;;  %v7694_v4 = vld [vmem:[#allocation10 + $0x534] sm:$0xf0]  ;;  %v9482_v17 = vor.u32 %v7646_v39, %v5885_v3 }
 0x184   :  { %10751 = vst [vmem:[#allocation223_spill] sm:$0xff] %v9461_v40  ;;  %v5477_v41 = vld [vmem:[#allocation10 + $0x70] sm:$0xf]  ;;  %v7544_v58 = vld [vmem:[#allocation10 + $0x84] sm:$0xf0]  ;;  %v9485_v40 = vor.u32 %v7694_v4, %v6077_v55 }
 0x185   :  { %10752 = vst [vmem:[#allocation224_spill] sm:$0xff] %v9464_v47  ;;  %2575 = vmatpush.bf16.msra.mxu0 %v9464_v47  ;;  %2588 = vmatpush.bf16.msra.mxu1 %v9468_v42  ;;  %v5669_v26 = vld [vmem:[#allocation10 + $0x1f0] sm:$0xf]  ;;  %v7592_v18 = vld [vmem:[#allocation10 + $0x204] sm:$0xf0]  ;;  %v9488_v31 = vor.u32 %v7544_v58, %v5477_v41 }
 0x186   :  { %10753 = vst [vmem:[#allocation225_spill] sm:$0xff] %v9468_v42  ;;  %2601 = vmatpush.bf16.msra.mxu2 %v9470_v11  ;;  %v5861_v47 = vld [vmem:[#allocation10 + $0x370] sm:$0xf]  ;;  %v7640_v25 = vld [vmem:[#allocation10 + $0x384] sm:$0xf0]  ;;  %v2321_v42 = vpop.f32.mrf.mxu0  ;;  %v9492_v3 = vor.u32 %v7592_v18, %v5669_v26 }
 0x187   :  { %10754 = vst [vmem:[#allocation226_spill] sm:$0xff] %v9470_v11  ;;  %2614 = vmatpush.bf16.msra.mxu3 %v9473_v37  ;;  %v6053_v2 = vld [vmem:[#allocation10 + $0x4f0] sm:$0xf]  ;;  %v7688_v15 = vld [vmem:[#allocation10 + $0x504] sm:$0xf0]  ;;  %v2322_v21 = vadd.f32 %v2321_v42, %v2309_v9  ;;  %v9494_v4 = vor.u32 %v7640_v25, %v5861_v47  ;;  %v2334_v11 = vpop.f32.mrf.mxu1  ;;  %v2310_v9 = vpop.f32.mrf.mxu3 }
 0x188   :  { %10755 = vst [vmem:[#allocation227_spill] sm:$0xff] %v9473_v37  ;;  %v5453_v39 = vld [vmem:[#allocation10 + $0x40] sm:$0xf]  ;;  %v7538_v55 = vld [vmem:[#allocation10 + $0x54] sm:$0xf0]  ;;  %v9497_v52 = vor.u32 %v7688_v15, %v6053_v2 }
 0x189   :  { %10756 = vst [vmem:[#allocation228_spill] sm:$0xff] %v9476_v13  ;;  %2576 = vmatpush.bf16.msra.mxu0 %v9476_v13  ;;  %2589 = vmatpush.bf16.msra.mxu1 %v9480_v57  ;;  %v5645_v37 = vld [vmem:[#allocation10 + $0x1c0] sm:$0xf]  ;;  %v7586_v13 = vld [vmem:[#allocation10 + $0x1d4] sm:$0xf0]  ;;  %v9499_v42 = vadd.f32 %v2334_v11, %v2322_v21  ;;  %v9502_v18 = vor.u32 %v7538_v55, %v5453_v39 }
 0x18a   :  { %10757 = vst [vmem:[#allocation229_spill] sm:$0xff] %v9480_v57  ;;  %2602 = vmatpush.bf16.msra.mxu2 %v9482_v17  ;;  %v5837_v41 = vld [vmem:[#allocation10 + $0x340] sm:$0xf]  ;;  %v7634_v58 = vld [vmem:[#allocation10 + $0x354] sm:$0xf0]  ;;  %v9506_v2 = vor.u32 %v7586_v13, %v5645_v37 }
 0x18b   :  { %10758 = vst [vmem:[#allocation230_spill] sm:$0xff] %v9482_v17  ;;  %2615 = vmatpush.bf16.msra.mxu3 %v9485_v40  ;;  %v6029_v57 = vld [vmem:[#allocation10 + $0x4c0] sm:$0xf]  ;;  %v7682_v17 = vld [vmem:[#allocation10 + $0x4d4] sm:$0xf0]  ;;  %v9508_v15 = vor.u32 %v7634_v58, %v5837_v41 }
 0x18c   :  { %10759 = vst [vmem:[#allocation231_spill] sm:$0xff] %v9485_v40  ;;  %v5429_v47 = vld [vmem:[#allocation10 + $0x10] sm:$0xf]  ;;  %v7532_v26 = vld [vmem:[#allocation10 + $0x24] sm:$0xf0] }
 0x18d   :  { %10760 = vst [vmem:[#allocation232_spill] sm:$0xff] %v9488_v31  ;;  %2577 = vmatpush.bf16.msra.mxu0 %v9488_v31  ;;  %v5621_v25 = vld [vmem:[#allocation10 + $0x190] sm:$0xf]  ;;  %2590 = vmatpush.bf16.msra.mxu1 %v9492_v3  ;;  %v7580_v11 = vld [vmem:[#allocation10 + $0x1a4] sm:$0xf0]  ;;  %v9515_v37 = vor.u32 %v7532_v26, %v5429_v47  ;;  %v10774_v26 = vperm.slane %v9406_v45, 1 }
 0x18e   :  { %10761 = vst [vmem:[#allocation233_spill] sm:$0xff] %v9492_v3  ;;  %2603 = vmatpush.bf16.msra.mxu2 %v9494_v4  ;;  %v5813_v21 = vld [vmem:[#allocation10 + $0x310] sm:$0xf]  ;;  %v7628_v9 = vld [vmem:[#allocation10 + $0x324] sm:$0xf0]  ;;  %v2323_v22 = vpop.f32.mrf.mxu0 }
 0x18f   :  { %10762 = vst [vmem:[#allocation234_spill] sm:$0xff] %v9494_v4  ;;  %2616 = vmatpush.bf16.msra.mxu3 %v9497_v52  ;;  %v6005_v39 = vld [vmem:[#allocation10 + $0x490] sm:$0xf]  ;;  %v7676_v55 = vld [vmem:[#allocation10 + $0x4a4] sm:$0xf0]  ;;  %v2347_v4 = vpop.f32.mrf.mxu2  ;;  %v2336_v63 = vpop.f32.mrf.mxu1 }
 0x190   :  { %10763 = vst [vmem:[#allocation235_spill] sm:$0xff] %v9497_v52  ;;  %v6365_v40 = vld [vmem:[#allocation10 + $0x760] sm:$0xf]  ;;  %v7766_v8 = vld [vmem:[#allocation10 + $0x774] sm:$0xf0]  ;;  %v9524_v22 = vor.u32 %v7676_v55, %v6005_v39 }
 0x191   :  { %10764 = vst [vmem:[#allocation236_spill] sm:$0xff] %v9499_v42  ;;  %v9511_v42 = vor.u32 %v7682_v17, %v6029_v57  ;;  %v6557_v3 = vld [vmem:[#allocation10 + $0x8e0] sm:$0xf]  ;;  %2578 = vmatpush.bf16.msra.mxu0 %v9502_v18  ;;  %v7814_v13 = vld [vmem:[#allocation10 + $0x8f4] sm:$0xf0]  ;;  %2591 = vmatpush.bf16.msra.mxu1 %v9506_v2  ;;  %v9519_v57 = vor.u32 %v7580_v11, %v5621_v25  ;;  %v2360_v25 = vpop.f32.mrf.mxu3 }
 0x192   :  { %10765 = vst [vmem:[#allocation237_spill] sm:$0xff] %v9502_v18  ;;  %v7571_v41 = vld [vmem:[#allocation10 + $0x164] sm:$0xf]  ;;  %v5599_v58 = vld [vmem:[#allocation10 + $0x178] sm:$0xf0]  ;;  %2604 = vmatpush.bf16.msra.mxu2 %v9508_v15  ;;  %v9521_v17 = vor.u32 %v7628_v9, %v5813_v21  ;;  %v9526_v47 = vor.u32 %v7766_v8, %v6365_v40  ;;  %v2348_v18 = vadd.f32 %v2347_v4, %v10774_v26 }
 0x193   :  { %10766 = vst [vmem:[#allocation238_spill] sm:$0xff] %v9506_v2  ;;  %v7619_v31 = vld [vmem:[#allocation10 + $0x2e4] sm:$0xf]  ;;  %v5791_v52 = vld [vmem:[#allocation10 + $0x2f8] sm:$0xf0]  ;;  %2617 = vmatpush.bf16.msra.mxu3 %v9511_v42  ;;  %v9530_v2 = vor.u32 %v7814_v13, %v6557_v3 }
 0x194   :  { %10767 = vst [vmem:[#allocation239_spill] sm:$0xff] %v9508_v15  ;;  %v9532_v15 = vor.u32 %v7571_v41, %v5599_v58  ;;  %v6341_v11 = vld [vmem:[#allocation10 + $0x730] sm:$0xf]  ;;  %v7760_v21 = vld [vmem:[#allocation10 + $0x744] sm:$0xf0]  ;;  %v9535_v63 = vor.u32 %v7619_v31, %v5791_v52 }
 0x195   :  { %10768 = vst [vmem:[#allocation240_spill] sm:$0xff] %v9511_v42  ;;  %v6533_v9 = vld [vmem:[#allocation10 + $0x8b0] sm:$0xf]  ;;  %2579 = vmatpush.bf16.msra.mxu0 %v9515_v37  ;;  %v2361_v42 = vadd.f32 %v2360_v25, %v2348_v18  ;;  %v7808_v39 = vld [vmem:[#allocation10 + $0x8c4] sm:$0xf0]  ;;  %2592 = vmatpush.bf16.msra.mxu1 %v9519_v57  ;;  %v9541_v4 = vor.u32 %v7760_v21, %v6341_v11 }
 0x196   :  { %10769 = vst [vmem:[#allocation241_spill] sm:$0xff] %v9515_v37  ;;  %v7565_v55 = vld [vmem:[#allocation10 + $0x134] sm:$0xf]  ;;  %v5575_v8 = vld [vmem:[#allocation10 + $0x148] sm:$0xf0]  ;;  %2605 = vmatpush.bf16.msra.mxu2 %v9521_v17  ;;  %v9545_v31 = vor.u32 %v7808_v39, %v6533_v9 }
 0x197   :  { %10770 = vst [vmem:[#allocation242_spill] sm:$0xff] %v9519_v57  ;;  %v7613_v40 = vld [vmem:[#allocation10 + $0x2b4] sm:$0xf]  ;;  %v5767_v3 = vld [vmem:[#allocation10 + $0x2c8] sm:$0xf0]  ;;  %2618 = vmatpush.bf16.msra.mxu3 %v9524_v22  ;;  %v9547_v52 = vor.u32 %v7565_v55, %v5575_v8  ;;  %v2349_v39 = vpop.f32.mrf.mxu2 }
 0x198   :  { %10771 = vst [vmem:[#allocation243_spill] sm:$0xff] %v9521_v17  ;;  %v6317_v18 = vld [vmem:[#allocation10 + $0x700] sm:$0xf]  ;;  %v7754_v13 = vld [vmem:[#allocation10 + $0x714] sm:$0xf0]  ;;  %2580 = vmatmul.bf16.vlgmr.msra.gmra.mxu0 %v8998_v62  ;;  %v9551_v58 = vor.u32 %v7613_v40, %v5767_v3  ;;  %2593 = vmatmul.bf16.vlgmr.msra.gmra.mxu1 %v9003_v0 }
 0x199   :  { %10772 = vst [vmem:[#allocation244_spill] sm:$0xff] %v9524_v22  ;;  %2624 = vmatpush.bf16.msrb.mxu0 %v9526_v47  ;;  %2637 = vmatpush.bf16.msrb.mxu1 %v9530_v2  ;;  %v6509_v41 = vld [vmem:[#allocation10 + $0x880] sm:$0xf]  ;;  %v7802_v26 = vld [vmem:[#allocation10 + $0x894] sm:$0xf0]  ;;  %v9557_v55 = vor.u32 %v7754_v13, %v6317_v18  ;;  %v2362_v3 = vpop.f32.mrf.mxu3  ;;  %v2373_v13 = vpop.f32.mrf.mxu0 }
 0x19a   :  { %10773 = vst [vmem:[#allocation245_spill] sm:$0xff] %v9526_v47  ;;  %2650 = vmatpush.bf16.msrb.mxu2 %v9532_v15  ;;  %v7559_v25 = vld [vmem:[#allocation10 + $0x104] sm:$0xf]  ;;  %v5551_v11 = vld [vmem:[#allocation10 + $0x118] sm:$0xf0]  ;;  %2619 = vmatmul.bf16.vlgmr.msra.gmra.mxu3 %v9013_v7  ;;  %v9561_v8 = vor.u32 %v7802_v26, %v6509_v41  ;;  %v2374_v41 = vadd.f32 %v2373_v13, %v2361_v42  ;;  %v2386_v26 = vpop.f32.mrf.mxu1 }
 0x19b   :  { %10775 = vst [vmem:[#allocation246_spill] sm:$0xff] %v9530_v2  ;;  %2663 = vmatpush.bf16.msrb.mxu3 %v9535_v63  ;;  %2606 = vmatmul.bf16.vlgmr.msra.gmra.mxu2 %v9005_v46  ;;  %v7607_v21 = vld [vmem:[#allocation10 + $0x284] sm:$0xf]  ;;  %v5743_v9 = vld [vmem:[#allocation10 + $0x298] sm:$0xf0]  ;;  %v9563_v40 = vor.u32 %v7559_v25, %v5551_v11 }
 0x19c   :  { %10776 = vst [vmem:[#allocation247_spill] sm:$0xff] %v9532_v15  ;;  %v7748_v15 = vld [vmem:[#allocation10 + $0x6e4] sm:$0xf0]  ;;  %v6485_v2 = vld [vmem:[#allocation10 + $0x850] sm:$0xf]  ;;  %v9566_v39 = vor.u32 %v7607_v21, %v5743_v9 }
 0x19d   :  { %10777 = vst [vmem:[#allocation248_spill] sm:$0xff] %v9535_v63  ;;  %2625 = vmatpush.bf16.msrb.mxu0 %v9541_v4  ;;  %2638 = vmatpush.bf16.msrb.mxu1 %v9545_v31  ;;  %v6293_v63 = vld [vmem:[#allocation10 + $0x6d0] sm:$0xf]  ;;  %v7796_v47 = vld [vmem:[#allocation10 + $0x864] sm:$0xf0] }
 0x19e   :  { %10778 = vst [vmem:[#allocation249_spill] sm:$0xff] %v9541_v4  ;;  %2651 = vmatpush.bf16.msrb.mxu2 %v9547_v52  ;;  %v7553_v4 = vld [vmem:[#allocation10 + $0xd4] sm:$0xf]  ;;  %v5527_v18 = vld [vmem:[#allocation10 + $0xe8] sm:$0xf0]  ;;  %v9569_v25 = vor.u32 %v7748_v15, %v6293_v63  ;;  %v9573_v11 = vor.u32 %v7796_v47, %v6485_v2 }
 0x19f   :  { %10779 = vst [vmem:[#allocation250_spill] sm:$0xff] %v9545_v31  ;;  %2664 = vmatpush.bf16.msrb.mxu3 %v9551_v58  ;;  %v7601_v22 = vld [vmem:[#allocation10 + $0x254] sm:$0xf]  ;;  %v5719_v31 = vld [vmem:[#allocation10 + $0x268] sm:$0xf0]  ;;  %v9575_v21 = vor.u32 %v7553_v4, %v5527_v18 }
 0x1a0   :  { %10780 = vst [vmem:[#allocation251_spill] sm:$0xff] %v9547_v52  ;;  %v6269_v9 = vld [vmem:[#allocation10 + $0x6a0] sm:$0xf]  ;;  %v7742_v3 = vld [vmem:[#allocation10 + $0x6b4] sm:$0xf0]  ;;  %v2387_v52 = vadd.f32 %v2386_v26, %v2374_v41  ;;  %v9578_v17 = vor.u32 %v7601_v22, %v5719_v31  ;;  %v2399_v41 = vpop.f32.mrf.mxu2 }
 0x1a1   :  { %10781 = vst [vmem:[#allocation252_spill] sm:$0xff] %v9551_v58  ;;  %2626 = vmatpush.bf16.msrb.mxu0 %v9557_v55  ;;  %2639 = vmatpush.bf16.msrb.mxu1 %v9561_v8  ;;  %v6461_v58 = vld [vmem:[#allocation10 + $0x820] sm:$0xf]  ;;  %v7790_v42 = vld [vmem:[#allocation10 + $0x834] sm:$0xf0] }
 0x1a2   :  { %10782 = vst [vmem:[#allocation253_spill] sm:$0xff] %v9557_v55  ;;  %2652 = vmatpush.bf16.msrb.mxu2 %v9563_v40  ;;  %v7547_v13 = vld [vmem:[#allocation10 + $0xa4] sm:$0xf]  ;;  %v5503_v15 = vld [vmem:[#allocation10 + $0xb8] sm:$0xf0]  ;;  %v9585_v2 = vor.u32 %v7790_v42, %v6461_v58  ;;  %v2388_v58 = vpop.f32.mrf.mxu1 }
 0x1a3   :  { %10783 = vst [vmem:[#allocation254_spill] sm:$0xff] %v9561_v8  ;;  %2665 = vmatpush.bf16.msrb.mxu3 %v9566_v39  ;;  %v7595_v63 = vld [vmem:[#allocation10 + $0x224] sm:$0xf]  ;;  %v5695_v55 = vld [vmem:[#allocation10 + $0x238] sm:$0xf0]  ;;  %v9587_v47 = vor.u32 %v7547_v13, %v5503_v15 }
 0x1a4   :  { %10784 = vst [vmem:[#allocation255_spill] sm:$0xff] %v9563_v40  ;;  %v9581_v40 = vor.u32 %v7742_v3, %v6269_v9  ;;  %v6245_v4 = vld [vmem:[#allocation10 + $0x670] sm:$0xf]  ;;  %v7736_v22 = vld [vmem:[#allocation10 + $0x684] sm:$0xf0]  ;;  %v9590_v18 = vor.u32 %v7595_v63, %v5695_v55  ;;  %v2400_v3 = vadd.f32 %v2399_v41, %v2387_v52 }
 0x1a5   :  { %10785 = vst [vmem:[#allocation256_spill] sm:$0xff] %v9566_v39  ;;  %2627 = vmatpush.bf16.msrb.mxu0 %v9569_v25  ;;  %2640 = vmatpush.bf16.msrb.mxu1 %v9573_v11  ;;  %v6437_v31 = vld [vmem:[#allocation10 + $0x7f0] sm:$0xf]  ;;  %v7784_v26 = vld [vmem:[#allocation10 + $0x804] sm:$0xf0]  ;;  %v2412_v39 = vpop.f32.mrf.mxu3  ;;  %v9593_v42 = vor.u32 %v7736_v22, %v6245_v4 }
 0x1a6   :  { %10786 = vst [vmem:[#allocation257_spill] sm:$0xff] %v9569_v25  ;;  %2653 = vmatpush.bf16.msrb.mxu2 %v9575_v21  ;;  %v7541_v25 = vld [vmem:[#allocation10 + $0x74] sm:$0xf]  ;;  %v5479_v9 = vld [vmem:[#allocation10 + $0x88] sm:$0xf0]  ;;  %v9597_v55 = vadd.f32 %v2412_v39, %v2400_v3  ;;  %v9599_v13 = vor.u32 %v7784_v26, %v6437_v31 }
 0x1a7   :  { %10787 = vst [vmem:[#allocation258_spill] sm:$0xff] %v9573_v11  ;;  %2666 = vmatpush.bf16.msrb.mxu3 %v9578_v17  ;;  %v2375_v11 = vpop.f32.mrf.mxu0  ;;  %v7589_v8 = vld [vmem:[#allocation10 + $0x1f4] sm:$0xf]  ;;  %v9601_v15 = vor.u32 %v7541_v25, %v5479_v9  ;;  %v6221_v52 = vld [vmem:[#allocation10 + $0x640] sm:$0xf] }
 0x1a8   :  { %10788 = vst [vmem:[#allocation259_spill] sm:$0xff] %v9575_v21  ;;  %v5671_v21 = vld [vmem:[#allocation10 + $0x208] sm:$0xf0]  ;;  %v7730_v63 = vld [vmem:[#allocation10 + $0x654] sm:$0xf0] }
 0x1a9   :  { %10789 = vst [vmem:[#allocation260_spill] sm:$0xff] %v9578_v17  ;;  %2628 = vmatpush.bf16.msrb.mxu0 %v9581_v40  ;;  %2641 = vmatpush.bf16.msrb.mxu1 %v9585_v2  ;;  %v6413_v11 = vld [vmem:[#allocation10 + $0x7c0] sm:$0xf]  ;;  %v9604_v41 = vor.u32 %v7589_v8, %v5671_v21  ;;  %v7778_v58 = vld [vmem:[#allocation10 + $0x7d4] sm:$0xf0]  ;;  %v9607_v39 = vor.u32 %v7730_v63, %v6221_v52 }
 0x1aa   :  { %10790 = vst [vmem:[#allocation261_spill] sm:$0xff] %v9581_v40  ;;  %2654 = vmatpush.bf16.msrb.mxu2 %v9587_v47  ;;  %v7535_v4 = vld [vmem:[#allocation10 + $0x44] sm:$0xf]  ;;  %v5455_v22 = vld [vmem:[#allocation10 + $0x58] sm:$0xf0]  ;;  %v9611_v25 = vor.u32 %v7778_v58, %v6413_v11 }
 0x1ab   :  { %10791 = vst [vmem:[#allocation262_spill] sm:$0xff] %v9585_v2  ;;  %2667 = vmatpush.bf16.msrb.mxu3 %v9590_v18  ;;  %v7583_v40 = vld [vmem:[#allocation10 + $0x1c4] sm:$0xf]  ;;  %v5647_v2 = vld [vmem:[#allocation10 + $0x1d8] sm:$0xf0]  ;;  %v9613_v9 = vor.u32 %v7535_v4, %v5455_v22 }
 0x1ac   :  { %10792 = vst [vmem:[#allocation263_spill] sm:$0xff] %v9587_v47  ;;  %v6197_v31 = vld [vmem:[#allocation10 + $0x610] sm:$0xf]  ;;  %v7724_v26 = vld [vmem:[#allocation10 + $0x624] sm:$0xf0] }
 0x1ad   :  { %10793 = vst [vmem:[#allocation264_spill] sm:$0xff] %v9590_v18  ;;  %2629 = vmatpush.bf16.msrb.mxu0 %v9593_v42  ;;  %2642 = vmatpush.bf16.msrb.mxu1 %v9599_v13  ;;  %v6389_v8 = vld [vmem:[#allocation10 + $0x790] sm:$0xf]  ;;  %v7772_v21 = vld [vmem:[#allocation10 + $0x7a4] sm:$0xf0]  ;;  %v2414_v47 = vpop.f32.mrf.mxu3  ;;  %v9619_v11 = vor.u32 %v7724_v26, %v6197_v31 }
 0x1ae   :  { %10794 = vst [vmem:[#allocation265_spill] sm:$0xff] %v9593_v42  ;;  %2655 = vmatpush.bf16.msrb.mxu2 %v9601_v15  ;;  %v7529_v3 = vld [vmem:[#allocation10 + $0x14] sm:$0xf]  ;;  %v2401_v42 = vpop.f32.mrf.mxu2  ;;  %v5431_v52 = vld [vmem:[#allocation10 + $0x28] sm:$0xf0] }
 0x1af   :  { %10795 = vst [vmem:[#allocation266_spill] sm:$0xff] %v9597_v55  ;;  %2668 = vmatpush.bf16.msrb.mxu3 %v9604_v41  ;;  %v9616_v55 = vor.u32 %v7583_v40, %v5647_v2  ;;  %v7577_v63 = vld [vmem:[#allocation10 + $0x194] sm:$0xf]  ;;  %v5623_v18 = vld [vmem:[#allocation10 + $0x1a8] sm:$0xf0]  ;;  %v9623_v40 = vor.u32 %v7772_v21, %v6389_v8  ;;  %v9625_v2 = vor.u32 %v7529_v3, %v5431_v52 }
 0x1b0   :  { %10796 = vst [vmem:[#allocation267_spill] sm:$0xff] %v9599_v13  ;;  %v7667_v17 = vld [vmem:[#allocation10 + $0x464] sm:$0xf]  ;;  %v5983_v13 = vld [vmem:[#allocation10 + $0x478] sm:$0xf0] }
 0x1b1   :  { %10797 = vst [vmem:[#allocation268_spill] sm:$0xff] %v9601_v15  ;;  %v7715_v57 = vld [vmem:[#allocation10 + $0x5e4] sm:$0xf]  ;;  %2630 = vmatpush.bf16.msrb.mxu0 %v9607_v39  ;;  %v6175_v58 = vld [vmem:[#allocation10 + $0x5f8] sm:$0xf0]  ;;  %2643 = vmatpush.bf16.msrb.mxu1 %v9611_v25 }
 0x1b2   :  { %10798 = vst [vmem:[#allocation269_spill] sm:$0xff] %v9604_v41  ;;  %v7763_v4 = vld [vmem:[#allocation10 + $0x764] sm:$0xf]  ;;  %v6367_v22 = vld [vmem:[#allocation10 + $0x778] sm:$0xf0]  ;;  %2656 = vmatpush.bf16.msrb.mxu2 %v9613_v9  ;;  %v9628_v41 = vor.u32 %v7577_v63, %v5623_v18  ;;  %v9632_v31 = vor.u32 %v7715_v57, %v6175_v58 }
 0x1b3   :  { %10799 = vst [vmem:[#allocation270_spill] sm:$0xff] %v9607_v39  ;;  %v7811_v42 = vld [vmem:[#allocation10 + $0x8e4] sm:$0xf]  ;;  %v6559_v47 = vld [vmem:[#allocation10 + $0x8f8] sm:$0xf0]  ;;  %2669 = vmatpush.bf16.msrb.mxu3 %v9616_v55  ;;  %v9630_v39 = vor.u32 %v7667_v17, %v5983_v13  ;;  %v9634_v26 = vor.u32 %v7763_v4, %v6367_v22 }
 0x1b4   :  { %10800 = vst [vmem:[#allocation271_spill] sm:$0xff] %v9611_v25  ;;  %v7661_v15 = vld [vmem:[#allocation10 + $0x434] sm:$0xf]  ;;  %v5959_v25 = vld [vmem:[#allocation10 + $0x448] sm:$0xf0]  ;;  %v9637_v8 = vor.u32 %v7811_v42, %v6559_v47 }
 0x1b5   :  { %10801 = vst [vmem:[#allocation272_spill] sm:$0xff] %v9613_v9  ;;  %v7709_v37 = vld [vmem:[#allocation10 + $0x5b4] sm:$0xf]  ;;  %2631 = vmatpush.bf16.msrb.mxu0 %v9619_v11  ;;  %v6151_v21 = vld [vmem:[#allocation10 + $0x5c8] sm:$0xf0]  ;;  %2644 = vmatpush.bf16.msrb.mxu1 %v9623_v40  ;;  %v9643_v57 = vor.u32 %v7661_v15, %v5959_v25 }
 0x1b6   :  { %10802 = vst [vmem:[#allocation273_spill] sm:$0xff] %v9616_v55  ;;  %v7757_v3 = vld [vmem:[#allocation10 + $0x734] sm:$0xf]  ;;  %v6343_v52 = vld [vmem:[#allocation10 + $0x748] sm:$0xf0]  ;;  %2657 = vmatpush.bf16.msrb.mxu2 %v9625_v2  ;;  %v9647_v13 = vor.u32 %v7709_v37, %v6151_v21 }
 0x1b7   :  { %10803 = vst [vmem:[#allocation274_spill] sm:$0xff] %v9619_v11  ;;  %v7805_v17 = vld [vmem:[#allocation10 + $0x8b4] sm:$0xf]  ;;  %v6535_v18 = vld [vmem:[#allocation10 + $0x8c8] sm:$0xf0]  ;;  %2670 = vmatpush.bf16.msrb.mxu3 %v9628_v41  ;;  %v9649_v63 = vor.u32 %v7757_v3, %v6343_v52  ;;  %v2741_v11 = vld [vmem:[#allocation8 + $0x38] sm:$0xff] }
 0x1b8   :  { %10804 = vst [vmem:[#allocation275_spill] sm:$0xff] %v9623_v40  ;;  %v7655_v58 = vld [vmem:[#allocation10 + $0x404] sm:$0xf]  ;;  %v5935_v4 = vld [vmem:[#allocation10 + $0x418] sm:$0xf0]  ;;  %2632 = vmatmul.bf16.vlgmr.msrb.gmra.mxu0 %v9053_v24  ;;  %v9653_v42 = vor.u32 %v7805_v17, %v6535_v18  ;;  %2645 = vmatmul.bf16.vlgmr.msrb.gmra.mxu1 %v9065_v20  ;;  %v2735_v9 = vld [vmem:[#allocation8 + $0x8] sm:$0xff] }
 0x1b9   :  { %10805 = vst [vmem:[#allocation276_spill] sm:$0xff] %v9625_v2  ;;  %2676 = vmatpush.bf16.msra.mxu0 %v9630_v39  ;;  %2689 = vmatpush.bf16.msra.mxu1 %v9632_v31  ;;  %v7703_v22 = vld [vmem:[#allocation10 + $0x584] sm:$0xf]  ;;  %v6127_v47 = vld [vmem:[#allocation10 + $0x598] sm:$0xf0]  ;;  %v9659_v3 = vor.u32 %v7655_v58, %v5935_v4 }
 0x1ba   :  { %10806 = vst [vmem:[#allocation277_spill] sm:$0xff] %v9628_v41  ;;  %2702 = vmatpush.bf16.msra.mxu2 %v9634_v26  ;;  %v7751_v15 = vld [vmem:[#allocation10 + $0x704] sm:$0xf]  ;;  %v6319_v25 = vld [vmem:[#allocation10 + $0x718] sm:$0xf0]  ;;  %2671 = vmatmul.bf16.vlgmr.msrb.gmra.mxu3 %v9003_v0  ;;  %v9666_v17 = vor.u32 %v7703_v22, %v6127_v47  ;;  %v10819_v22 = vperm.slane %v9406_v45, 2 }
 0x1bb   :  { %10807 = vst [vmem:[#allocation278_spill] sm:$0xff] %v9630_v39  ;;  %2715 = vmatpush.bf16.msra.mxu3 %v9637_v8  ;;  %2658 = vmatmul.bf16.vlgmr.msrb.gmra.mxu2 %v8998_v62  ;;  %v7799_v37 = vld [vmem:[#allocation10 + $0x884] sm:$0xf]  ;;  %v6511_v21 = vld [vmem:[#allocation10 + $0x898] sm:$0xf0]  ;;  %v9668_v18 = vor.u32 %v7751_v15, %v6319_v25  ;;  %v2438_v15 = vpop.f32.mrf.mxu1 }
 0x1bc   :  { %10808 = vst [vmem:[#allocation279_spill] sm:$0xff] %v9632_v31  ;;  %v7649_v62 = vld [vmem:[#allocation10 + $0x3d4] sm:$0xf]  ;;  %v9671_v0 = vor.u32 %v7799_v37, %v6511_v21  ;;  %v6103_v58 = vld [vmem:[#allocation10 + $0x568] sm:$0xf0] }
 0x1bd   :  { %10809 = vst [vmem:[#allocation280_spill] sm:$0xff] %v9634_v26  ;;  %2677 = vmatpush.bf16.msra.mxu0 %v9643_v57  ;;  %2690 = vmatpush.bf16.msra.mxu1 %v9647_v13  ;;  %v5911_v26 = vld [vmem:[#allocation10 + $0x3e8] sm:$0xf0]  ;;  %v7697_v31 = vld [vmem:[#allocation10 + $0x554] sm:$0xf]  ;;  %v2464_v45 = vpop.f32.mrf.mxu3 }
 0x1be   :  { %10810 = vst [vmem:[#allocation281_spill] sm:$0xff] %v9637_v8  ;;  %v9662_v8 = vpop.permute.xlu2 %2750  ;;  %2703 = vmatpush.bf16.msra.mxu2 %v9649_v63  ;;  %v7745_v4 = vld [vmem:[#allocation10 + $0x6d4] sm:$0xf]  ;;  %v6295_v52 = vld [vmem:[#allocation10 + $0x6e8] sm:$0xf0]  ;;  %v9676_v25 = vor.u32 %v7649_v62, %v5911_v26  ;;  %v9680_v37 = vor.u32 %v7697_v31, %v6103_v58 }
 0x1bf   :  { %10811 = vst [vmem:[#allocation282_spill] sm:$0xff] %v9643_v57  ;;  %2716 = vmatpush.bf16.msra.mxu3 %v9653_v42  ;;  %v2425_v57 = vpop.f32.mrf.mxu0  ;;  %v7793_v39 = vld [vmem:[#allocation10 + $0x854] sm:$0xf]  ;;  %v6487_v41 = vld [vmem:[#allocation10 + $0x868] sm:$0xf0]  ;;  %v9682_v21 = vor.u32 %v7745_v4, %v6295_v52 }
 0x1c0   :  { %10812 = vst [vmem:[#allocation283_spill] sm:$0xff] %v9647_v13  ;;  %v2426_v47 = vadd.f32 %v2425_v57, %v10819_v22  ;;  %v7691_v13 = vld [vmem:[#allocation10 + $0x524] sm:$0xf]  ;;  %v9685_v2 = vor.u32 %v7793_v39, %v6487_v41  ;;  %v6079_v57 = vld [vmem:[#allocation10 + $0x538] sm:$0xf0] }
 0x1c1   :  { %10813 = vst [vmem:[#allocation284_spill] sm:$0xff] %v9649_v63  ;;  %2678 = vmatpush.bf16.msra.mxu0 %v9659_v3  ;;  %2691 = vmatpush.bf16.msra.mxu1 %v9666_v17  ;;  %v5887_v63 = vld [vmem:[#allocation10 + $0x3b8] sm:$0xf0]  ;;  %v7739_v22 = vld [vmem:[#allocation10 + $0x6a4] sm:$0xf]  ;;  %v9694_v41 = vor.u32 %v7691_v13, %v6079_v57 }
 0x1c2   :  { %10814 = vst [vmem:[#allocation285_spill] sm:$0xff] %v9653_v42  ;;  %2704 = vmatpush.bf16.msra.mxu2 %v9668_v18  ;;  %v7643_v42 = vld [vmem:[#allocation10 + $0x3a4] sm:$0xf]  ;;  %v6271_v26 = vld [vmem:[#allocation10 + $0x6b8] sm:$0xf0] }
 0x1c3   :  { %10815 = vst [vmem:[#allocation286_spill] sm:$0xff] %v9659_v3  ;;  %2717 = vmatpush.bf16.msra.mxu3 %v9671_v0  ;;  %v2439_v3 = vadd.f32 %v2438_v15, %v2426_v47  ;;  %v7787_v62 = vld [vmem:[#allocation10 + $0x824] sm:$0xf]  ;;  %v6463_v40 = vld [vmem:[#allocation10 + $0x838] sm:$0xf0]  ;;  %v9688_v31 = vor.u32 %v7643_v42, %v5887_v63  ;;  %v9696_v39 = vor.u32 %v7739_v22, %v6271_v26  ;;  %v2451_v63 = vpop.f32.mrf.mxu2  ;;  %v2736_v22 = vld [vmem:[#allocation8 + $0x10] sm:$0xff] }
 0x1c4   :  { %10816 = vst [vmem:[#allocation287_spill] sm:$0xff] %v9666_v17  ;;  %v2740_v17 = vld [vmem:[#allocation8 + $0x30] sm:$0xff]  ;;  %v5863_v4 = vld [vmem:[#allocation10 + $0x388] sm:$0xf0]  ;;  %v2734_v15 = vld [vmem:[#allocation8] sm:$0xff] }
 0x1c5   :  { %10817 = vst [vmem:[#allocation288_spill] sm:$0xff] %v9668_v18  ;;  %v2742_v18 = vld [vmem:[#allocation8 + $0x40] sm:$0xff]  ;;  %2679 = vmatpush.bf16.msra.mxu0 %v9676_v25  ;;  %2692 = vmatpush.bf16.msra.mxu1 %v9680_v37  ;;  %v7637_v58 = vld [vmem:[#allocation10 + $0x374] sm:$0xf]  ;;  %v6055_v42 = vld [vmem:[#allocation10 + $0x508] sm:$0xf0] }
 0x1c6   :  { %10818 = vst [vmem:[#allocation289_spill] sm:$0xff] %v9671_v0  ;;  %v9690_v52 = vpop.permute.xlu2 %2755  ;;  %2705 = vmatpush.bf16.msra.mxu2 %v9682_v21  ;;  %v7685_v47 = vld [vmem:[#allocation10 + $0x4f4] sm:$0xf]  ;;  %v9699_v0 = vor.u32 %v7787_v62, %v6463_v40  ;;  %v6247_v55 = vld [vmem:[#allocation10 + $0x688] sm:$0xf0]  ;;  %v2737_v26 = vld [vmem:[#allocation8 + $0x18] sm:$0xff]  ;;  %v2440_v62 = vpop.f32.mrf.mxu1 }
 0x1c7   :  { %10820 = vst [vmem:[#allocation290_spill] sm:$0xff] %v9676_v25  ;;  %2718 = vmatpush.bf16.msra.mxu3 %v9685_v2  ;;  %v7733_v25 = vld [vmem:[#allocation10 + $0x674] sm:$0xf]  ;;  %v6439_v57 = vld [vmem:[#allocation10 + $0x808] sm:$0xf0]  ;;  %v2764_v44 = vmul.f32 %v9690_v52, %v2740_v17  ;;  %v2765_v12 = vmul.f32 %v9690_v52, %v2741_v11  ;;  %v2766_v40 = vmul.f32 %v9690_v52, %v2742_v18 }
 0x1c8   :  { %10821 = vst [vmem:[#allocation291_spill] sm:$0xff] %v9680_v37  ;;  %v2452_v37 = vadd.f32 %v2451_v63, %v2439_v3  ;;  %v7781_v13 = vld [vmem:[#allocation10 + $0x7f4] sm:$0xf]  ;;  %v9713_v63 = vor.u32 %v7733_v25, %v6247_v55  ;;  %v7631_v17 = vld [vmem:[#allocation10 + $0x344] sm:$0xf] }
 0x1c9   :  { %10822 = vst [vmem:[#allocation292_spill] sm:$0xff] %v9682_v21  ;;  %v2427_v21 = vpop.f32.mrf.mxu0  ;;  %2680 = vmatpush.bf16.msra.mxu0 %v9688_v31  ;;  %2693 = vmatpush.bf16.msra.mxu1 %v9694_v41  ;;  %v7679_v11 = vld [vmem:[#allocation10 + $0x4c4] sm:$0xf]  ;;  %v9716_v18 = vor.u32 %v7781_v13, %v6439_v57  ;;  %v6031_v62 = vld [vmem:[#allocation10 + $0x4d8] sm:$0xf0]  ;;  %v9723_v13 = vor.u32 %v7631_v17, %v5839_v59 }
 0x1ca   :  { %10823 = vst [vmem:[#allocation293_spill] sm:$0xff] %v9685_v2  ;;  %v9705_v2 = vor.u32 %v7637_v58, %v5863_v4  ;;  %2706 = vmatpush.bf16.msra.mxu2 %v9696_v39  ;;  %v9709_v3 = vadd.f32 %v2464_v45, %v2452_v37  ;;  %v9711_v21 = vor.u32 %v7685_v47, %v6055_v42  ;;  %v7727_v58 = vld [vmem:[#allocation10 + $0x644] sm:$0xf]  ;;  %v6223_v4 = vld [vmem:[#allocation10 + $0x658] sm:$0xf0]  ;;  %v2806_v47 = vrot.slane %v2764_v44, 4 }
 0x1cb   :  { %10824 = vst [vmem:[#allocation294_spill] sm:$0xff] %v9688_v31  ;;  %2719 = vmatpush.bf16.msra.mxu3 %v9699_v0  ;;  %v2760_v45 = vmul.f32 %v9662_v8, %v2736_v22  ;;  %v2767_v37 = vmul.f32 %v9690_v52, %v2743_v30  ;;  %v7775_v55 = vld [vmem:[#allocation10 + $0x7c4] sm:$0xf]  ;;  %v6415_v25 = vld [vmem:[#allocation10 + $0x7d8] sm:$0xf0]  ;;  %v2812_v42 = vrot.slane %v2765_v12, 4  ;;  %v2761_v57 = vmul.f32 %v9662_v8, %v2737_v26 }
 0x1cc   :  { %10825 = vst [vmem:[#allocation295_spill] sm:$0xff] %v9694_v41  ;;  %v2758_v41 = vmul.f32 %v9662_v8, %v2734_v15  ;;  %v2818_v31 = vrot.slane %v2766_v40, 4  ;;  %v9730_v15 = vor.u32 %v7727_v58, %v6223_v4  ;;  %v7625_v30 = vld [vmem:[#allocation10 + $0x314] sm:$0xf]  ;;  %v5815_v22 = vld [vmem:[#allocation10 + $0x328] sm:$0xf0]  ;;  %v9733_v51 = vor.u32 %v7775_v55, %v6415_v25 }
 0x1cd   :  { %10826 = vst [vmem:[#allocation296_spill] sm:$0xff] %v9696_v39  ;;  %v2759_v39 = vmul.f32 %v9662_v8, %v2735_v9  ;;  %2681 = vmatpush.bf16.msra.mxu0 %v9705_v2  ;;  %2694 = vmatpush.bf16.msra.mxu1 %v9711_v21  ;;  %v9728_v9 = vor.u32 %v7679_v11, %v6031_v62  ;;  %v6007_v59 = vld [vmem:[#allocation10 + $0x4a8] sm:$0xf0]  ;;  %v7721_v17 = vld [vmem:[#allocation10 + $0x614] sm:$0xf]  ;;  %v2824_v32 = vrot.slane %v2767_v37, 4 }
 0x1ce   :  { %10827 = vst [vmem:[#allocation297_spill] sm:$0xff] %v9699_v0  ;;  %2707 = vmatpush.bf16.msra.mxu2 %v9713_v63  ;;  %v7673_v0 = vld [vmem:[#allocation10 + $0x494] sm:$0xf]  ;;  %v2770_v26 = vrot.slane %v2758_v41, 4  ;;  %v2782_v62 = vrot.slane %v2760_v45, 4  ;;  %v9736_v58 = vor.u32 %v7625_v30, %v5815_v22  ;;  %v2788_v4 = vrot.slane %v2761_v57, 4 }
 0x1cf   :  { %10828 = vst [vmem:[#allocation298_spill] sm:$0xff] %v9705_v2  ;;  %2720 = vmatpush.bf16.msra.mxu3 %v9716_v18  ;;  %v2453_v2 = vpop.f32.mrf.mxu2  ;;  %v2776_v11 = vrot.slane %v2759_v39, 4  ;;  %v2807_v16 = vadd.f32 %v2806_v47, %v2764_v44  ;;  %v9742_v55 = vor.u32 %v7721_v17, %v6199_v48  ;;  %v2813_v25 = vadd.f32 %v2812_v42, %v2765_v12  ;;  %v9773_v17 = vpop.permute.xlu1 %2867 }
 0x1d0   :  { %10829 = vst [vmem:[#allocation299_spill] sm:$0xff] %v9711_v21  ;;  %v2466_v21 = vpop.f32.mrf.mxu3  ;;  %v9740_v2 = vor.u32 %v7673_v0, %v6007_v59  ;;  %v2771_v50 = vadd.f32 %v2770_v26, %v2758_v41  ;;  %v2783_v22 = vadd.f32 %v2782_v62, %v2760_v45  ;;  %v2789_v44 = vadd.f32 %v2788_v4, %v2761_v57  ;;  %v9770_v57 = vld [vmem:[#allocation11] sm:$0x3f]  ;;  %v9778_v62 = vpop.permute.xlu0 %2862 }
 0x1d1   :  { %10830 = vst [vmem:[#allocation300_spill] sm:$0xff] %v9713_v63  ;;  %v6391_v63 = vld [vmem:[#allocation10 + $0x7a8] sm:$0xf0]  ;;  %2682 = vmatpush.bf16.msra.mxu0 %v9723_v13  ;;  %2695 = vmatpush.bf16.msra.mxu1 %v9728_v9  ;;  %v2819_v21 = vadd.f32 %v2818_v31, %v2766_v40  ;;  %v2777_v30 = vadd.f32 %v2776_v11, %v2759_v39  ;;  %v2808_v47 = vrot.slane %v2807_v16, 2  ;;  %v2814_v48 = vrot.slane %v2813_v25, 2 }
 0x1d2   :  { %10831 = vst [vmem:[#allocation301_spill] sm:$0xff] %v9716_v18  ;;  %2708 = vmatpush.bf16.msra.mxu2 %v9730_v15  ;;  %v9745_v18 = vor.u32 %v7769_v27, %v6391_v63  ;;  %v2772_v27 = vrot.slane %v2771_v50, 2  ;;  %v2784_v31 = vrot.slane %v2783_v22, 2  ;;  %v2790_v41 = vrot.slane %v2789_v44, 2 }
 0x1d3   :  { %10832 = vst [vmem:[#allocation302_spill] sm:$0xff] %v9723_v13  ;;  %2721 = vmatpush.bf16.msra.mxu3 %v9733_v51  ;;  %v2825_v13 = vadd.f32 %v2824_v32, %v2767_v37  ;;  %v2820_v0 = vrot.slane %v2819_v21, 2  ;;  %v2778_v32 = vrot.slane %v2777_v30, 2  ;;  %v2809_v39 = vadd.f32 %v2808_v47, %v2807_v16  ;;  %v2738_v47 = vld [vmem:[#allocation8 + $0x20] sm:$0xff] }
 0x1d4   :  { %v2815_v40 = vadd.f32 %v2814_v48, %v2813_v25  ;;  %v2791_v16 = vadd.f32 %v2790_v41, %v2789_v44 }
 0x1d5   :  { %2683 = vmatpush.bf16.msra.mxu0 %v9736_v58  ;;  %2696 = vmatpush.bf16.msra.mxu1 %v9740_v2  ;;  %v2826_v12 = vrot.slane %v2825_v13, 2  ;;  %v2477_v63 = vpop.f32.mrf.mxu0 }
 0x1d6   :  { %2709 = vmatpush.bf16.msra.mxu2 %v9742_v55  ;;  %v2792_v42 = vrot.slane %v2791_v16, 1 }
 0x1d7   :  { %2722 = vmatpush.bf16.msra.mxu3 %v9745_v18 }
 0x1d8   :  { %2684 = vmatmul.bf16.vlgmr.msra.gmra.mxu0 %v9005_v46  ;;  %2697 = vmatmul.bf16.vlgmr.msra.gmra.mxu1 %v9013_v7  ;;  %v2785_v46 = vadd.f32 %v2784_v31, %v2783_v22  ;;  %v2810_v7 = vrot.slane %v2809_v39, 1  ;;  %v2793_v25 = vadd.f32 %v2792_v42, %v2791_v16 }
 0x1d9   :  { %2936 = vmatpush.bf16.msrb.mxu0 %v8781_v29  ;;  %2949 = vmatpush.bf16.msrb.mxu1 %v8785_v33  ;;  %v2821_v29 = vadd.f32 %v2820_v0, %v2819_v21  ;;  %v2773_v33 = vadd.f32 %v2772_v27, %v2771_v50  ;;  %v2745_v21 = vld [vmem:[#allocation8 + $0x58] sm:$0xff]  ;;  %v2739_v0 = vld [vmem:[#allocation8 + $0x28] sm:$0xff] }
 0x1da   :  { %2962 = vmatpush.bf16.msrb.mxu2 %v8788_v38  ;;  %2723 = vmatmul.bf16.vlgmr.msra.gmra.mxu3 %v9065_v20  ;;  %v2827_v38 = vadd.f32 %v2826_v12, %v2825_v13  ;;  %v2478_v20 = vadd.f32 %v2477_v63, %v9709_v3  ;;  %v2811_v13 = vadd.f32 %v2810_v7, %v2809_v39  ;;  %v10834_v7 = vld [vmem:[#allocation41_spill] sm:$0xff]  ;;  %v10835_v63 = vld [vmem:[#allocation42_spill] sm:$0xff] }
 0x1db   :  { %2975 = vmatpush.bf16.msrb.mxu3 %v8793_v43  ;;  %2710 = vmatmul.bf16.vlgmr.msra.gmra.mxu2 %v9053_v24  ;;  %v2779_v43 = vadd.f32 %v2778_v32, %v2777_v30  ;;  %v2816_v24 = vrot.slane %v2815_v40, 1  ;;  %v2822_v45 = vrot.slane %v2821_v29, 1  ;;  %v2774_v50 = vrot.slane %v2773_v33, 1 }
 0x1dc   :  { %v2828_v37 = vrot.slane %v2827_v38, 1  ;;  %v2876_v30 = vmul.f32 %v9773_v17, %v2811_v13  ;;  %v2769_v39 = vmul.f32 %v9690_v52, %v2745_v21  ;;  %v10837_v13 = vld [vmem:[#allocation44_spill] sm:$0xff] }
 0x1dd   :  { %2937 = vmatpush.bf16.msrb.mxu0 %v8796_v49  ;;  %2950 = vmatpush.bf16.msrb.mxu1 %v8801_v53  ;;  %v2490_v49 = vpop.f32.mrf.mxu1  ;;  %v2780_v53 = vrot.slane %v2779_v43, 1  ;;  %v2817_v3 = vadd.f32 %v2816_v24, %v2815_v40  ;;  %v2823_v59 = vadd.f32 %v2822_v45, %v2821_v29  ;;  %v2516_v22 = vpop.f32.mrf.mxu3  ;;  %v2873_v40 = vmul.f32 %v9778_v62, %v2793_v25  ;;  %v10836_v45 = vld [vmem:[#allocation43_spill] sm:$0xff] }
 0x1de   :  { %2963 = vmatpush.bf16.msrb.mxu2 %v8804_v56  ;;  %v2786_v56 = vrot.slane %v2785_v46, 1  ;;  %v2829_v26 = vadd.f32 %v2828_v37, %v2827_v38  ;;  %v2503_v4 = vpop.f32.mrf.mxu2  ;;  %v2479_v44 = vpop.f32.mrf.mxu0  ;;  %v2888_v29 = vpack.c.bf16 %v2876_v30, %v2876_v30  ;;  %v2836_v24 = vrot.slane %v2769_v39, 4  ;;  %v10840_v25 = vld [vmem:[#allocation47_spill] sm:$0xff] }
 0x1df   :  { %2976 = vmatpush.bf16.msrb.mxu3 %v8807_v60  ;;  %v9768_v60 = vadd.f32 %v2490_v49, %v2478_v20  ;;  %v2878_v48 = vmul.f32 %v9773_v17, %v2823_v59 }
 0x1e0   :  { %v2787_v11 = vadd.f32 %v2786_v56, %v2785_v46  ;;  %v2879_v12 = vmul.f32 %v9773_v17, %v2829_v26  ;;  %v10839_v26 = vld [vmem:[#allocation46_spill] sm:$0xff] }
 0x1e1   :  { %2938 = vmatpush.bf16.msrb.mxu0 %v8809_v61  ;;  %2951 = vmatpush.bf16.msrb.mxu1 %v8812_v1  ;;  %v768_v61 = vperm.slane %v9770_v57, 3  ;;  %v2775_v1 = vadd.f32 %v2774_v50, %v2773_v33  ;;  %v2763_v33 = vmul.f32 %v9662_v8, %v2739_v0  ;;  %v2890_v38 = vpack.c.bf16 %v2878_v48, %v2878_v48  ;;  %v10843_v0 = vld [vmem:[#allocation50_spill] sm:$0xff] }
 0x1e2   :  { %2964 = vmatpush.bf16.msrb.mxu2 %v8815_v5  ;;  %v2744_v5 = vld [vmem:[#allocation8 + $0x50] sm:$0xff]  ;;  %v2872_v41 = vmul.f32 %v9778_v62, %v2787_v11  ;;  %v2891_v16 = vpack.c.bf16 %v2879_v12, %v2879_v12  ;;  %v2885_v50 = vpack.c.bf16 %v2873_v40, %v2873_v40 }
 0x1e3   :  { %2977 = vmatpush.bf16.msrb.mxu3 %v8817_v6  ;;  %v2781_v6 = vadd.f32 %v2780_v53, %v2779_v43  ;;  %v2870_v27 = vmul.f32 %v9778_v62, %v2775_v1  ;;  %v2800_v53 = vrot.slane %v2763_v33, 4  ;;  %v2914_v42 = vunpack.c.l.b16 %v2890_v38 }
 0x1e4   :  { %v2915_v1 = vunpack.c.l.b16 %v2891_v16  ;;  %v2909_v30 = vunpack.c.l.b16 %v2885_v50  ;;  %v10849_v16 = vld [vmem:[#allocation56_spill] sm:$0xff] }
 0x1e5   :  { %2939 = vmatpush.bf16.msrb.mxu0 %v8820_v10  ;;  %2952 = vmatpush.bf16.msrb.mxu1 %v8823_v14  ;;  %v2504_v10 = vadd.f32 %v2503_v4, %v768_v61  ;;  %v2768_v14 = vmul.f32 %v9690_v52, %v2744_v5  ;;  %v2871_v31 = vmul.f32 %v9778_v62, %v2781_v6  ;;  %v2518_v37 = vpop.f32.mrf.mxu3  ;;  %v10838_v5 = vld [vmem:[#allocation45_spill] sm:$0xff]  ;;  %v10853_v50 = vld [vmem:[#allocation60_spill] sm:$0xff] }
 0x1e6   :  { %2965 = vmatpush.bf16.msrb.mxu2 %v8826_v19  ;;  %v2877_v19 = vmul.f32 %v9773_v17, %v2817_v3  ;;  %v2882_v43 = vpack.c.bf16 %v2870_v27, %v2870_v27  ;;  %v2505_v20 = vpop.f32.mrf.mxu2  ;;  %v2837_v4 = vadd.f32 %v2836_v24, %v2769_v39  ;;  %v2921_v48 = vsel %vm801_vm1, %v2915_v1, %v2909_v30  ;;  %v10852_v24 = vld [vmem:[#allocation59_spill] sm:$0xff] }
 0x1e7   :  { %2978 = vmatpush.bf16.msrb.mxu3 %v8829_v23  ;;  %v2492_v23 = vpop.f32.mrf.mxu1  ;;  %v9792_v32 = vadd.f32 %v2516_v22, %v2504_v10  ;;  %v2830_v46 = vrot.slane %v2768_v14, 4  ;;  %v2883_v52 = vpack.c.bf16 %v2871_v31, %v2871_v31  ;;  %v2801_v22 = vadd.f32 %v2800_v53, %v2763_v33  ;;  %v10844_v31 = vld [vmem:[#allocation51_spill] sm:$0xff]  ;;  %v10847_v33 = vld [vmem:[#allocation54_spill] sm:$0xff] }
 0x1e8   :  { %v2906_v3 = vunpack.c.l.b16 %v2882_v43  ;;  %v10842_v23 = vld [vmem:[#allocation49_spill] sm:$0xff]  ;;  %v2838_v27 = vrot.slane %v2837_v4, 2  ;;  %v9826_v38 = vpack.c.b16 %v2921_v48, %v2921_v48 }
 0x1e9   :  { %2940 = vmatpush.bf16.msrb.mxu0 %v8833_v28  ;;  %2953 = vmatpush.bf16.msrb.mxu1 %v8836_v34  ;;  %v2762_v28 = vmul.f32 %v9662_v8, %v2738_v47  ;;  %v2889_v34 = vpack.c.bf16 %v2877_v19, %v2877_v19  ;;  %v2912_v8 = vunpack.c.l.b16 %v2888_v29  ;;  %v2831_v59 = vadd.f32 %v2830_v46, %v2768_v14  ;;  %v10841_v14 = vld [vmem:[#allocation48_spill] sm:$0xff]  ;;  %v10846_v29 = vld [vmem:[#allocation53_spill] sm:$0xff] }
 0x1ea   :  { %2966 = vmatpush.bf16.msrb.mxu2 %v8839_v35  ;;  %v10833_v35 = vld [vmem:[#allocation40_spill] sm:$0xff]  ;;  %v2907_v6 = vunpack.c.l.b16 %v2883_v52  ;;  %v2839_v46 = vadd.f32 %v2838_v27, %v2837_v4  ;;  %v10851_v52 = vld [vmem:[#allocation58_spill] sm:$0xff] }
 0x1eb   :  { %2979 = vmatpush.bf16.msrb.mxu3 %v8842_v36  ;;  %v2884_v36 = vpack.c.bf16 %v2872_v41, %v2872_v41  ;;  %v2794_v49 = vrot.slane %v2762_v28, 4  ;;  %v2913_v56 = vunpack.c.l.b16 %v2889_v34  ;;  %v2918_v10 = vsel %vm801_vm1, %v2912_v8, %v2906_v3  ;;  %v10845_v41 = vld [vmem:[#allocation52_spill] sm:$0xff]  ;;  %v10856_v3 = vld [vmem:[#allocation63_spill] sm:$0xff]  ;;  %v10859_v4 = vld [vmem:[#allocation66_spill] sm:$0xff] }
 0x1ec   :  { %v2832_v19 = vrot.slane %v2831_v59, 2  ;;  %v9816_v12 = vpack.c.b16 %v2918_v10, %v2918_v10  ;;  %v2802_v34 = vrot.slane %v2801_v22, 2 }
 0x1ed   :  { %2941 = vmatpush.bf16.msrb.mxu0 %v10833_v35  ;;  %2954 = vmatpush.bf16.msrb.mxu1 %v10834_v7  ;;  %v2908_v11 = vunpack.c.l.b16 %v2884_v36  ;;  %v2795_v21 = vadd.f32 %v2794_v49, %v2762_v28  ;;  %v2919_v44 = vsel %vm801_vm1, %v2913_v56, %v2907_v6  ;;  %v10848_v35 = vld [vmem:[#allocation55_spill] sm:$0xff]  ;;  %v2840_v49 = vrot.slane %v2839_v46, 1  ;;  %v10854_v56 = vld [vmem:[#allocation61_spill] sm:$0xff] }
 0x1ee   :  { %2967 = vmatpush.bf16.msrb.mxu2 %v10835_v63  ;;  %v9820_v28 = vpack.c.b16 %v2919_v44, %v2919_v44  ;;  %v2833_v43 = vadd.f32 %v2832_v19, %v2831_v59  ;;  %v10850_v63 = vld [vmem:[#allocation57_spill] sm:$0xff]  ;;  %v2803_v36 = vadd.f32 %v2802_v34, %v2801_v22 }
 0x1ef   :  { %2980 = vmatpush.bf16.msrb.mxu3 %v10836_v45  ;;  %v2920_v47 = vsel %vm801_vm1, %v2914_v42, %v2908_v11  ;;  %v2796_v39 = vrot.slane %v2795_v21, 2  ;;  %v10855_v42 = vld [vmem:[#allocation62_spill] sm:$0xff]  ;;  %v10858_v11 = vld [vmem:[#allocation65_spill] sm:$0xff] }
 0x1f0   :  { %v9822_v40 = vpack.c.b16 %v2920_v47, %v2920_v47  ;;  %v2834_v45 = vrot.slane %v2833_v43, 1  ;;  %v10866_v34 = vld [vmem:[#allocation73_spill] sm:$0xff] }
 0x1f1   :  { %2942 = vmatpush.bf16.msrb.mxu0 %v10837_v13  ;;  %2955 = vmatpush.bf16.msrb.mxu1 %v10838_v5  ;;  %v2797_v7 = vadd.f32 %v2796_v39, %v2795_v21  ;;  %v2804_v13 = vrot.slane %v2803_v36, 1  ;;  %v2841_v5 = vadd.f32 %v2840_v49, %v2839_v46 }
 0x1f2   :  { %2968 = vmatpush.bf16.msrb.mxu2 %v10839_v26  ;;  %v2835_v1 = vadd.f32 %v2834_v45, %v2833_v43  ;;  %v10857_v26 = vld [vmem:[#allocation64_spill] sm:$0xff]  ;;  %v10867_v43 = vld [vmem:[#allocation74_spill] sm:$0xff] }
 0x1f3   :  { %2981 = vmatpush.bf16.msrb.mxu3 %v10840_v25  ;;  %v2798_v53 = vrot.slane %v2797_v7, 1  ;;  %v10860_v25 = vld [vmem:[#allocation67_spill] sm:$0xff]  ;;  %v2881_v47 = vmul.f32 %v9773_v17, %v2841_v5  ;;  %v10871_v45 = vld [vmem:[#allocation78_spill] sm:$0xff] }
 0x1f4   :  { %v2880_v30 = vmul.f32 %v9773_v17, %v2835_v1  ;;  %v10879_v1 = vld [vmem:[#allocation86_spill] sm:$0xff]  ;;  %v10880_v5 = vld [vmem:[#allocation87_spill] sm:$0xff] }
 0x1f5   :  { %2943 = vmatpush.bf16.msrb.mxu0 %v10841_v14  ;;  %2956 = vmatpush.bf16.msrb.mxu1 %v10842_v23  ;;  %v2529_v20 = vpop.f32.mrf.mxu0  ;;  %v2542_v37 = vpop.f32.mrf.mxu1  ;;  %v2799_v6 = vadd.f32 %v2798_v53, %v2797_v7  ;;  %v10861_v14 = vld [vmem:[#allocation68_spill] sm:$0xff]  ;;  %v10862_v23 = vld [vmem:[#allocation69_spill] sm:$0xff] }
 0x1f6   :  { %2969 = vmatpush.bf16.msrb.mxu2 %v10843_v0  ;;  %v2530_v8 = vadd.f32 %v2529_v20, %v9792_v32  ;;  %v2805_v32 = vadd.f32 %v2804_v13, %v2803_v36  ;;  %v10863_v0 = vld [vmem:[#allocation70_spill] sm:$0xff]  ;;  %v2892_v39 = vpack.c.bf16 %v2880_v30, %v2880_v30  ;;  %v10869_v36 = vld [vmem:[#allocation76_spill] sm:$0xff] }
 0x1f7   :  { %2982 = vmatpush.bf16.msrb.mxu3 %v10844_v31  ;;  %v2874_v48 = vmul.f32 %v9778_v62, %v2799_v6  ;;  %v10881_v6 = vld [vmem:[#allocation88_spill] sm:$0xff] }
 0x1f8   :  { %2944 = vmatmul.bf16.vlgmr.msrb.gmra.mxu0 %v9816_v12  ;;  %2957 = vmatmul.bf16.vlgmr.msrb.gmra.mxu1 %v9820_v28  ;;  %v2543_v59 = vadd.f32 %v2542_v37, %v2530_v8  ;;  %v2875_v31 = vmul.f32 %v9778_v62, %v2805_v32  ;;  %v10873_v8 = vld [vmem:[#allocation80_spill] sm:$0xff]  ;;  %v10874_v37 = vld [vmem:[#allocation81_spill] sm:$0xff] }
 0x1f9   :  { %2988 = vmatpush.bf16.msra.mxu0 %v10845_v41  ;;  %3001 = vmatpush.bf16.msra.mxu1 %v10846_v29  ;;  %v10864_v41 = vld [vmem:[#allocation71_spill] sm:$0xff]  ;;  %v2893_v29 = vpack.c.bf16 %v2881_v47, %v2881_v47  ;;  %v2886_v17 = vpack.c.bf16 %v2874_v48, %v2874_v48  ;;  %v10890_v48 = vld [vmem:[#allocation97_spill] sm:$0xff] }
 0x1fa   :  { %3014 = vmatpush.bf16.msra.mxu2 %v10847_v33  ;;  %2983 = vmatmul.bf16.vlgmr.msrb.gmra.mxu3 %v9826_v38  ;;  %v10865_v33 = vld [vmem:[#allocation72_spill] sm:$0xff] }
 0x1fb   :  { %3027 = vmatpush.bf16.msra.mxu3 %v10848_v35  ;;  %2970 = vmatmul.bf16.vlgmr.msrb.gmra.mxu2 %v9822_v40  ;;  %v2887_v35 = vpack.c.bf16 %v2875_v31, %v2875_v31  ;;  %v2910_v62 = vunpack.c.l.b16 %v2886_v17 }
 0x1fd   :  { %2989 = vmatpush.bf16.msra.mxu0 %v10849_v16  ;;  %3002 = vmatpush.bf16.msra.mxu1 %v10850_v63  ;;  %v2568_v22 = vpop.f32.mrf.mxu3  ;;  %v2531_v44 = vpop.f32.mrf.mxu0  ;;  %v2916_v16 = vunpack.c.l.b16 %v2892_v39  ;;  %v2917_v63 = vunpack.c.l.b16 %v2893_v29  ;;  %v10892_v29 = vld [vmem:[#allocation99_spill] sm:$0xff] }
 0x1fe   :  { %3015 = vmatpush.bf16.msra.mxu2 %v10851_v52  ;;  %v2555_v21 = vpop.f32.mrf.mxu2  ;;  %v2544_v19 = vpop.f32.mrf.mxu1  ;;  %v10868_v52 = vld [vmem:[#allocation75_spill] sm:$0xff]  ;;  %v10887_v44 = vld [vmem:[#allocation94_spill] sm:$0xff] }
 0x1ff   :  { %3028 = vmatpush.bf16.msra.mxu3 %v10852_v24  ;;  %v2556_v10 = vadd.f32 %v2555_v21, %v2543_v59  ;;  %v10870_v24 = vld [vmem:[#allocation77_spill] sm:$0xff]  ;;  %v2922_v20 = vsel %vm801_vm1, %v2916_v16, %v2910_v62  ;;  %v10889_v19 = vld [vmem:[#allocation96_spill] sm:$0xff] }
 0x200   :  { %v9869_v53 = vpack.c.b16 %v2922_v20, %v2922_v20  ;;  %v10878_v59 = vld [vmem:[#allocation85_spill] sm:$0xff]  ;;  %v10897_v16 = vld [vmem:[#allocation104_spill] sm:$0xff]  ;;  %v10904_v20 = vld [vmem:[#allocation111_spill] sm:$0xff] }
 0x201   :  { %2990 = vmatpush.bf16.msra.mxu0 %v10853_v50  ;;  %3003 = vmatpush.bf16.msra.mxu1 %v10854_v56  ;;  %v9852_v27 = vadd.f32 %v2568_v22, %v2556_v10  ;;  %v10872_v50 = vld [vmem:[#allocation79_spill] sm:$0xff]  ;;  %v10875_v56 = vld [vmem:[#allocation82_spill] sm:$0xff]  ;;  %v10885_v10 = vld [vmem:[#allocation92_spill] sm:$0xff] }
 0x202   :  { %3016 = vmatpush.bf16.msra.mxu2 %v10855_v42  ;;  %v10876_v42 = vld [vmem:[#allocation83_spill] sm:$0xff]  ;;  %v10886_v22 = vld [vmem:[#allocation93_spill] sm:$0xff] }
 0x203   :  { %3029 = vmatpush.bf16.msra.mxu3 %v10856_v3  ;;  %v10877_v3 = vld [vmem:[#allocation84_spill] sm:$0xff] }
 0x205   :  { %2991 = vmatpush.bf16.msra.mxu0 %v10857_v26  ;;  %3004 = vmatpush.bf16.msra.mxu1 %v10858_v11  ;;  %v2570_v7 = vpop.f32.mrf.mxu3  ;;  %v769_v26 = vperm.slane %v9770_v57, 4  ;;  %v10882_v11 = vld [vmem:[#allocation89_spill] sm:$0xff] }
 0x206   :  { %3017 = vmatpush.bf16.msra.mxu2 %v10859_v4  ;;  %v2557_v46 = vpop.f32.mrf.mxu2  ;;  %v10883_v4 = vld [vmem:[#allocation90_spill] sm:$0xff]  ;;  %v10898_v7 = vld [vmem:[#allocation105_spill] sm:$0xff] }
 0x207   :  { %3030 = vmatpush.bf16.msra.mxu3 %v10860_v25  ;;  %v10884_v25 = vld [vmem:[#allocation91_spill] sm:$0xff] }
 0x208   :  { %v10896_v46 = vld [vmem:[#allocation103_spill] sm:$0xff] }
 0x209   :  { %2992 = vmatpush.bf16.msra.mxu0 %v10861_v14  ;;  %3005 = vmatpush.bf16.msra.mxu1 %v10862_v23  ;;  %v10888_v14 = vld [vmem:[#allocation95_spill] sm:$0xff]  ;;  %v10891_v23 = vld [vmem:[#allocation98_spill] sm:$0xff] }
 0x20a   :  { %3018 = vmatpush.bf16.msra.mxu2 %v10863_v0 }
 0x20b   :  { %3031 = vmatpush.bf16.msra.mxu3 %v10864_v41 }
 0x20d   :  { %2993 = vmatpush.bf16.msra.mxu0 %v8950_v54  ;;  %3006 = vmatpush.bf16.msra.mxu1 %v10865_v33  ;;  %v2911_v54 = vunpack.c.l.b16 %v2887_v35  ;;  %v10893_v33 = vld [vmem:[#allocation100_spill] sm:$0xff] }
 0x20e   :  { %3019 = vmatpush.bf16.msra.mxu2 %v10866_v34  ;;  %v10894_v34 = vld [vmem:[#allocation101_spill] sm:$0xff] }
 0x20f   :  { %3032 = vmatpush.bf16.msra.mxu3 %v10867_v43  ;;  %v2923_v49 = vsel %vm801_vm1, %v2917_v63, %v2911_v54  ;;  %v10895_v43 = vld [vmem:[#allocation102_spill] sm:$0xff]  ;;  %v10902_v54 = vld [vmem:[#allocation109_spill] sm:$0xff] }
 0x210   :  { %v9873_v13 = vpack.c.b16 %v2923_v49, %v2923_v49  ;;  %v10899_v63 = vld [vmem:[#allocation106_spill] sm:$0xff]  ;;  %v10905_v49 = vld [vmem:[#allocation112_spill] sm:$0xff] }
 0x211   :  { %2994 = vmatpush.bf16.msra.mxu0 %v10868_v52  ;;  %3007 = vmatpush.bf16.msra.mxu1 %v10869_v36  ;;  %v10900_v36 = vld [vmem:[#allocation107_spill] sm:$0xff] }
 0x212   :  { %3020 = vmatpush.bf16.msra.mxu2 %v10870_v24  ;;  %v10901_v24 = vld [vmem:[#allocation108_spill] sm:$0xff] }
 0x213   :  { %3033 = vmatpush.bf16.msra.mxu3 %v10871_v45  ;;  %v10903_v45 = vld [vmem:[#allocation110_spill] sm:$0xff] }
 0x215   :  { %2995 = vmatpush.bf16.msra.mxu0 %v10872_v50  ;;  %3008 = vmatpush.bf16.msra.mxu1 %v10873_v8  ;;  %v2581_v32 = vpop.f32.mrf.mxu0  ;;  %v2594_v30 = vpop.f32.mrf.mxu1  ;;  %v10906_v50 = vld [vmem:[#allocation113_spill] sm:$0xff]  ;;  %v10907_v8 = vld [vmem:[#allocation114_spill] sm:$0xff] }
 0x216   :  { %3021 = vmatpush.bf16.msra.mxu2 %v10874_v37  ;;  %v2582_v21 = vadd.f32 %v2581_v32, %v769_v26  ;;  %v10908_v37 = vld [vmem:[#allocation115_spill] sm:$0xff] }
 0x217   :  { %3034 = vmatpush.bf16.msra.mxu3 %v10875_v56  ;;  %v10909_v56 = vld [vmem:[#allocation116_spill] sm:$0xff] }
 0x218   :  { %2996 = vmatmul.bf16.vlgmr.msra.gmra.mxu0 %v9869_v53  ;;  %3009 = vmatmul.bf16.vlgmr.msra.gmra.mxu1 %v9873_v13  ;;  %v2595_v47 = vadd.f32 %v2594_v30, %v2582_v21  ;;  %v10917_v21 = vld [vmem:[#allocation124_spill] sm:$0xff]  ;;  %v10918_v30 = vld [vmem:[#allocation125_spill] sm:$0xff] }
 0x219   :  { %3040 = vmatpush.bf16.msrb.mxu0 %v10876_v42  ;;  %3053 = vmatpush.bf16.msrb.mxu1 %v10877_v3  ;;  %v10910_v42 = vld [vmem:[#allocation117_spill] sm:$0xff]  ;;  %v10911_v3 = vld [vmem:[#allocation118_spill] sm:$0xff] }
 0x21a   :  { %3066 = vmatpush.bf16.msrb.mxu2 %v10878_v59  ;;  %3035 = vmatmul.bf16.vlgmr.msra.gmra.mxu3 %v9820_v28  ;;  %v10912_v59 = vld [vmem:[#allocation119_spill] sm:$0xff] }
 0x21b   :  { %3079 = vmatpush.bf16.msrb.mxu3 %v10879_v1  ;;  %3022 = vmatmul.bf16.vlgmr.msra.gmra.mxu2 %v9816_v12  ;;  %v10913_v1 = vld [vmem:[#allocation120_spill] sm:$0xff] }
 0x21d   :  { %3041 = vmatpush.bf16.msrb.mxu0 %v10880_v5  ;;  %3054 = vmatpush.bf16.msrb.mxu1 %v10881_v6  ;;  %v2620_v41 = vpop.f32.mrf.mxu3  ;;  %v2583_v39 = vpop.f32.mrf.mxu0  ;;  %v10914_v5 = vld [vmem:[#allocation121_spill] sm:$0xff]  ;;  %v10915_v6 = vld [vmem:[#allocation122_spill] sm:$0xff] }
 0x21e   :  { %3067 = vmatpush.bf16.msrb.mxu2 %v10882_v11  ;;  %v2607_v0 = vpop.f32.mrf.mxu2  ;;  %v2596_v17 = vpop.f32.mrf.mxu1  ;;  %v10924_v39 = vld [vmem:[#allocation131_spill] sm:$0xff] }
 0x21f   :  { %3080 = vmatpush.bf16.msrb.mxu3 %v10883_v4  ;;  %v2608_v31 = vadd.f32 %v2607_v0, %v2595_v47  ;;  %v10916_v4 = vld [vmem:[#allocation123_spill] sm:$0xff]  ;;  %v10925_v17 = vld [vmem:[#allocation132_spill] sm:$0xff] }
 0x220   :  { %v10920_v47 = vld [vmem:[#allocation127_spill] sm:$0xff] }
 0x221   :  { %3042 = vmatpush.bf16.msrb.mxu0 %v10884_v25  ;;  %3055 = vmatpush.bf16.msrb.mxu1 %v10885_v10  ;;  %v2621_v35 = vadd.f32 %v2620_v41, %v2608_v31  ;;  %v10919_v10 = vld [vmem:[#allocation126_spill] sm:$0xff] }
 0x222   :  { %3068 = vmatpush.bf16.msrb.mxu2 %v10886_v22 }
 0x223   :  { %3081 = vmatpush.bf16.msrb.mxu3 %v10887_v44  ;;  %v770_v44 = vperm.slane %v9770_v57, 5 }
 0x225   :  { %3043 = vmatpush.bf16.msrb.mxu0 %v10888_v14  ;;  %3056 = vmatpush.bf16.msrb.mxu1 %v10889_v19  ;;  %v2622_v62 = vpop.f32.mrf.mxu3  ;;  %v10921_v14 = vld [vmem:[#allocation128_spill] sm:$0xff]  ;;  %v10922_v19 = vld [vmem:[#allocation129_spill] sm:$0xff] }
 0x226   :  { %3069 = vmatpush.bf16.msrb.mxu2 %v10890_v48  ;;  %v2609_v52 = vpop.f32.mrf.mxu2  ;;  %v10923_v48 = vld [vmem:[#allocation130_spill] sm:$0xff]  ;;  %v10932_v62 = vld [vmem:[#allocation139_spill] sm:$0xff] }
 0x227   :  { %3082 = vmatpush.bf16.msrb.mxu3 %v10891_v23 }
 0x229   :  { %3044 = vmatpush.bf16.msrb.mxu0 %v10892_v29  ;;  %3057 = vmatpush.bf16.msrb.mxu1 %v10893_v33  ;;  %v10926_v33 = vld [vmem:[#allocation133_spill] sm:$0xff] }
 0x22a   :  { %3070 = vmatpush.bf16.msrb.mxu2 %v10894_v34 }
 0x22b   :  { %3083 = vmatpush.bf16.msrb.mxu3 %v10895_v43  ;;  %v10928_v43 = vld [vmem:[#allocation135_spill] sm:$0xff] }
 0x22d   :  { %3045 = vmatpush.bf16.msrb.mxu0 %v10896_v46  ;;  %3058 = vmatpush.bf16.msrb.mxu1 %v10897_v16  ;;  %v10929_v46 = vld [vmem:[#allocation136_spill] sm:$0xff]  ;;  %v10930_v16 = vld [vmem:[#allocation137_spill] sm:$0xff] }
 0x22e   :  { %3071 = vmatpush.bf16.msrb.mxu2 %v10898_v7  ;;  %v10931_v7 = vld [vmem:[#allocation138_spill] sm:$0xff] }
 0x22f   :  { %3084 = vmatpush.bf16.msrb.mxu3 %v10899_v63 }
 0x231   :  { %3046 = vmatpush.bf16.msrb.mxu0 %v10900_v36  ;;  %3059 = vmatpush.bf16.msrb.mxu1 %v10901_v24  ;;  %v10933_v36 = vld [vmem:[#allocation140_spill] sm:$0xff]  ;;  %v10934_v24 = vld [vmem:[#allocation141_spill] sm:$0xff] }
 0x232   :  { %3072 = vmatpush.bf16.msrb.mxu2 %v10902_v54  ;;  %v10935_v54 = vld [vmem:[#allocation142_spill] sm:$0xff] }
 0x233   :  { %3085 = vmatpush.bf16.msrb.mxu3 %v10903_v45  ;;  %v10936_v45 = vld [vmem:[#allocation143_spill] sm:$0xff] }
 0x235   :  { %3047 = vmatpush.bf16.msrb.mxu0 %v10904_v20  ;;  %3060 = vmatpush.bf16.msrb.mxu1 %v10905_v49  ;;  %v2633_v11 = vpop.f32.mrf.mxu0  ;;  %v2646_v25 = vpop.f32.mrf.mxu1  ;;  %v10937_v20 = vld [vmem:[#allocation144_spill] sm:$0xff]  ;;  %v10938_v49 = vld [vmem:[#allocation145_spill] sm:$0xff] }
 0x236   :  { %3073 = vmatpush.bf16.msrb.mxu2 %v10906_v50  ;;  %v2634_v32 = vadd.f32 %v2633_v11, %v2621_v35  ;;  %v10927_v35 = vld [vmem:[#allocation134_spill] sm:$0xff]  ;;  %v10948_v11 = vld [vmem:[#allocation155_spill] sm:$0xff] }
 0x237   :  { %3086 = vmatpush.bf16.msrb.mxu3 %v10907_v8  ;;  %v10939_v50 = vld [vmem:[#allocation146_spill] sm:$0xff]  ;;  %v10940_v8 = vld [vmem:[#allocation147_spill] sm:$0xff] }
 0x238   :  { %3048 = vmatmul.bf16.vlgmr.msrb.gmra.mxu0 %v9822_v40  ;;  %3061 = vmatmul.bf16.vlgmr.msrb.gmra.mxu1 %v9826_v38  ;;  %v9929_v22 = vadd.f32 %v2646_v25, %v2634_v32  ;;  %v10949_v25 = vld [vmem:[#allocation156_spill] sm:$0xff] }
 0x239   :  { %3092 = vmatpush.bf16.msra.mxu0 %v10908_v37  ;;  %3105 = vmatpush.bf16.msra.mxu1 %v10909_v56  ;;  %v10941_v37 = vld [vmem:[#allocation148_spill] sm:$0xff]  ;;  %v10942_v56 = vld [vmem:[#allocation149_spill] sm:$0xff] }
 0x23a   :  { %3118 = vmatpush.bf16.msra.mxu2 %v10910_v42  ;;  %3087 = vmatmul.bf16.vlgmr.msrb.gmra.mxu3 %v9873_v13  ;;  %v10943_v42 = vld [vmem:[#allocation150_spill] sm:$0xff] }
 0x23b   :  { %3131 = vmatpush.bf16.msra.mxu3 %v10911_v3  ;;  %3074 = vmatmul.bf16.vlgmr.msrb.gmra.mxu2 %v9869_v53  ;;  %v10944_v3 = vld [vmem:[#allocation151_spill] sm:$0xff] }
 0x23d   :  { %3093 = vmatpush.bf16.msra.mxu0 %v10912_v59  ;;  %3106 = vmatpush.bf16.msra.mxu1 %v10913_v1  ;;  %v2672_v31 = vpop.f32.mrf.mxu3  ;;  %v2635_v41 = vpop.f32.mrf.mxu0  ;;  %v10945_v59 = vld [vmem:[#allocation152_spill] sm:$0xff]  ;;  %v10946_v1 = vld [vmem:[#allocation153_spill] sm:$0xff] }
 0x23e   :  { %3119 = vmatpush.bf16.msra.mxu2 %v10914_v5  ;;  %v2659_v23 = vpop.f32.mrf.mxu2  ;;  %v2648_v29 = vpop.f32.mrf.mxu1  ;;  %v10947_v5 = vld [vmem:[#allocation154_spill] sm:$0xff] }
 0x23f   :  { %3132 = vmatpush.bf16.msra.mxu3 %v10915_v6  ;;  %v2660_v0 = vadd.f32 %v2659_v23, %v770_v44 }
 0x241   :  { %3094 = vmatpush.bf16.msra.mxu0 %v10916_v4  ;;  %3107 = vmatpush.bf16.msra.mxu1 %v10917_v21  ;;  %v2673_v34 = vadd.f32 %v2672_v31, %v2660_v0  ;;  %v10950_v21 = vld [vmem:[#allocation157_spill] sm:$0xff] }
 0x242   :  { %3120 = vmatpush.bf16.msra.mxu2 %v10918_v30  ;;  %v10951_v30 = vld [vmem:[#allocation158_spill] sm:$0xff] }
 0x243   :  { %3133 = vmatpush.bf16.msra.mxu3 %v10919_v10 }
 0x245   :  { %3095 = vmatpush.bf16.msra.mxu0 %v10920_v47  ;;  %3108 = vmatpush.bf16.msra.mxu1 %v10921_v14  ;;  %v2674_v52 = vpop.f32.mrf.mxu3  ;;  %v10952_v47 = vld [vmem:[#allocation159_spill] sm:$0xff]  ;;  %v10953_v14 = vld [vmem:[#allocation160_spill] sm:$0xff] }
 0x246   :  { %3121 = vmatpush.bf16.msra.mxu2 %v10922_v19  ;;  %v2661_v63 = vpop.f32.mrf.mxu2  ;;  %v10954_v19 = vld [vmem:[#allocation161_spill] sm:$0xff] }
 0x247   :  { %3134 = vmatpush.bf16.msra.mxu3 %v10923_v48  ;;  %v10955_v48 = vld [vmem:[#allocation162_spill] sm:$0xff] }
 0x249   :  { %3096 = vmatpush.bf16.msra.mxu0 %v10924_v39  ;;  %3109 = vmatpush.bf16.msra.mxu1 %v10925_v17  ;;  %v10956_v39 = vld [vmem:[#allocation163_spill] sm:$0xff]  ;;  %v10957_v17 = vld [vmem:[#allocation164_spill] sm:$0xff] }
 0x24a   :  { %3122 = vmatpush.bf16.msra.mxu2 %v10926_v33  ;;  %v10958_v33 = vld [vmem:[#allocation165_spill] sm:$0xff] }
 0x24b   :  { %3135 = vmatpush.bf16.msra.mxu3 %v10927_v35  ;;  %v10959_v35 = vld [vmem:[#allocation166_spill] sm:$0xff] }
 0x24d   :  { %3097 = vmatpush.bf16.msra.mxu0 %v10928_v43  ;;  %3110 = vmatpush.bf16.msra.mxu1 %v10929_v46  ;;  %v10960_v43 = vld [vmem:[#allocation167_spill] sm:$0xff]  ;;  %v10961_v46 = vld [vmem:[#allocation168_spill] sm:$0xff] }
 0x24e   :  { %3123 = vmatpush.bf16.msra.mxu2 %v10930_v16  ;;  %v10962_v16 = vld [vmem:[#allocation169_spill] sm:$0xff] }
 0x24f   :  { %3136 = vmatpush.bf16.msra.mxu3 %v10931_v7  ;;  %v10963_v7 = vld [vmem:[#allocation170_spill] sm:$0xff] }
 0x251   :  { %3098 = vmatpush.bf16.msra.mxu0 %v10932_v62  ;;  %3111 = vmatpush.bf16.msra.mxu1 %v10933_v36  ;;  %v10964_v62 = vld [vmem:[#allocation171_spill] sm:$0xff]  ;;  %v10965_v36 = vld [vmem:[#allocation172_spill] sm:$0xff] }
 0x252   :  { %3124 = vmatpush.bf16.msra.mxu2 %v10934_v24  ;;  %v10966_v24 = vld [vmem:[#allocation173_spill] sm:$0xff] }
 0x253   :  { %3137 = vmatpush.bf16.msra.mxu3 %v10935_v54  ;;  %v10967_v54 = vld [vmem:[#allocation174_spill] sm:$0xff] }
 0x255   :  { %3099 = vmatpush.bf16.msra.mxu0 %v10936_v45  ;;  %3112 = vmatpush.bf16.msra.mxu1 %v10937_v20  ;;  %v2685_v6 = vpop.f32.mrf.mxu0  ;;  %v2698_v32 = vpop.f32.mrf.mxu1  ;;  %v10968_v45 = vld [vmem:[#allocation175_spill] sm:$0xff]  ;;  %v10969_v20 = vld [vmem:[#allocation176_spill] sm:$0xff] }
 0x256   :  { %3125 = vmatpush.bf16.msra.mxu2 %v10938_v49  ;;  %v2686_v4 = vadd.f32 %v2685_v6, %v2673_v34  ;;  %v10970_v49 = vld [vmem:[#allocation177_spill] sm:$0xff] }
 0x257   :  { %3138 = vmatpush.bf16.msra.mxu3 %v10939_v50  ;;  %v10971_v50 = vld [vmem:[#allocation178_spill] sm:$0xff] }
 0x258   :  { %3100 = vmatmul.bf16.vlgmr.msra.gmra.mxu0 %v9816_v12  ;;  %3113 = vmatmul.bf16.vlgmr.msra.gmra.mxu1 %v9820_v28  ;;  %v2699_v10 = vadd.f32 %v2698_v32, %v2686_v4  ;;  %v10981_v4 = vld [vmem:[#allocation207_spill] sm:$0xff] }
 0x259   :  { %3144 = vmatpush.bf16.msrb.mxu0 %v10940_v8  ;;  %3157 = vmatpush.bf16.msrb.mxu1 %v10941_v37  ;;  %v10972_v8 = vld [vmem:[#allocation179_spill] sm:$0xff]  ;;  %v10973_v37 = vld [vmem:[#allocation180_spill] sm:$0xff]  ;;  %v10982_v32 = vperm.slane %v10981_v4, 0 }
 0x25a   :  { %3170 = vmatpush.bf16.msrb.mxu2 %v10942_v56  ;;  %3139 = vmatmul.bf16.vlgmr.msra.gmra.mxu3 %v9826_v38  ;;  %v10974_v56 = vld [vmem:[#allocation181_spill] sm:$0xff] }
 0x25b   :  { %3183 = vmatpush.bf16.msrb.mxu3 %v10943_v42  ;;  %3126 = vmatmul.bf16.vlgmr.msra.gmra.mxu2 %v9822_v40  ;;  %v10975_v42 = vld [vmem:[#allocation182_spill] sm:$0xff] }
 0x25d   :  { %3145 = vmatpush.bf16.msrb.mxu0 %v10944_v3  ;;  %3158 = vmatpush.bf16.msrb.mxu1 %v10945_v59  ;;  %v2724_v31 = vpop.f32.mrf.mxu3  ;;  %v2687_v41 = vpop.f32.mrf.mxu0  ;;  %v10976_v3 = vld [vmem:[#allocation183_spill] sm:$0xff]  ;;  %v10977_v59 = vld [vmem:[#allocation184_spill] sm:$0xff] }
 0x25e   :  { %3171 = vmatpush.bf16.msrb.mxu2 %v10946_v1  ;;  %v2711_v23 = vpop.f32.mrf.mxu2  ;;  %v2700_v29 = vpop.f32.mrf.mxu1  ;;  %v10978_v1 = vld [vmem:[#allocation185_spill] sm:$0xff] }
 0x25f   :  { %3184 = vmatpush.bf16.msrb.mxu3 %v10947_v5  ;;  %v2712_v0 = vadd.f32 %v2711_v23, %v2699_v10  ;;  %v10979_v5 = vld [vmem:[#allocation186_spill] sm:$0xff]  ;;  %v10984_v10 = vld [vmem:[#allocation189_spill] sm:$0xff] }
 0x260   :  { %v10988_v23 = vld [vmem:[#allocation193_spill] sm:$0xff] }
 0x261   :  { %3146 = vmatpush.bf16.msrb.mxu0 %v10948_v11  ;;  %3159 = vmatpush.bf16.msrb.mxu1 %v10949_v25  ;;  %v9977_v34 = vadd.f32 %v2724_v31, %v2712_v0  ;;  %v10980_v11 = vld [vmem:[#allocation187_spill] sm:$0xff]  ;;  %v10989_v0 = vld [vmem:[#allocation194_spill] sm:$0xff] }
 0x262   :  { %3172 = vmatpush.bf16.msrb.mxu2 %v10950_v21 }
 0x263   :  { %3185 = vmatpush.bf16.msrb.mxu3 %v10951_v30  ;;  %v10983_v30 = vld [vmem:[#allocation188_spill] sm:$0xff] }
 0x265   :  { %3147 = vmatpush.bf16.msrb.mxu0 %v10952_v47  ;;  %3160 = vmatpush.bf16.msrb.mxu1 %v10953_v14  ;;  %v2726_v52 = vpop.f32.mrf.mxu3  ;;  %v10985_v47 = vld [vmem:[#allocation190_spill] sm:$0xff] }
 0x266   :  { %3173 = vmatpush.bf16.msrb.mxu2 %v10954_v19  ;;  %v2713_v63 = vpop.f32.mrf.mxu2  ;;  %v10986_v19 = vld [vmem:[#allocation191_spill] sm:$0xff]  ;;  %v10996_v52 = vld [vmem:[#allocation201_spill] sm:$0xff] }
 0x267   :  { %3186 = vmatpush.bf16.msrb.mxu3 %v10955_v48  ;;  %v10987_v48 = vld [vmem:[#allocation192_spill] sm:$0xff] }
 0x268   :  { %v10995_v63 = vld [vmem:[#allocation200_spill] sm:$0xff] }
 0x269   :  { %3148 = vmatpush.bf16.msrb.mxu0 %v10956_v39  ;;  %3161 = vmatpush.bf16.msrb.mxu1 %v10957_v17  ;;  %v10990_v17 = vld [vmem:[#allocation195_spill] sm:$0xff] }
 0x26a   :  { %3174 = vmatpush.bf16.msrb.mxu2 %v10958_v33 }
 0x26b   :  { %3187 = vmatpush.bf16.msrb.mxu3 %v10959_v35  ;;  %v10991_v35 = vld [vmem:[#allocation196_spill] sm:$0xff] }
 0x26d   :  { %3149 = vmatpush.bf16.msrb.mxu0 %v10960_v43  ;;  %3162 = vmatpush.bf16.msrb.mxu1 %v10961_v46  ;;  %v10992_v43 = vld [vmem:[#allocation197_spill] sm:$0xff] }
 0x26e   :  { %3175 = vmatpush.bf16.msrb.mxu2 %v10962_v16  ;;  %v10993_v16 = vld [vmem:[#allocation198_spill] sm:$0xff] }
 0x26f   :  { %3188 = vmatpush.bf16.msrb.mxu3 %v10963_v7  ;;  %v10994_v7 = vld [vmem:[#allocation199_spill] sm:$0xff] }
 0x271   :  { %3150 = vmatpush.bf16.msrb.mxu0 %v10964_v62  ;;  %3163 = vmatpush.bf16.msrb.mxu1 %v10965_v36  ;;  %v10997_v62 = vld [vmem:[#allocation202_spill] sm:$0xff] }
 0x272   :  { %3176 = vmatpush.bf16.msrb.mxu2 %v10966_v24 }
 0x273   :  { %3189 = vmatpush.bf16.msrb.mxu3 %v10967_v54  ;;  %v10998_v54 = vld [vmem:[#allocation203_spill] sm:$0xff] }
 0x275   :  { %3151 = vmatpush.bf16.msrb.mxu0 %v10968_v45  ;;  %3164 = vmatpush.bf16.msrb.mxu1 %v10969_v20  ;;  %v2945_v6 = vpop.f32.mrf.mxu0  ;;  %v2958_v21 = vpop.f32.mrf.mxu1  ;;  %v10999_v45 = vld [vmem:[#allocation204_spill] sm:$0xff]  ;;  %v11000_v20 = vld [vmem:[#allocation205_spill] sm:$0xff] }
 0x276   :  { %3177 = vmatpush.bf16.msrb.mxu2 %v10970_v49  ;;  %v2946_v25 = vadd.f32 %v2945_v6, %v10982_v32  ;;  %v11001_v49 = vld [vmem:[#allocation206_spill] sm:$0xff]  ;;  %v11011_v6 = vld [vmem:[#allocation217_spill] sm:$0xff]  ;;  %v11013_v32 = vld [vmem:[#allocation219_spill] sm:$0xff] }
 0x277   :  { %3190 = vmatpush.bf16.msrb.mxu3 %v10971_v50  ;;  %v11002_v50 = vld [vmem:[#allocation208_spill] sm:$0xff] }
 0x278   :  { %3152 = vmatmul.bf16.vlgmr.msrb.gmra.mxu0 %v9869_v53  ;;  %3165 = vmatmul.bf16.vlgmr.msrb.gmra.mxu1 %v9873_v13  ;;  %v2959_v14 = vadd.f32 %v2958_v21, %v2946_v25  ;;  %v11014_v21 = vld [vmem:[#allocation220_spill] sm:$0xff] }
 0x279   :  { %3196 = vmatpush.bf16.msra.mxu0 %v10972_v8  ;;  %3209 = vmatpush.bf16.msra.mxu1 %v10973_v37  ;;  %v11003_v8 = vld [vmem:[#allocation209_spill] sm:$0xff]  ;;  %v11004_v37 = vld [vmem:[#allocation210_spill] sm:$0xff] }
 0x27a   :  { %3222 = vmatpush.bf16.msra.mxu2 %v10974_v56  ;;  %3191 = vmatmul.bf16.vlgmr.msrb.gmra.mxu3 %v9820_v28  ;;  %v11005_v56 = vld [vmem:[#allocation211_spill] sm:$0xff] }
 0x27b   :  { %3235 = vmatpush.bf16.msra.mxu3 %v10975_v42  ;;  %3178 = vmatmul.bf16.vlgmr.msrb.gmra.mxu2 %v9816_v12  ;;  %v11006_v42 = vld [vmem:[#allocation212_spill] sm:$0xff] }
 0x27d   :  { %3197 = vmatpush.bf16.msra.mxu0 %v10976_v3  ;;  %3210 = vmatpush.bf16.msra.mxu1 %v10977_v59  ;;  %v2984_v39 = vpop.f32.mrf.mxu3  ;;  %v2947_v29 = vpop.f32.mrf.mxu0  ;;  %v11007_v3 = vld [vmem:[#allocation213_spill] sm:$0xff]  ;;  %v11008_v59 = vld [vmem:[#allocation214_spill] sm:$0xff] }
 0x27e   :  { %3223 = vmatpush.bf16.msra.mxu2 %v10978_v1  ;;  %v2971_v31 = vpop.f32.mrf.mxu2  ;;  %v2960_v33 = vpop.f32.mrf.mxu1  ;;  %v11009_v1 = vld [vmem:[#allocation215_spill] sm:$0xff]  ;;  %v11022_v29 = vperm.slane %v10981_v4, 1 }
 0x27f   :  { %3236 = vmatpush.bf16.msra.mxu3 %v10979_v5  ;;  %v2972_v41 = vadd.f32 %v2971_v31, %v2959_v14  ;;  %v11010_v5 = vld [vmem:[#allocation216_spill] sm:$0xff]  ;;  %v11016_v14 = vld [vmem:[#allocation222_spill] sm:$0xff] }
 0x280   :  { %v11020_v31 = vld [vmem:[#allocation226_spill] sm:$0xff] }
 0x281   :  { %3198 = vmatpush.bf16.msra.mxu0 %v10980_v11  ;;  %3211 = vmatpush.bf16.msra.mxu1 %v10983_v30  ;;  %v2985_v46 = vadd.f32 %v2984_v39, %v2972_v41  ;;  %v11012_v11 = vld [vmem:[#allocation218_spill] sm:$0xff]  ;;  %v11021_v41 = vld [vmem:[#allocation227_spill] sm:$0xff] }
 0x282   :  { %3224 = vmatpush.bf16.msra.mxu2 %v10984_v10 }
 0x283   :  { %3237 = vmatpush.bf16.msra.mxu3 %v10985_v47  ;;  %v11015_v47 = vld [vmem:[#allocation221_spill] sm:$0xff] }
 0x285   :  { %3199 = vmatpush.bf16.msra.mxu0 %v10986_v19  ;;  %3212 = vmatpush.bf16.msra.mxu1 %v10987_v48  ;;  %v2986_v24 = vpop.f32.mrf.mxu3  ;;  %v11017_v19 = vld [vmem:[#allocation223_spill] sm:$0xff] }
 0x286   :  { %3225 = vmatpush.bf16.msra.mxu2 %v10988_v23  ;;  %v2973_v36 = vpop.f32.mrf.mxu2  ;;  %v11018_v23 = vld [vmem:[#allocation224_spill] sm:$0xff]  ;;  %v11029_v24 = vld [vmem:[#allocation234_spill] sm:$0xff] }
 0x287   :  { %3238 = vmatpush.bf16.msra.mxu3 %v10989_v0  ;;  %v11019_v0 = vld [vmem:[#allocation225_spill] sm:$0xff] }
 0x288   :  { %v11028_v36 = vld [vmem:[#allocation233_spill] sm:$0xff] }
 0x289   :  { %3200 = vmatpush.bf16.msra.mxu0 %v10990_v17  ;;  %3213 = vmatpush.bf16.msra.mxu1 %v10991_v35 }
 0x28a   :  { %3226 = vmatpush.bf16.msra.mxu2 %v10992_v43  ;;  %v11023_v43 = vld [vmem:[#allocation228_spill] sm:$0xff] }
 0x28b   :  { %3239 = vmatpush.bf16.msra.mxu3 %v10993_v16  ;;  %v11024_v16 = vld [vmem:[#allocation229_spill] sm:$0xff] }
 0x28d   :  { %3201 = vmatpush.bf16.msra.mxu0 %v10994_v7  ;;  %3214 = vmatpush.bf16.msra.mxu1 %v10995_v63  ;;  %v11025_v7 = vld [vmem:[#allocation230_spill] sm:$0xff] }
 0x28e   :  { %3227 = vmatpush.bf16.msra.mxu2 %v10996_v52  ;;  %v11026_v52 = vld [vmem:[#allocation231_spill] sm:$0xff] }
 0x28f   :  { %3240 = vmatpush.bf16.msra.mxu3 %v10997_v62  ;;  %v11027_v62 = vld [vmem:[#allocation232_spill] sm:$0xff] }
 0x291   :  { %3202 = vmatpush.bf16.msra.mxu0 %v10998_v54  ;;  %3215 = vmatpush.bf16.msra.mxu1 %v10999_v45  ;;  %v11030_v54 = vld [vmem:[#allocation235_spill] sm:$0xff] }
 0x292   :  { %3228 = vmatpush.bf16.msra.mxu2 %v11000_v20 }
 0x293   :  { %3241 = vmatpush.bf16.msra.mxu3 %v11001_v49  ;;  %v11031_v49 = vld [vmem:[#allocation237_spill] sm:$0xff] }
 0x295   :  { %3203 = vmatpush.bf16.msra.mxu0 %v11002_v50  ;;  %3216 = vmatpush.bf16.msra.mxu1 %v11003_v8  ;;  %v2997_v25 = vpop.f32.mrf.mxu0  ;;  %v3010_v10 = vpop.f32.mrf.mxu1  ;;  %v11032_v50 = vld [vmem:[#allocation238_spill] sm:$0xff]  ;;  %v11033_v8 = vld [vmem:[#allocation239_spill] sm:$0xff] }
 0x296   :  { %3229 = vmatpush.bf16.msra.mxu2 %v11004_v37  ;;  %v2998_v30 = vadd.f32 %v2997_v25, %v2985_v46  ;;  %v11034_v37 = vld [vmem:[#allocation240_spill] sm:$0xff]  ;;  %v11044_v25 = vld [vmem:[#allocation250_spill] sm:$0xff] }
 0x297   :  { %3242 = vmatpush.bf16.msra.mxu3 %v11005_v56  ;;  %v11035_v56 = vld [vmem:[#allocation241_spill] sm:$0xff] }
 0x298   :  { %3204 = vmatmul.bf16.vlgmr.msra.gmra.mxu0 %v9822_v40  ;;  %3217 = vmatmul.bf16.vlgmr.msra.gmra.mxu1 %v9826_v38  ;;  %v10046_v48 = vadd.f32 %v3010_v10, %v2998_v30  ;;  %v11046_v30 = vld [vmem:[#allocation252_spill] sm:$0xff] }
 0x299   :  { %3248 = vmatpush.bf16.msrb.mxu0 %v11006_v42  ;;  %3261 = vmatpush.bf16.msrb.mxu1 %v11007_v3  ;;  %v11036_v42 = vld [vmem:[#allocation242_spill] sm:$0xff]  ;;  %v11037_v3 = vld [vmem:[#allocation243_spill] sm:$0xff] }
 0x29a   :  { %3274 = vmatpush.bf16.msrb.mxu2 %v11008_v59  ;;  %3243 = vmatmul.bf16.vlgmr.msra.gmra.mxu3 %v9873_v13  ;;  %v11038_v59 = vld [vmem:[#allocation244_spill] sm:$0xff] }
 0x29b   :  { %3287 = vmatpush.bf16.msrb.mxu3 %v11009_v1  ;;  %3230 = vmatmul.bf16.vlgmr.msra.gmra.mxu2 %v9869_v53  ;;  %v11039_v1 = vld [vmem:[#allocation245_spill] sm:$0xff] }
 0x29d   :  { %3249 = vmatpush.bf16.msrb.mxu0 %v11010_v5  ;;  %3262 = vmatpush.bf16.msrb.mxu1 %v11011_v6  ;;  %v3036_v33 = vpop.f32.mrf.mxu3  ;;  %v2999_v35 = vpop.f32.mrf.mxu0  ;;  %v11040_v5 = vld [vmem:[#allocation246_spill] sm:$0xff]  ;;  %v11041_v6 = vld [vmem:[#allocation247_spill] sm:$0xff] }
 0x29e   :  { %3275 = vmatpush.bf16.msrb.mxu2 %v11012_v11  ;;  %v3023_v39 = vpop.f32.mrf.mxu2  ;;  %v3012_v46 = vpop.f32.mrf.mxu1  ;;  %v11042_v11 = vld [vmem:[#allocation248_spill] sm:$0xff] }
 0x29f   :  { %3288 = vmatpush.bf16.msrb.mxu3 %v11013_v32  ;;  %v3024_v17 = vadd.f32 %v3023_v39, %v11022_v29  ;;  %v11043_v32 = vld [vmem:[#allocation249_spill] sm:$0xff]  ;;  %v11052_v29 = vld [vmem:[#allocation258_spill] sm:$0xff] }
 0x2a0   :  { %v11051_v39 = vld [vmem:[#allocation257_spill] sm:$0xff] }
 0x2a1   :  { %3250 = vmatpush.bf16.msrb.mxu0 %v11014_v21  ;;  %3263 = vmatpush.bf16.msrb.mxu1 %v11015_v47  ;;  %v3037_v63 = vadd.f32 %v3036_v33, %v3024_v17  ;;  %v11045_v21 = vld [vmem:[#allocation251_spill] sm:$0xff]  ;;  %v11047_v47 = vld [vmem:[#allocation253_spill] sm:$0xff]  ;;  %v11054_v33 = vld [vmem:[#allocation260_spill] sm:$0xff] }
 0x2a2   :  { %3276 = vmatpush.bf16.msrb.mxu2 %v11016_v14  ;;  %v11053_v17 = vld [vmem:[#allocation259_spill] sm:$0xff] }
 0x2a3   :  { %3289 = vmatpush.bf16.msrb.mxu3 %v11017_v19 }
 0x2a5   :  { %3251 = vmatpush.bf16.msrb.mxu0 %v11018_v23  ;;  %3264 = vmatpush.bf16.msrb.mxu1 %v11019_v0  ;;  %v3038_v20 = vpop.f32.mrf.mxu3  ;;  %v11048_v23 = vld [vmem:[#allocation254_spill] sm:$0xff]  ;;  %v11049_v0 = vld [vmem:[#allocation255_spill] sm:$0xff] }
 0x2a6   :  { %3277 = vmatpush.bf16.msrb.mxu2 %v11020_v31  ;;  %v3025_v45 = vpop.f32.mrf.mxu2  ;;  %v11050_v31 = vld [vmem:[#allocation256_spill] sm:$0xff] }
 0x2a7   :  { %3290 = vmatpush.bf16.msrb.mxu3 %v11021_v41  ;;  %v11060_v45 = vld [vmem:[#allocation267_spill] sm:$0xff]  ;;  %v11061_v20 = vld [vmem:[#allocation268_spill] sm:$0xff] }
 0x2a9   :  { %3252 = vmatpush.bf16.msrb.mxu0 %v11023_v43  ;;  %3265 = vmatpush.bf16.msrb.mxu1 %v11024_v16 }
 0x2aa   :  { %3278 = vmatpush.bf16.msrb.mxu2 %v11025_v7  ;;  %v11055_v7 = vld [vmem:[#allocation261_spill] sm:$0xff] }
 0x2ab   :  { %3291 = vmatpush.bf16.msrb.mxu3 %v11026_v52  ;;  %v11056_v52 = vld [vmem:[#allocation262_spill] sm:$0xff] }
 0x2ad   :  { %3253 = vmatpush.bf16.msrb.mxu0 %v11027_v62  ;;  %3266 = vmatpush.bf16.msrb.mxu1 %v11028_v36  ;;  %v11057_v62 = vld [vmem:[#allocation263_spill] sm:$0xff] }
 0x2ae   :  { %3279 = vmatpush.bf16.msrb.mxu2 %v11029_v24  ;;  %v11058_v24 = vld [vmem:[#allocation264_spill] sm:$0xff] }
 0x2af   :  { %3292 = vmatpush.bf16.msrb.mxu3 %v11030_v54  ;;  %v11059_v54 = vld [vmem:[#allocation265_spill] sm:$0xff] }
 0x2b1   :  { %3254 = vmatpush.bf16.msrb.mxu0 %v11031_v49  ;;  %3267 = vmatpush.bf16.msrb.mxu1 %v11032_v50  ;;  %v11062_v49 = vld [vmem:[#allocation269_spill] sm:$0xff] }
 0x2b2   :  { %3280 = vmatpush.bf16.msrb.mxu2 %v11033_v8 }
 0x2b3   :  { %3293 = vmatpush.bf16.msrb.mxu3 %v11034_v37  ;;  %v11063_v37 = vld [vmem:[#allocation270_spill] sm:$0xff] }
 0x2b5   :  { %3255 = vmatpush.bf16.msrb.mxu0 %v11035_v56  ;;  %3268 = vmatpush.bf16.msrb.mxu1 %v11036_v42  ;;  %v3049_v10 = vpop.f32.mrf.mxu0  ;;  %v3062_v19 = vpop.f32.mrf.mxu1  ;;  %v11064_v56 = vld [vmem:[#allocation271_spill] sm:$0xff]  ;;  %v11065_v42 = vld [vmem:[#allocation272_spill] sm:$0xff] }
 0x2b6   :  { %3281 = vmatpush.bf16.msrb.mxu2 %v11037_v3  ;;  %v3050_v14 = vadd.f32 %v3049_v10, %v3037_v63  ;;  %v11066_v3 = vld [vmem:[#allocation273_spill] sm:$0xff]  ;;  %v11076_v10 = vld [vmem:[#allocation283_spill] sm:$0xff] }
 0x2b7   :  { %3294 = vmatpush.bf16.msrb.mxu3 %v11038_v59  ;;  %v11067_v59 = vld [vmem:[#allocation274_spill] sm:$0xff] }
 0x2b8   :  { %3256 = vmatmul.bf16.vlgmr.msrb.gmra.mxu0 %v9816_v12  ;;  %3269 = vmatmul.bf16.vlgmr.msrb.gmra.mxu1 %v9820_v28  ;;  %v3063_v41 = vadd.f32 %v3062_v19, %v3050_v14  ;;  %v11078_v14 = vld [vmem:[#allocation285_spill] sm:$0xff] }
 0x2b9   :  { %3300 = vmatpush.bf16.msra.mxu0 %v11039_v1  ;;  %3313 = vmatpush.bf16.msra.mxu1 %v11040_v5  ;;  %v11068_v1 = vld [vmem:[#allocation275_spill] sm:$0xff]  ;;  %v11069_v5 = vld [vmem:[#allocation276_spill] sm:$0xff] }
 0x2ba   :  { %3326 = vmatpush.bf16.msra.mxu2 %v11041_v6  ;;  %3295 = vmatmul.bf16.vlgmr.msrb.gmra.mxu3 %v9826_v38  ;;  %v11070_v6 = vld [vmem:[#allocation277_spill] sm:$0xff] }
 0x2bb   :  { %3339 = vmatpush.bf16.msra.mxu3 %v11042_v11  ;;  %3282 = vmatmul.bf16.vlgmr.msrb.gmra.mxu2 %v9822_v40  ;;  %v11071_v11 = vld [vmem:[#allocation278_spill] sm:$0xff] }
 0x2bd   :  { %3301 = vmatpush.bf16.msra.mxu0 %v11043_v32  ;;  %3314 = vmatpush.bf16.msra.mxu1 %v11044_v25  ;;  %v3088_v46 = vpop.f32.mrf.mxu3  ;;  %v3051_v16 = vpop.f32.mrf.mxu0  ;;  %v11072_v32 = vld [vmem:[#allocation279_spill] sm:$0xff]  ;;  %v11073_v25 = vld [vmem:[#allocation280_spill] sm:$0xff] }
 0x2be   :  { %3327 = vmatpush.bf16.msra.mxu2 %v11045_v21  ;;  %v3075_v35 = vpop.f32.mrf.mxu2  ;;  %v3064_v63 = vpop.f32.mrf.mxu1  ;;  %v11074_v21 = vld [vmem:[#allocation281_spill] sm:$0xff] }
 0x2bf   :  { %3340 = vmatpush.bf16.msra.mxu3 %v11046_v30  ;;  %v3076_v43 = vadd.f32 %v3075_v35, %v3063_v41  ;;  %v11075_v30 = vld [vmem:[#allocation282_spill] sm:$0xff]  ;;  %v11086_v35 = vld [vmem:[#allocation292_spill] sm:$0xff] }
 0x2c0   :  { %v11088_v63 = vld [vmem:[#allocation294_spill] sm:$0xff] }
 0x2c1   :  { %3302 = vmatpush.bf16.msra.mxu0 %v11047_v47  ;;  %3315 = vmatpush.bf16.msra.mxu1 %v11048_v23  ;;  %v10093_v36 = vadd.f32 %v3088_v46, %v3076_v43  ;;  %v11077_v47 = vld [vmem:[#allocation284_spill] sm:$0xff]  ;;  %v11079_v23 = vld [vmem:[#allocation286_spill] sm:$0xff]  ;;  %v11087_v43 = vld [vmem:[#allocation293_spill] sm:$0xff] }
 0x2c2   :  { %3328 = vmatpush.bf16.msra.mxu2 %v11049_v0  ;;  %v11080_v0 = vperm.slane %v10981_v4, 2 }
 0x2c3   :  { %3341 = vmatpush.bf16.msra.mxu3 %v11050_v31 }
 0x2c5   :  { %3303 = vmatpush.bf16.msra.mxu0 %v11051_v39  ;;  %3316 = vmatpush.bf16.msra.mxu1 %v11052_v29  ;;  %v3090_v8 = vpop.f32.mrf.mxu3  ;;  %v11081_v39 = vld [vmem:[#allocation287_spill] sm:$0xff] }
 0x2c6   :  { %3329 = vmatpush.bf16.msra.mxu2 %v11053_v17  ;;  %v3077_v50 = vpop.f32.mrf.mxu2  ;;  %v11084_v17 = vld [vmem:[#allocation290_spill] sm:$0xff]  ;;  %v11095_v8 = vld [vmem:[#allocation301_spill] sm:$0xff] }
 0x2c7   :  { %3342 = vmatpush.bf16.msra.mxu3 %v11054_v33  ;;  %v11085_v33 = vld [vmem:[#allocation291_spill] sm:$0xff]  ;;  %v11094_v50 = vld [vmem:[#allocation300_spill] sm:$0xff] }
 0x2c9   :  { %3304 = vmatpush.bf16.msra.mxu0 %v11055_v7  ;;  %3317 = vmatpush.bf16.msra.mxu1 %v11056_v52 }
 0x2ca   :  { %3330 = vmatpush.bf16.msra.mxu2 %v11057_v62  ;;  %v11089_v62 = vld [vmem:[#allocation295_spill] sm:$0xff] }
 0x2cb   :  { %3343 = vmatpush.bf16.msra.mxu3 %v11058_v24  ;;  %v11090_v24 = vld [vmem:[#allocation296_spill] sm:$0xff] }
 0x2cd   :  { %3305 = vmatpush.bf16.msra.mxu0 %v11059_v54  ;;  %3318 = vmatpush.bf16.msra.mxu1 %v11060_v45  ;;  %v11091_v45 = vld [vmem:[#allocation297_spill] sm:$0xff] }
 0x2ce   :  { %3331 = vmatpush.bf16.msra.mxu2 %v11061_v20  ;;  %v11092_v20 = vld [vmem:[#allocation298_spill] sm:$0xff] }
 0x2cf   :  { %3344 = vmatpush.bf16.msra.mxu3 %v11062_v49  ;;  %v11093_v49 = vld [vmem:[#allocation299_spill] sm:$0xff] }
 0x2d1   :  { %3306 = vmatpush.bf16.msra.mxu0 %v11063_v37  ;;  %3319 = vmatpush.bf16.msra.mxu1 %v11064_v56 }
 0x2d2   :  { %3332 = vmatpush.bf16.msra.mxu2 %v11065_v42  ;;  %v6589_v42 = vld [vmem:[#allocation14 + $0x30] sm:$0xf] }
 0x2d3   :  { %3345 = vmatpush.bf16.msra.mxu3 %v11066_v3  ;;  %v7830_v3 = vld [vmem:[#allocation14 + $0x34] sm:$0xf0] }
 0x2d5   :  { %3307 = vmatpush.bf16.msra.mxu0 %v11067_v59  ;;  %3320 = vmatpush.bf16.msra.mxu1 %v11068_v1  ;;  %v3101_v19 = vpop.f32.mrf.mxu0  ;;  %v3114_v41 = vpop.f32.mrf.mxu1  ;;  %v7829_v59 = vld [vmem:[#allocation14 + $0x34] sm:$0xf]  ;;  %v11096_v1 = vld [vmem:[#allocation302_spill] sm:$0xff] }
 0x2d6   :  { %3333 = vmatpush.bf16.msra.mxu2 %v11069_v5  ;;  %v3102_v31 = vadd.f32 %v3101_v19, %v11080_v0  ;;  %v6591_v5 = vld [vmem:[#allocation14 + $0x38] sm:$0xf0]  ;;  %v7827_v19 = vld [vmem:[#allocation14 + $0x24] sm:$0xf]  ;;  %v6583_v0 = vld [vmem:[#allocation14 + $0x28] sm:$0xf0] }
 0x2d7   :  { %3346 = vmatpush.bf16.msra.mxu3 %v11070_v6  ;;  %v6623_v6 = vld [vmem:[#allocation13 + $0x30] sm:$0xf] }
 0x2d8   :  { %3308 = vmatmul.bf16.vlgmr.msra.gmra.mxu0 %v9869_v53  ;;  %3321 = vmatmul.bf16.vlgmr.msra.gmra.mxu1 %v9873_v13  ;;  %v3115_v29 = vadd.f32 %v3114_v41, %v3102_v31  ;;  %v6615_v31 = vld [vmem:[#allocation13 + $0x20] sm:$0xf]  ;;  %v7820_v41 = vld [vmem:[#allocation13 + $0x24] sm:$0xf0] }
 0x2d9   :  { %3352 = vmatpush.bf16.msrb.mxu0 %v11071_v11  ;;  %3365 = vmatpush.bf16.msrb.mxu1 %v11072_v32  ;;  %v7822_v11 = vld [vmem:[#allocation13 + $0x34] sm:$0xf0]  ;;  %v7821_v32 = vld [vmem:[#allocation13 + $0x34] sm:$0xf] }
 0x2da   :  { %3378 = vmatpush.bf16.msrb.mxu2 %v11073_v25  ;;  %3347 = vmatmul.bf16.vlgmr.msra.gmra.mxu3 %v9820_v28  ;;  %v11083_v28 = vld [vmem:[#allocation289_spill] sm:$0xff]  ;;  %v6625_v25 = vld [vmem:[#allocation13 + $0x38] sm:$0xf0] }
 0x2db   :  { %3391 = vmatpush.bf16.msrb.mxu3 %v11074_v21  ;;  %3334 = vmatmul.bf16.vlgmr.msra.gmra.mxu2 %v9816_v12  ;;  %v11082_v12 = vld [vmem:[#allocation288_spill] sm:$0xff]  ;;  %v6590_v21 = vor.u32 %v7830_v3, %v6589_v42  ;;  %v7878_v3 = vld [vmem:[#allocation16 + $0x174] sm:$0xf0] }
 0x2dc   :  { %v6817_v42 = vld [vmem:[#allocation16 + $0x170] sm:$0xf] }
 0x2dd   :  { %3353 = vmatpush.bf16.msrb.mxu0 %v11075_v30  ;;  %3366 = vmatpush.bf16.msrb.mxu1 %v11076_v10  ;;  %v3140_v4 = vpop.f32.mrf.mxu3  ;;  %v3103_v7 = vpop.f32.mrf.mxu0  ;;  %v6594_v30 = vor.u32 %v7829_v59, %v6591_v5  ;;  %v6624_v10 = vor.u32 %v7822_v11, %v6623_v6  ;;  %v6881_v5 = vld [vmem:[#allocation16 + $0x1f0] sm:$0xf]  ;;  %v7894_v6 = vld [vmem:[#allocation16 + $0x1f4] sm:$0xf0] }
 0x2de   :  { %3379 = vmatpush.bf16.msrb.mxu2 %v11077_v47  ;;  %v3127_v46 = vpop.f32.mrf.mxu2  ;;  %v3116_v52 = vpop.f32.mrf.mxu1  ;;  %v6581_v47 = vld [vmem:[#allocation14 + $0x20] sm:$0xf]  ;;  %v7823_v7 = vld [vmem:[#allocation14 + $0x4] sm:$0xf] }
 0x2df   :  { %3392 = vmatpush.bf16.msrb.mxu3 %v11078_v14  ;;  %v3128_v16 = vadd.f32 %v3127_v46, %v3115_v29  ;;  %v7828_v14 = vld [vmem:[#allocation14 + $0x24] sm:$0xf0]  ;;  %v7825_v29 = vld [vmem:[#allocation14 + $0x14] sm:$0xf]  ;;  %v6565_v46 = vld [vmem:[#allocation14] sm:$0xf] }
 0x2e0   :  { %v6599_v52 = vld [vmem:[#allocation13] sm:$0xf] }
 0x2e1   :  { %3354 = vmatpush.bf16.msrb.mxu0 %v11079_v23  ;;  %3367 = vmatpush.bf16.msrb.mxu1 %v11081_v39  ;;  %v10133_v54 = vadd.f32 %v3140_v4, %v3128_v16  ;;  %v6628_v23 = vor.u32 %v7821_v32, %v6625_v25  ;;  %v6586_v39 = vor.u32 %v7827_v19, %v6583_v0  ;;  %v7824_v16 = vld [vmem:[#allocation14 + $0x4] sm:$0xf0] }
 0x2e2   :  { %3380 = vmatpush.bf16.msrb.mxu2 %v11082_v12  ;;  %v6616_v12 = vor.u32 %v7820_v41, %v6615_v31  ;;  %v7860_v19 = vld [vmem:[#allocation16 + $0xe4] sm:$0xf0]  ;;  %v6873_v31 = vld [vmem:[#allocation16 + $0x1e0] sm:$0xf] }
 0x2e3   :  { %3393 = vmatpush.bf16.msrb.mxu3 %v11083_v28  ;;  %v6573_v28 = vld [vmem:[#allocation14 + $0x10] sm:$0xf]  ;;  %v7876_v0 = vld [vmem:[#allocation16 + $0x164] sm:$0xf0] }
 0x2e4   :  { %v7892_v41 = vld [vmem:[#allocation16 + $0x1e4] sm:$0xf0] }
 0x2e5   :  { %3355 = vmatpush.bf16.msrb.mxu0 %v11084_v17  ;;  %3368 = vmatpush.bf16.msrb.mxu1 %v11085_v33  ;;  %v3142_v56 = vpop.f32.mrf.mxu3  ;;  %v6607_v33 = vld [vmem:[#allocation13 + $0x10] sm:$0xf] }
 0x2e6   :  { %3381 = vmatpush.bf16.msrb.mxu2 %v11086_v35  ;;  %v3129_v37 = vpop.f32.mrf.mxu2  ;;  %v6609_v35 = vld [vmem:[#allocation13 + $0x18] sm:$0xf0]  ;;  %v7862_v56 = vld [vmem:[#allocation16 + $0xf4] sm:$0xf0] }
 0x2e7   :  { %3394 = vmatpush.bf16.msrb.mxu3 %v11087_v43  ;;  %v6566_v37 = vor.u32 %v7824_v16, %v6565_v46  ;;  %v6801_v46 = vld [vmem:[#allocation16 + $0x150] sm:$0xf]  ;;  %v7874_v16 = vld [vmem:[#allocation16 + $0x154] sm:$0xf0] }
 0x2e9   :  { %3356 = vmatpush.bf16.msrb.mxu0 %v11088_v63  ;;  %3369 = vmatpush.bf16.msrb.mxu1 %v11089_v62  ;;  %v6567_v63 = vld [vmem:[#allocation14 + $0x8] sm:$0xf0] }
 0x2ea   :  { %3382 = vmatpush.bf16.msrb.mxu2 %v11090_v24  ;;  %v7815_v24 = vld [vmem:[#allocation13 + $0x4] sm:$0xf]  ;;  %v6570_v59 = vor.u32 %v7823_v7, %v6567_v63  ;;  %v6865_v7 = vld [vmem:[#allocation16 + $0x1d0] sm:$0xf]  ;;  %v7890_v63 = vld [vmem:[#allocation16 + $0x1d4] sm:$0xf0] }
 0x2eb   :  { %3395 = vmatpush.bf16.msrb.mxu3 %v11091_v45 }
 0x2ed   :  { %3357 = vmatpush.bf16.msrb.mxu0 %v11092_v20  ;;  %3370 = vmatpush.bf16.msrb.mxu1 %v11093_v49  ;;  %v6689_v20 = vld [vmem:[#allocation16 + $0x70] sm:$0xf]  ;;  %v7846_v49 = vld [vmem:[#allocation16 + $0x74] sm:$0xf0] }
 0x2ee   :  { %3383 = vmatpush.bf16.msrb.mxu2 %v11094_v50  ;;  %v6690_v25 = vor.u32 %v7846_v49, %v6689_v20  ;;  %v6866_v20 = vor.u32 %v7890_v63, %v6865_v7  ;;  %v7856_v49 = vld [vmem:[#allocation16 + $0xc4] sm:$0xf0]  ;;  %v7882_v7 = vld [vmem:[#allocation16 + $0x194] sm:$0xf0] }
 0x2ef   :  { %3396 = vmatpush.bf16.msrb.mxu3 %v11095_v8  ;;  %v11098_v63 = vld [vmem:[#allocation266_spill] sm:$0xff] }
 0x2f1   :  { %3358 = vmatpush.bf16.msrb.mxu0 %v11096_v1  ;;  %3371 = vmatpush.bf16.msrb.mxu1 %v9728_v9  ;;  %v7819_v9 = vld [vmem:[#allocation13 + $0x24] sm:$0xf] }
 0x2f2   :  { %3384 = vmatpush.bf16.msrb.mxu2 %v9730_v15  ;;  %v6617_v15 = vld [vmem:[#allocation13 + $0x28] sm:$0xf0] }
 0x2f3   :  { %3397 = vmatpush.bf16.msrb.mxu3 %v9733_v51  ;;  %v6582_v51 = vor.u32 %v7828_v14, %v6581_v47  ;;  %v6620_v17 = vor.u32 %v7819_v9, %v6617_v15  ;;  %v6745_v47 = vld [vmem:[#allocation16 + $0xe0] sm:$0xf]  ;;  %v6882_v14 = vor.u32 %v7894_v6, %v6881_v5  ;;  %v3420_v9 = vld [vmem:[#allocation5] sm:$0x3]  ;;  %v6657_v5 = vld [vmem:[#allocation16 + $0x30] sm:$0xf] }
 0x2f4   :  { %v7838_v6 = vld [vmem:[#allocation16 + $0x34] sm:$0xf0] }
 0x2f5   :  { %3359 = vmatpush.bf16.msrb.mxu0 %v9736_v58  ;;  %3372 = vmatpush.bf16.msrb.mxu1 %v9740_v2  ;;  %v7826_v58 = vld [vmem:[#allocation14 + $0x14] sm:$0xf0]  ;;  %v6575_v2 = vld [vmem:[#allocation14 + $0x18] sm:$0xf0]  ;;  %v3153_v45 = vpop.f32.mrf.mxu0  ;;  %v3166_v8 = vpop.f32.mrf.mxu1 }
 0x2f6   :  { %3385 = vmatpush.bf16.msrb.mxu2 %v9742_v55  ;;  %v7818_v55 = vld [vmem:[#allocation13 + $0x14] sm:$0xf0]  ;;  %v6574_v43 = vor.u32 %v7826_v58, %v6573_v28  ;;  %v6578_v4 = vor.u32 %v7825_v29, %v6575_v2  ;;  %v3154_v50 = vadd.f32 %v3153_v45, %v10133_v54  ;;  %v7844_v54 = vld [vmem:[#allocation16 + $0x64] sm:$0xf0]  ;;  %v6746_v58 = vor.u32 %v7860_v19, %v6745_v47  ;;  %v6673_v2 = vld [vmem:[#allocation16 + $0x50] sm:$0xf] }
 0x2f7   :  { %3398 = vmatpush.bf16.msrb.mxu3 %v9745_v18  ;;  %v7817_v18 = vld [vmem:[#allocation13 + $0x14] sm:$0xf]  ;;  %v6729_v45 = vld [vmem:[#allocation16 + $0xc0] sm:$0xf]  ;;  %v7886_v47 = vld [vmem:[#allocation16 + $0x1b4] sm:$0xf0] }
 0x2f8   :  { %3360 = vmatmul.bf16.vlgmr.msrb.gmra.mxu0 %v9822_v40  ;;  %3373 = vmatmul.bf16.vlgmr.msrb.gmra.mxu1 %v9826_v38  ;;  %v6608_v40 = vor.u32 %v7818_v55, %v6607_v33  ;;  %v6612_v62 = vor.u32 %v7817_v18, %v6609_v35  ;;  %v7816_v38 = vld [vmem:[#allocation13 + $0x4] sm:$0xf0]  ;;  %v10153_v11 = vadd.f32 %v3166_v8, %v3154_v50  ;;  %v7842_v33 = vld [vmem:[#allocation16 + $0x54] sm:$0xf0]  ;;  %v6737_v55 = vld [vmem:[#allocation16 + $0xd0] sm:$0xf] }
 0x2f9   :  { %3478 = vmatpush.bf16.msra.mxu0 %v6590_v21  ;;  %3491 = vmatpush.bf16.msra.mxu1 %v6594_v30  ;;  %v6600_v1 = vor.u32 %v7816_v38, %v6599_v52  ;;  %v6818_v30 = vor.u32 %v7878_v3, %v6817_v42  ;;  %v6874_v18 = vor.u32 %v7892_v41, %v6873_v31  ;;  %v7872_v50 = vld [vmem:[#allocation16 + $0x144] sm:$0xf0]  ;;  %v6857_v8 = vld [vmem:[#allocation16 + $0x1c0] sm:$0xf] }
 0x2fa   :  { %3547 = vmatpush.bf16.msra.mxu2 %v6624_v10  ;;  %3399 = vmatmul.bf16.vlgmr.msrb.gmra.mxu3 %v9873_v13  ;;  %v6753_v13 = vld [vmem:[#allocation16 + $0xf0] sm:$0xf]  ;;  %v6681_v10 = vld [vmem:[#allocation16 + $0x60] sm:$0xf]  ;;  %v6674_v52 = vor.u32 %v7842_v33, %v6673_v2  ;;  %v6802_v38 = vor.u32 %v7874_v16, %v6801_v46  ;;  %v7836_v31 = vld [vmem:[#allocation16 + $0x24] sm:$0xf0] }
 0x2fb   :  { %3560 = vmatpush.bf16.msra.mxu3 %v6628_v23  ;;  %3386 = vmatmul.bf16.vlgmr.msrb.gmra.mxu2 %v9869_v53  ;;  %v6601_v53 = vld [vmem:[#allocation13 + $0x8] sm:$0xf0]  ;;  %v6754_v21 = vor.u32 %v7862_v56, %v6753_v13  ;;  %v6809_v23 = vld [vmem:[#allocation16 + $0x160] sm:$0xf]  ;;  %v6641_v2 = vld [vmem:[#allocation16 + $0x10] sm:$0xf] }
 0x2fc   :  { %v6604_v32 = vor.u32 %v7815_v24, %v6601_v53  ;;  %v6810_v29 = vor.u32 %v7876_v0, %v6809_v23  ;;  %v6665_v24 = vld [vmem:[#allocation16 + $0x40] sm:$0xf]  ;;  %v7840_v53 = vld [vmem:[#allocation16 + $0x44] sm:$0xf0]  ;;  %v7834_v33 = vld [vmem:[#allocation16 + $0x14] sm:$0xf0] }
 0x2fd   :  { %3479 = vmatpush.bf16.msra.mxu0 %v6582_v51  ;;  %3492 = vmatpush.bf16.msra.mxu1 %v6586_v39  ;;  %v6682_v51 = vor.u32 %v7844_v54, %v6681_v10  ;;  %v3410_v39 = vld [vmem:[#allocation2] sm:$0x3]  ;;  %v3192_v28 = vpop.f32.mrf.mxu3  ;;  %v3168_v35 = vpop.f32.mrf.mxu1  ;;  %v6793_v13 = vld [vmem:[#allocation16 + $0x140] sm:$0xf]  ;;  %v6666_v42 = vor.u32 %v7840_v53, %v6665_v24  ;;  %v7870_v10 = vld [vmem:[#allocation16 + $0x134] sm:$0xf0] }
 0x2fe   :  { %3548 = vmatpush.bf16.msra.mxu2 %v6616_v12  ;;  %v3179_v15 = vpop.f32.mrf.mxu2  ;;  %v6849_v54 = vld [vmem:[#allocation16 + $0x1b0] sm:$0xf]  ;;  %v6649_v0 = vld [vmem:[#allocation16 + $0x20] sm:$0xf]  ;;  %v7850_v35 = vld [vmem:[#allocation16 + $0x94] sm:$0xf0] }
 0x2ff   :  { %3561 = vmatpush.bf16.msra.mxu3 %v6620_v17  ;;  %v3180_v12 = vadd.f32 %v3179_v15, %v768_v61  ;;  %v3155_v17 = vpop.f32.mrf.mxu0  ;;  %v3411_v61 = vpack.c.bf16 %v3410_v39, %v3410_v39  ;;  %v6713_v41 = vld [vmem:[#allocation16 + $0xa0] sm:$0xf]  ;;  %v7852_v15 = vld [vmem:[#allocation16 + $0xa4] sm:$0xf0]  ;;  %v7866_v46 = vld [vmem:[#allocation16 + $0x114] sm:$0xf0] }
 0x300   :  { %v7868_v39 = vld [vmem:[#allocation16 + $0x124] sm:$0xf0]  ;;  %v6697_v53 = vld [vmem:[#allocation16 + $0x80] sm:$0xf] }
 0x301   :  { %3480 = vmatpush.bf16.msra.mxu0 %v6574_v43  ;;  %3493 = vmatpush.bf16.msra.mxu1 %v6578_v4  ;;  %v7858_v43 = vld [vmem:[#allocation16 + $0xd4] sm:$0xf0]  ;;  %v3421_v4 = vpack.c.bf16 %v3420_v9, %v3420_v9  ;;  %v6850_v9 = vor.u32 %v7886_v47, %v6849_v54  ;;  %v11097_v16 = vld [vmem:[#allocation236_spill] sm:$0xff]  ;;  %v6755_v54 = vld [vmem:[#allocation16 + $0xf8] sm:$0xf0] }
 0x302   :  { %3549 = vmatpush.bf16.msra.mxu2 %v6608_v40  ;;  %v10157_v40 = vadd.f32 %v3192_v28, %v3180_v12  ;;  %v6841_v12 = vld [vmem:[#allocation16 + $0x1a0] sm:$0xf]  ;;  %v7884_v28 = vld [vmem:[#allocation16 + $0x1a4] sm:$0xf0]  ;;  %8096 = vtanh.f32 %v11097_v16 }
 0x303   :  { %3562 = vmatpush.bf16.msra.mxu3 %v6612_v62  ;;  %v6738_v62 = vor.u32 %v7858_v43, %v6737_v55  ;;  %v6705_v55 = vld [vmem:[#allocation16 + $0x90] sm:$0xf]  ;;  %8098 = vtanh.f32 %v11098_v63  ;;  %v7906_v63 = vld [vmem:[#allocation16 + $0x254] sm:$0xf0] }
 0x304   :  { %v6769_v43 = vld [vmem:[#allocation16 + $0x110] sm:$0xf]  ;;  %8100 = vtanh.f32 %v9768_v60 }
 0x305   :  { %3481 = vmatpush.bf16.msra.mxu0 %v6566_v37  ;;  %3494 = vmatpush.bf16.msra.mxu1 %v6570_v59  ;;  %v7888_v37 = vld [vmem:[#allocation16 + $0x1c4] sm:$0xf0]  ;;  %v3194_v3 = vpop.f32.mrf.mxu3  ;;  %v6730_v59 = vor.u32 %v7856_v49, %v6729_v45  ;;  %v6770_v24 = vor.u32 %v7866_v46, %v6769_v43  ;;  %8102 = vtanh.f32 %v9852_v27 }
 0x306   :  { %3550 = vmatpush.bf16.msra.mxu2 %v6600_v1  ;;  %v3181_v56 = vpop.f32.mrf.mxu2  ;;  %v6794_v1 = vor.u32 %v7872_v50, %v6793_v13  ;;  %v7848_v45 = vld [vmem:[#allocation16 + $0x84] sm:$0xf0]  ;;  %v6825_v50 = vld [vmem:[#allocation16 + $0x180] sm:$0xf]  ;;  %v7009_v3 = vld [vmem:[#allocation16 + $0x2f0] sm:$0xf]  ;;  %8104 = vtanh.f32 %v9929_v22 }
 0x307   :  { %3563 = vmatpush.bf16.msra.mxu3 %v6604_v32  ;;  %v6721_v32 = vld [vmem:[#allocation16 + $0xb0] sm:$0xf]  ;;  %v7864_v13 = vld [vmem:[#allocation16 + $0x104] sm:$0xf0]  ;;  %8106 = vtanh.f32 %v9977_v34  ;;  %v7877_v22 = vld [vmem:[#allocation16 + $0x174] sm:$0xf] }
 0x308   :  { %6595 = vmatmul.msk.bf16.vlgmr.msra.gmra.mxu0 %vm3470_vm2, %v3421_v4  ;;  %6596 = vmatmul.msk.bf16.vlgmr.msra.gmra.mxu1 %vm3470_vm2, %v3421_v4  ;;  %v6833_v4 = vld [vmem:[#allocation16 + $0x190] sm:$0xf]  ;;  %8108 = vtanh.f32 %v10046_v48  ;;  %v7976_v48 = vld [vmem:[#allocation17 + $0x184] sm:$0xf0] }
 0x309   :  { %4151 = vmatpush.bf16.msrb.mxu0 %v6690_v25  ;;  %4164 = vmatpush.bf16.msrb.mxu1 %v6754_v21  ;;  %v6858_v25 = vor.u32 %v7888_v37, %v6857_v8  ;;  %v7854_v21 = vld [vmem:[#allocation16 + $0xb4] sm:$0xf0]  ;;  %v6834_v49 = vor.u32 %v7882_v7, %v6833_v4  ;;  %v7880_v8 = vld [vmem:[#allocation16 + $0x184] sm:$0xf0]  ;;  %v6945_v56 = vld [vmem:[#allocation16 + $0x270] sm:$0xf]  ;;  %8110 = vtanh.f32 %v10093_v36 }
 0x30a   :  { %4177 = vmatpush.bf16.msrb.mxu2 %v6818_v30  ;;  %6630 = vmatmul.msk.bf16.vlgmr.msra.gmra.mxu3 %vm3470_vm2, %v3411_v61  ;;  %v6785_v30 = vld [vmem:[#allocation16 + $0x130] sm:$0xf]  ;;  %v6722_v19 = vor.u32 %v7854_v21, %v6721_v32  ;;  %v6691_v32 = vld [vmem:[#allocation16 + $0x78] sm:$0xf0]  ;;  %v6698_v21 = vor.u32 %v7848_v45, %v6697_v53  ;;  %v7841_v53 = vld [vmem:[#allocation16 + $0x54] sm:$0xf]  ;;  %8112 = vtanh.f32 %v10153_v11 }
 0x30b   :  { %4190 = vmatpush.bf16.msrb.mxu3 %v6882_v14  ;;  %6629 = vmatmul.msk.bf16.vlgmr.msra.gmra.mxu2 %vm3470_vm2, %v3411_v61  ;;  %v6658_v14 = vor.u32 %v7838_v6, %v6657_v5  ;;  %v6786_v23 = vor.u32 %v7870_v10, %v6785_v30  ;;  %v6642_v61 = vor.u32 %v7834_v33, %v6641_v2  ;;  %v7926_v5 = vld [vmem:[#allocation16 + $0x2f4] sm:$0xf0]  ;;  %v7845_v6 = vld [vmem:[#allocation16 + $0x74] sm:$0xf]  ;;  %v6929_v7 = vld [vmem:[#allocation16 + $0x250] sm:$0xf] }
 0x30c   :  { %v7861_v10 = vld [vmem:[#allocation16 + $0xf4] sm:$0xf]  ;;  %v6675_v45 = vld [vmem:[#allocation16 + $0x58] sm:$0xf0]  ;;  %v8006_v36 = vld [vmem:[#allocation17 + $0x274] sm:$0xf0] }
 0x30d   :  { %4152 = vmatpush.bf16.msrb.mxu0 %v6682_v51  ;;  %4165 = vmatpush.bf16.msrb.mxu1 %v6746_v58  ;;  %v6777_v51 = vld [vmem:[#allocation16 + $0x120] sm:$0xf]  ;;  %v6650_v58 = vor.u32 %v7836_v31, %v6649_v0  ;;  %v7010_v0 = vor.u32 %v7926_v5, %v7009_v3  ;;  %v6667_v5 = vld [vmem:[#allocation16 + $0x48] sm:$0xf0] }
 0x30e   :  { %4178 = vmatpush.bf16.msrb.mxu2 %v6810_v29  ;;  %v6714_v29 = vor.u32 %v7852_v15, %v6713_v41  ;;  %v6778_v17 = vor.u32 %v7868_v39, %v6777_v51  ;;  %v6937_v31 = vld [vmem:[#allocation16 + $0x260] sm:$0xf]  ;;  %v7908_v41 = vld [vmem:[#allocation16 + $0x264] sm:$0xf0]  ;;  %v6758_v15 = vor.u32 %v7861_v10, %v6755_v54  ;;  %v7843_v39 = vld [vmem:[#allocation16 + $0x64] sm:$0xf] }
 0x30f   :  { %4191 = vmatpush.bf16.msrb.mxu3 %v6874_v18  ;;  %v6842_v18 = vor.u32 %v7884_v28, %v6841_v12  ;;  %v7924_v51 = vld [vmem:[#allocation16 + $0x2e4] sm:$0xf0]  ;;  %v6683_v12 = vld [vmem:[#allocation16 + $0x68] sm:$0xf0]  ;;  %v6985_v3 = vld [vmem:[#allocation16 + $0x2c0] sm:$0xf] }
 0x310   :  { %v6686_v16 = vor.u32 %v7843_v39, %v6683_v12  ;;  %v6905_v39 = vld [vmem:[#allocation16 + $0x220] sm:$0xf]  ;;  %v7900_v12 = vld [vmem:[#allocation16 + $0x224] sm:$0xf0] }
 0x311   :  { %4153 = vmatpush.bf16.msrb.mxu0 %v6674_v52  ;;  %4166 = vmatpush.bf16.msrb.mxu1 %v6738_v62  ;;  %v6633_v52 = vld [vmem:[#allocation16] sm:$0xf]  ;;  %v7832_v62 = vld [vmem:[#allocation16 + $0x4] sm:$0xf0] }
 0x312   :  { %4179 = vmatpush.bf16.msrb.mxu2 %v6802_v38  ;;  %v6706_v38 = vor.u32 %v7850_v35, %v6705_v55 }
 0x313   :  { %4192 = vmatpush.bf16.msrb.mxu3 %v6866_v20  ;;  %v6761_v20 = vld [vmem:[#allocation16 + $0x100] sm:$0xf] }
 0x314   :  { %v6762_v30 = vor.u32 %v7864_v13, %v6761_v20  ;;  %v6739_v13 = vld [vmem:[#allocation16 + $0xd8] sm:$0xf0] }
 0x315   :  { %4154 = vmatpush.bf16.msrb.mxu0 %v6666_v42  ;;  %4167 = vmatpush.bf16.msrb.mxu1 %v6730_v59  ;;  %v3205_v37 = vpop.f32.mrf.mxu0  ;;  %v7910_v42 = vld [vmem:[#allocation16 + $0x274] sm:$0xf0]  ;;  %v3218_v59 = vpop.f32.mrf.mxu1 }
 0x316   :  { %4180 = vmatpush.bf16.msrb.mxu2 %v6794_v1  ;;  %v3206_v60 = vadd.f32 %v3205_v37, %v10157_v40  ;;  %v6634_v1 = vor.u32 %v7832_v62, %v6633_v52  ;;  %v6694_v40 = vor.u32 %v7845_v6, %v6691_v32  ;;  %v6678_v37 = vor.u32 %v7841_v53, %v6675_v45  ;;  %v7855_v6 = vld [vmem:[#allocation16 + $0xc4] sm:$0xf]  ;;  %v6731_v32 = vld [vmem:[#allocation16 + $0xc8] sm:$0xf0]  ;;  %v6643_v53 = vld [vmem:[#allocation16 + $0x18] sm:$0xf0] }
 0x317   :  { %4193 = vmatpush.bf16.msrb.mxu3 %v6858_v25  ;;  %v8097_v25 = vpop.eup %8096  ;;  %v7849_v45 = vld [vmem:[#allocation16 + $0x94] sm:$0xf] }
 0x318   :  { %v8099_v27 = vpop.eup %8098  ;;  %v3219_v47 = vadd.f32 %v3218_v59, %v3206_v60  ;;  %v7920_v59 = vld [vmem:[#allocation16 + $0x2c4] sm:$0xf0] }
 0x319   :  { %4155 = vmatpush.bf16.msrb.mxu0 %v6658_v14  ;;  %4168 = vmatpush.bf16.msrb.mxu1 %v6722_v19  ;;  %v6826_v14 = vor.u32 %v7880_v8, %v6825_v50  ;;  %v6946_v19 = vor.u32 %v7910_v42, %v6945_v56  ;;  %v10170_v2 = vpack.c.bf16 %v8099_v27, %v8099_v27  ;;  %v6921_v56 = vld [vmem:[#allocation16 + $0x240] sm:$0xf]  ;;  %v7904_v42 = vld [vmem:[#allocation16 + $0x244] sm:$0xf0]  ;;  %v6913_v27 = vld [vmem:[#allocation16 + $0x230] sm:$0xf] }
 0x31a   :  { %4181 = vmatpush.bf16.msrb.mxu2 %v6786_v23  ;;  %v8101_v23 = vpop.eup %8100  ;;  %v6930_v50 = vor.u32 %v7906_v63, %v6929_v7  ;;  %v6986_v10 = vor.u32 %v7920_v59, %v6985_v3  ;;  %v6897_v7 = vld [vmem:[#allocation16 + $0x210] sm:$0xf]  ;;  %v7898_v63 = vld [vmem:[#allocation16 + $0x214] sm:$0xf0]  ;;  %v7912_v3 = vld [vmem:[#allocation16 + $0x284] sm:$0xf0] }
 0x31b   :  { %4194 = vmatpush.bf16.msrb.mxu3 %v6850_v9  ;;  %v7001_v9 = vld [vmem:[#allocation16 + $0x2e0] sm:$0xf]  ;;  %v8103_v28 = vpop.eup %8102  ;;  %v10172_v33 = vpack.c.bf16 %v8101_v23, %v8101_v23  ;;  %v7918_v23 = vld [vmem:[#allocation16 + $0x2b4] sm:$0xf0] }
 0x31c   :  { %v7002_v46 = vor.u32 %v7924_v51, %v7001_v9  ;;  %v10174_v52 = vpack.c.bf16 %v8103_v28, %v8103_v28  ;;  %v6969_v28 = vld [vmem:[#allocation16 + $0x2a0] sm:$0xf] }
 0x31d   :  { %4156 = vmatpush.bf16.msrb.mxu0 %v6650_v58  ;;  %4169 = vmatpush.bf16.msrb.mxu1 %v6714_v29  ;;  %v10168_v58 = vpack.c.bf16 %v8097_v25, %v8097_v25  ;;  %v7859_v29 = vld [vmem:[#allocation16 + $0xe4] sm:$0xf]  ;;  %v3244_v43 = vpop.f32.mrf.mxu3  ;;  %v3207_v4 = vpop.f32.mrf.mxu0 }
 0x31e   :  { %4182 = vmatpush.bf16.msrb.mxu2 %v6778_v17  ;;  %v6747_v17 = vld [vmem:[#allocation16 + $0xe8] sm:$0xf0]  ;;  %v3231_v55 = vpop.f32.mrf.mxu2 }
 0x31f   :  { %4195 = vmatpush.bf16.msrb.mxu3 %v6842_v18  ;;  %v6938_v18 = vor.u32 %v7908_v41, %v6937_v31  ;;  %v3232_v35 = vadd.f32 %v3231_v55, %v3219_v47  ;;  %v6750_v62 = vor.u32 %v7859_v29, %v6747_v17  ;;  %v7902_v47 = vld [vmem:[#allocation16 + $0x234] sm:$0xf0]  ;;  %v7853_v31 = vld [vmem:[#allocation16 + $0xb4] sm:$0xf]  ;;  %v6723_v41 = vld [vmem:[#allocation16 + $0xb8] sm:$0xf0] }
 0x320   :  { %v6914_v9 = vor.u32 %v7902_v47, %v6913_v27  ;;  %v6726_v29 = vor.u32 %v7853_v31, %v6723_v41  ;;  %v7916_v17 = vld [vmem:[#allocation16 + $0x2a4] sm:$0xf0]  ;;  %v7835_v55 = vld [vmem:[#allocation16 + $0x24] sm:$0xf]  ;;  %v7909_v27 = vld [vmem:[#allocation16 + $0x274] sm:$0xf] }
 0x321   :  { %4157 = vmatpush.bf16.msrb.mxu0 %v6642_v61  ;;  %4170 = vmatpush.bf16.msrb.mxu1 %v6706_v38  ;;  %v6993_v61 = vld [vmem:[#allocation16 + $0x2d0] sm:$0xf]  ;;  %v3220_v38 = vpop.f32.mrf.mxu1  ;;  %v10179_v20 = vadd.f32 %v3244_v43, %v3232_v35  ;;  %v7851_v35 = vld [vmem:[#allocation16 + $0xa4] sm:$0xf]  ;;  %v6715_v43 = vld [vmem:[#allocation16 + $0xa8] sm:$0xf0] }
 0x322   :  { %4183 = vmatpush.bf16.msrb.mxu2 %v6770_v24  ;;  %v7922_v24 = vld [vmem:[#allocation16 + $0x2d4] sm:$0xf0]  ;;  %v6947_v47 = vld [vmem:[#allocation16 + $0x278] sm:$0xf0] }
 0x323   :  { %4196 = vmatpush.bf16.msrb.mxu3 %v6834_v49  ;;  %v7857_v49 = vld [vmem:[#allocation16 + $0xd4] sm:$0xf]  ;;  %v6994_v8 = vor.u32 %v7922_v24, %v6993_v61  ;;  %v6961_v61 = vld [vmem:[#allocation16 + $0x290] sm:$0xf]  ;;  %v7914_v38 = vld [vmem:[#allocation16 + $0x294] sm:$0xf0]  ;;  %8114 = vtanh.f32 %v10179_v20 }
 0x324   :  { %v6742_v60 = vor.u32 %v7857_v49, %v6739_v13  ;;  %v7833_v24 = vld [vmem:[#allocation16 + $0x14] sm:$0xf]  ;;  %v6707_v49 = vld [vmem:[#allocation16 + $0x98] sm:$0xf0]  ;;  %v6898_v13 = vor.u32 %v7898_v63, %v6897_v7 }
 0x325   :  { %4158 = vmatpush.bf16.msrb.mxu0 %v6634_v1  ;;  %4171 = vmatpush.bf16.msrb.mxu1 %v6698_v21  ;;  %v7839_v1 = vld [vmem:[#allocation16 + $0x44] sm:$0xf]  ;;  %v6922_v21 = vor.u32 %v7904_v42, %v6921_v56  ;;  %v6646_v56 = vor.u32 %v7833_v24, %v6643_v53  ;;  %v6953_v42 = vld [vmem:[#allocation16 + $0x280] sm:$0xf]  ;;  %v6710_v59 = vor.u32 %v7849_v45, %v6707_v49  ;;  %v7873_v53 = vld [vmem:[#allocation16 + $0x154] sm:$0xf] }
 0x326   :  { %4184 = vmatpush.bf16.msrb.mxu2 %v6762_v30  ;;  %v3233_v25 = vpop.f32.mrf.mxu2  ;;  %v3246_v30 = vpop.f32.mrf.mxu3  ;;  %v6670_v54 = vor.u32 %v7839_v1, %v6667_v5  ;;  %v6635_v1 = vld [vmem:[#allocation16 + $0x8] sm:$0xf0]  ;;  %v7847_v5 = vld [vmem:[#allocation16 + $0x84] sm:$0xf]  ;;  %v6803_v45 = vld [vmem:[#allocation16 + $0x158] sm:$0xf0] }
 0x327   :  { %4197 = vmatpush.bf16.msrb.mxu3 %v6826_v14  ;;  %v6977_v14 = vld [vmem:[#allocation16 + $0x2b0] sm:$0xf]  ;;  %v6819_v25 = vld [vmem:[#allocation16 + $0x178] sm:$0xf0]  ;;  %v7889_v49 = vld [vmem:[#allocation16 + $0x1d4] sm:$0xf] }
 0x328   :  { %4159 = vmatmul.bf16.vlgmr.msrb.gmra.mxu0 %v10168_v58  ;;  %4172 = vmatmul.bf16.vlgmr.msrb.gmra.mxu1 %v10170_v2 }
 0x329   :  { %4203 = vmatpush.bf16.msra.mxu0 %v6946_v19  ;;  %4216 = vmatpush.bf16.msra.mxu1 %v7010_v0  ;;  %v6734_v19 = vor.u32 %v7855_v6, %v6731_v32  ;;  %v7837_v0 = vld [vmem:[#allocation16 + $0x34] sm:$0xf]  ;;  %v6699_v6 = vld [vmem:[#allocation16 + $0x88] sm:$0xf0] }
 0x32a   :  { %4229 = vmatpush.bf16.msra.mxu2 %v6694_v40  ;;  %4198 = vmatmul.bf16.vlgmr.msrb.gmra.mxu3 %v10174_v52  ;;  %v6659_v40 = vld [vmem:[#allocation16 + $0x38] sm:$0xf0]  ;;  %v6702_v41 = vor.u32 %v7847_v5, %v6699_v6  ;;  %v7871_v6 = vld [vmem:[#allocation16 + $0x144] sm:$0xf] }
 0x32b   :  { %4242 = vmatpush.bf16.msra.mxu3 %v6758_v15  ;;  %4185 = vmatmul.bf16.vlgmr.msrb.gmra.mxu2 %v10172_v33  ;;  %v6978_v15 = vor.u32 %v7918_v23, %v6977_v14  ;;  %v6662_v51 = vor.u32 %v7837_v0, %v6659_v40  ;;  %v6954_v14 = vor.u32 %v7912_v3, %v6953_v42  ;;  %v7925_v23 = vld [vmem:[#allocation16 + $0x2f4] sm:$0xf]  ;;  %v7011_v0 = vld [vmem:[#allocation16 + $0x2f8] sm:$0xf0]  ;;  %v8105_v40 = vpop.eup %8104 }
 0x32c   :  { %v7921_v3 = vld [vmem:[#allocation16 + $0x2d4] sm:$0xf] }
 0x32d   :  { %4204 = vmatpush.bf16.msra.mxu0 %v6938_v18  ;;  %4217 = vmatpush.bf16.msra.mxu1 %v7002_v46  ;;  %v6651_v18 = vld [vmem:[#allocation16 + $0x28] sm:$0xf0]  ;;  %v6906_v46 = vor.u32 %v7900_v12, %v6905_v39  ;;  %v6950_v39 = vor.u32 %v7909_v27, %v6947_v47 }
 0x32e   :  { %4230 = vmatpush.bf16.msra.mxu2 %v6686_v16  ;;  %v6970_v16 = vor.u32 %v7916_v17, %v6969_v28  ;;  %v6654_v4 = vor.u32 %v7835_v55, %v6651_v18  ;;  %v6811_v12 = vld [vmem:[#allocation16 + $0x168] sm:$0xf0]  ;;  %v7891_v28 = vld [vmem:[#allocation16 + $0x1e4] sm:$0xf] }
 0x32f   :  { %4243 = vmatpush.bf16.msra.mxu3 %v6750_v62  ;;  %v6718_v62 = vor.u32 %v7851_v35, %v6715_v43  ;;  %v6875_v17 = vld [vmem:[#allocation16 + $0x1e8] sm:$0xf0]  ;;  %v7907_v55 = vld [vmem:[#allocation16 + $0x264] sm:$0xf] }
 0x330   :  { %v6939_v18 = vld [vmem:[#allocation16 + $0x268] sm:$0xf0]  ;;  %v7923_v35 = vld [vmem:[#allocation16 + $0x2e4] sm:$0xf] }
 0x331   :  { %4205 = vmatpush.bf16.msra.mxu0 %v6930_v50  ;;  %4218 = vmatpush.bf16.msra.mxu1 %v6994_v8  ;;  %v6889_v50 = vld [vmem:[#allocation16 + $0x200] sm:$0xf]  ;;  %v7896_v8 = vld [vmem:[#allocation16 + $0x204] sm:$0xf0]  ;;  %v7003_v43 = vld [vmem:[#allocation16 + $0x2e8] sm:$0xf0] }
 0x332   :  { %4231 = vmatpush.bf16.msra.mxu2 %v6678_v37  ;;  %v6962_v37 = vor.u32 %v7914_v38, %v6961_v61  ;;  %v6942_v38 = vor.u32 %v7907_v55, %v6939_v18  ;;  %v6843_v18 = vld [vmem:[#allocation16 + $0x1a8] sm:$0xf0] }
 0x333   :  { %4244 = vmatpush.bf16.msra.mxu3 %v6742_v60  ;;  %v7831_v60 = vld [vmem:[#allocation16 + $0x4] sm:$0xf] }
 0x335   :  { %4206 = vmatpush.bf16.msra.mxu0 %v6922_v21  ;;  %4219 = vmatpush.bf16.msra.mxu1 %v6986_v10  ;;  %v3257_v32 = vpop.f32.mrf.mxu0  ;;  %v7893_v21 = vld [vmem:[#allocation16 + $0x1f4] sm:$0xf]  ;;  %v3270_v30 = vpop.f32.mrf.mxu1  ;;  %v6890_v10 = vor.u32 %v7896_v8, %v6889_v50  ;;  %v6867_v8 = vld [vmem:[#allocation16 + $0x1d8] sm:$0xf0] }
 0x336   :  { %4232 = vmatpush.bf16.msra.mxu2 %v6670_v54  ;;  %v3258_v34 = vadd.f32 %v3257_v32, %v769_v26  ;;  %v6883_v54 = vld [vmem:[#allocation16 + $0x1f8] sm:$0xf0]  ;;  %v7875_v26 = vld [vmem:[#allocation16 + $0x164] sm:$0xf]  ;;  %v6795_v32 = vld [vmem:[#allocation16 + $0x148] sm:$0xf0] }
 0x337   :  { %4245 = vmatpush.bf16.msra.mxu3 %v6734_v19  ;;  %v6638_v19 = vor.u32 %v7831_v60, %v6635_v1  ;;  %v6814_v7 = vor.u32 %v7875_v26, %v6811_v12  ;;  %v6995_v60 = vld [vmem:[#allocation16 + $0x2d8] sm:$0xf0]  ;;  %v6870_v1 = vor.u32 %v7889_v49, %v6867_v8  ;;  %v6798_v27 = vor.u32 %v7871_v6, %v6795_v32  ;;  %v7913_v8 = vld [vmem:[#allocation16 + $0x294] sm:$0xf]  ;;  %v6827_v6 = vld [vmem:[#allocation16 + $0x188] sm:$0xf0] }
 0x338   :  { %v3271_v31 = vadd.f32 %v3270_v30, %v3258_v34  ;;  %v7903_v34 = vld [vmem:[#allocation16 + $0x244] sm:$0xf]  ;;  %v6835_v49 = vld [vmem:[#allocation16 + $0x198] sm:$0xf0] }
 0x339   :  { %4207 = vmatpush.bf16.msra.mxu0 %v6914_v9  ;;  %4220 = vmatpush.bf16.msra.mxu1 %v6978_v15  ;;  %v6822_v9 = vor.u32 %v7877_v22, %v6819_v25  ;;  %v8107_v15 = vpop.eup %8106  ;;  %v7887_v22 = vld [vmem:[#allocation16 + $0x1c4] sm:$0xf]  ;;  %v6998_v25 = vor.u32 %v7921_v3, %v6995_v60  ;;  %v6763_v60 = vld [vmem:[#allocation16 + $0x108] sm:$0xf0] }
 0x33a   :  { %4233 = vmatpush.bf16.msra.mxu2 %v6662_v51  ;;  %v6886_v51 = vor.u32 %v7893_v21, %v6883_v54  ;;  %v6859_v21 = vld [vmem:[#allocation16 + $0x1c8] sm:$0xf0]  ;;  %v7919_v30 = vld [vmem:[#allocation16 + $0x2c4] sm:$0xf] }
 0x33b   :  { %4246 = vmatpush.bf16.msra.mxu3 %v6726_v29  ;;  %v7014_v29 = vor.u32 %v7925_v23, %v7011_v0  ;;  %v6862_v47 = vor.u32 %v7887_v22, %v6859_v21  ;;  %v6787_v23 = vld [vmem:[#allocation16 + $0x138] sm:$0xf0]  ;;  %v7885_v0 = vld [vmem:[#allocation16 + $0x1b4] sm:$0xf]  ;;  %v7863_v3 = vld [vmem:[#allocation16 + $0x104] sm:$0xf] }
 0x33c   :  { %v7895_v32 = vld [vmem:[#allocation16 + $0x204] sm:$0xf] }
 0x33d   :  { %4208 = vmatpush.bf16.msra.mxu0 %v6906_v46  ;;  %4221 = vmatpush.bf16.msra.mxu1 %v6970_v16  ;;  %v10186_v46 = vpack.c.bf16 %v8105_v40, %v8105_v40  ;;  %v10188_v16 = vpack.c.bf16 %v8107_v15, %v8107_v15  ;;  %v3296_v61 = vpop.f32.mrf.mxu3  ;;  %v3259_v24 = vpop.f32.mrf.mxu0  ;;  %v7917_v15 = vld [vmem:[#allocation16 + $0x2b4] sm:$0xf]  ;;  %v7911_v21 = vld [vmem:[#allocation16 + $0x284] sm:$0xf] }
 0x33e   :  { %4234 = vmatpush.bf16.msra.mxu2 %v6654_v4  ;;  %v3283_v4 = vpop.f32.mrf.mxu2  ;;  %v3272_v50 = vpop.f32.mrf.mxu1  ;;  %v6771_v24 = vld [vmem:[#allocation16 + $0x118] sm:$0xf0] }
 0x33f   :  { %4247 = vmatpush.bf16.msra.mxu3 %v6718_v62  ;;  %v3284_v63 = vadd.f32 %v3283_v4, %v3271_v31  ;;  %v6878_v62 = vor.u32 %v7891_v28, %v6875_v17  ;;  %v6851_v31 = vld [vmem:[#allocation16 + $0x1b8] sm:$0xf0]  ;;  %v7867_v28 = vld [vmem:[#allocation16 + $0x124] sm:$0xf] }
 0x340   :  { %v6854_v26 = vor.u32 %v7885_v0, %v6851_v31  ;;  %v7883_v17 = vld [vmem:[#allocation16 + $0x1a4] sm:$0xf]  ;;  %v6899_v50 = vld [vmem:[#allocation16 + $0x218] sm:$0xf0]  ;;  %v7990_v31 = vld [vmem:[#allocation17 + $0x1f4] sm:$0xf0] }
 0x341   :  { %4209 = vmatpush.bf16.msra.mxu0 %v6898_v13  ;;  %4222 = vmatpush.bf16.msra.mxu1 %v6962_v37  ;;  %v7006_v13 = vor.u32 %v7923_v35, %v7003_v43  ;;  %v7905_v37 = vld [vmem:[#allocation16 + $0x254] sm:$0xf]  ;;  %v10193_v42 = vadd.f32 %v3296_v61, %v3284_v63  ;;  %v7899_v35 = vld [vmem:[#allocation16 + $0x224] sm:$0xf]  ;;  %v6907_v43 = vld [vmem:[#allocation16 + $0x228] sm:$0xf0]  ;;  %v6846_v61 = vor.u32 %v7883_v17, %v6843_v18 }
 0x342   :  { %4235 = vmatpush.bf16.msra.mxu2 %v6646_v56  ;;  %v6931_v56 = vld [vmem:[#allocation16 + $0x258] sm:$0xf0]  ;;  %v7915_v4 = vld [vmem:[#allocation16 + $0x2a4] sm:$0xf]  ;;  %v7193_v17 = vld [vmem:[#allocation17 + $0x160] sm:$0xf] }
 0x343   :  { %4248 = vmatpush.bf16.msra.mxu3 %v6710_v59  ;;  %v6806_v59 = vor.u32 %v7873_v53, %v6803_v45  ;;  %v6934_v5 = vor.u32 %v7905_v37, %v6931_v56  ;;  %v7881_v53 = vld [vmem:[#allocation16 + $0x194] sm:$0xf]  ;;  %v6963_v37 = vld [vmem:[#allocation16 + $0x298] sm:$0xf0]  ;;  %v7257_v18 = vld [vmem:[#allocation17 + $0x1e0] sm:$0xf] }
 0x344   :  { %v6966_v22 = vor.u32 %v7913_v8, %v6963_v37  ;;  %v7970_v8 = vld [vmem:[#allocation17 + $0x154] sm:$0xf0]  ;;  %v7249_v37 = vld [vmem:[#allocation17 + $0x1d0] sm:$0xf] }
 0x345   :  { %4210 = vmatpush.bf16.msra.mxu0 %v6890_v10  ;;  %4223 = vmatpush.bf16.msra.mxu1 %v6954_v14  ;;  %v6987_v10 = vld [vmem:[#allocation16 + $0x2c8] sm:$0xf0] }
 0x346   :  { %4236 = vmatpush.bf16.msra.mxu2 %v6638_v19  ;;  %v3285_v54 = vpop.f32.mrf.mxu2  ;;  %v7869_v19 = vld [vmem:[#allocation16 + $0x134] sm:$0xf]  ;;  %v6990_v40 = vor.u32 %v7919_v30, %v6987_v10  ;;  %v7073_v30 = vld [vmem:[#allocation17 + $0x70] sm:$0xf]  ;;  %v7942_v10 = vld [vmem:[#allocation17 + $0x74] sm:$0xf0] }
 0x347   :  { %4249 = vmatpush.bf16.msra.mxu3 %v6702_v41  ;;  %v7901_v41 = vld [vmem:[#allocation16 + $0x234] sm:$0xf]  ;;  %v7137_v54 = vld [vmem:[#allocation17 + $0xf0] sm:$0xf] }
 0x348   :  { %4211 = vmatmul.bf16.vlgmr.msra.gmra.mxu0 %v10186_v46  ;;  %4224 = vmatmul.bf16.vlgmr.msra.gmra.mxu1 %v10188_v16 }
 0x349   :  { %4255 = vmatpush.bf16.msrb.mxu0 %v6822_v9  ;;  %4268 = vmatpush.bf16.msrb.mxu1 %v6886_v51  ;;  %v6915_v9 = vld [vmem:[#allocation16 + $0x238] sm:$0xf0] }
 0x34a   :  { %4281 = vmatpush.bf16.msrb.mxu2 %v6950_v39  ;;  %4250 = vmatmul.bf16.vlgmr.msra.gmra.mxu3 %v10170_v2  ;;  %v3298_v2 = vpop.f32.mrf.mxu3  ;;  %v6979_v51 = vld [vmem:[#allocation16 + $0x2b8] sm:$0xf0]  ;;  %v6790_v39 = vor.u32 %v7869_v19, %v6787_v23  ;;  %v6918_v12 = vor.u32 %v7901_v41, %v6915_v9  ;;  %v7974_v19 = vld [vmem:[#allocation17 + $0x174] sm:$0xf0]  ;;  %v7074_v9 = vor.u32 %v7942_v10, %v7073_v30 }
 0x34b   :  { %4294 = vmatpush.bf16.msrb.mxu3 %v7014_v29  ;;  %4237 = vmatmul.bf16.vlgmr.msra.gmra.mxu2 %v10168_v58  ;;  %v6923_v58 = vld [vmem:[#allocation16 + $0x248] sm:$0xf0]  ;;  %v6982_v55 = vor.u32 %v7917_v15, %v6979_v51  ;;  %v6766_v2 = vor.u32 %v7863_v3, %v6763_v60 }
 0x34c   :  { %v6926_v14 = vor.u32 %v7903_v34, %v6923_v58  ;;  %v6779_v29 = vld [vmem:[#allocation16 + $0x128] sm:$0xf0] }
 0x34d   :  { %4256 = vmatpush.bf16.msrb.mxu0 %v6814_v7  ;;  %4269 = vmatpush.bf16.msrb.mxu1 %v6878_v62  ;;  %v6971_v7 = vld [vmem:[#allocation16 + $0x2a8] sm:$0xf0]  ;;  %v6782_v63 = vor.u32 %v7867_v28, %v6779_v29  ;;  %v6910_v62 = vor.u32 %v7899_v35, %v6907_v43  ;;  %v7956_v29 = vld [vmem:[#allocation17 + $0xe4] sm:$0xf0] }
 0x34e   :  { %4282 = vmatpush.bf16.msrb.mxu2 %v6942_v38  ;;  %v7865_v38 = vld [vmem:[#allocation16 + $0x114] sm:$0xf]  ;;  %v6974_v45 = vor.u32 %v7915_v4, %v6971_v7  ;;  %v6955_v34 = vld [vmem:[#allocation16 + $0x288] sm:$0xf0]  ;;  %v7988_v35 = vld [vmem:[#allocation17 + $0x1e4] sm:$0xf0] }
 0x34f   :  { %4295 = vmatpush.bf16.msrb.mxu3 %v7006_v13  ;;  %v7897_v13 = vld [vmem:[#allocation16 + $0x214] sm:$0xf]  ;;  %v6774_v56 = vor.u32 %v7865_v38, %v6771_v24  ;;  %v6958_v41 = vor.u32 %v7911_v21, %v6955_v34  ;;  %v7057_v38 = vld [vmem:[#allocation17 + $0x50] sm:$0xf]  ;;  %v7938_v24 = vld [vmem:[#allocation17 + $0x54] sm:$0xf0] }
 0x350   :  { %v7058_v3 = vor.u32 %v7938_v24, %v7057_v38  ;;  %v7089_v38 = vld [vmem:[#allocation17 + $0x90] sm:$0xf] }
 0x351   :  { %4257 = vmatpush.bf16.msrb.mxu0 %v6806_v59  ;;  %4270 = vmatpush.bf16.msrb.mxu1 %v6870_v1  ;;  %v6838_v59 = vor.u32 %v7881_v53, %v6835_v49  ;;  %v6902_v1 = vor.u32 %v7897_v13, %v6899_v50  ;;  %v7121_v53 = vld [vmem:[#allocation17 + $0xd0] sm:$0xf]  ;;  %v7954_v13 = vld [vmem:[#allocation17 + $0xd4] sm:$0xf0] }
 0x352   :  { %4283 = vmatpush.bf16.msrb.mxu2 %v6934_v5  ;;  %v7879_v5 = vld [vmem:[#allocation16 + $0x184] sm:$0xf]  ;;  %v7185_v50 = vld [vmem:[#allocation17 + $0x150] sm:$0xf]  ;;  %v7122_v60 = vor.u32 %v7954_v13, %v7121_v53  ;;  %v7946_v53 = vld [vmem:[#allocation17 + $0x94] sm:$0xf0] }
 0x353   :  { %4296 = vmatpush.bf16.msrb.mxu3 %v6998_v25  ;;  %v6891_v25 = vld [vmem:[#allocation16 + $0x208] sm:$0xf0]  ;;  %v6830_v23 = vor.u32 %v7879_v5, %v6827_v6  ;;  %v7113_v5 = vld [vmem:[#allocation17 + $0xc0] sm:$0xf]  ;;  %v7217_v13 = vld [vmem:[#allocation17 + $0x190] sm:$0xf] }
 0x354   :  { %v6894_v0 = vor.u32 %v7895_v32, %v6891_v25  ;;  %v7952_v32 = vld [vmem:[#allocation17 + $0xc4] sm:$0xf0]  ;;  %v7241_v25 = vld [vmem:[#allocation17 + $0x1c0] sm:$0xf] }
 0x355   :  { %4258 = vmatpush.bf16.msrb.mxu0 %v6798_v27  ;;  %4271 = vmatpush.bf16.msrb.mxu1 %v6862_v47  ;;  %v10196_v58 = vpop.f32.mrf.mxu0  ;;  %v10198_v27 = vpop.f32.mrf.mxu1  ;;  %v7958_v47 = vld [vmem:[#allocation17 + $0xf4] sm:$0xf0]  ;;  %v7114_v30 = vor.u32 %v7952_v32, %v7113_v5  ;;  %v7209_v32 = vld [vmem:[#allocation17 + $0x180] sm:$0xf] }
 0x356   :  { %4284 = vmatpush.bf16.msrb.mxu2 %v6926_v14  ;;  %v7201_v14 = vld [vmem:[#allocation17 + $0x170] sm:$0xf]  ;;  %v7138_v15 = vor.u32 %v7958_v47, %v7137_v54  ;;  %v7210_v20 = vor.u32 %v7976_v48, %v7209_v32  ;;  %v8016_v48 = vld [vmem:[#allocation17 + $0x2c4] sm:$0xf0] }
 0x357   :  { %4297 = vmatpush.bf16.msrb.mxu3 %v6990_v40  ;;  %v7265_v40 = vld [vmem:[#allocation17 + $0x1f0] sm:$0xf]  ;;  %v7202_v51 = vor.u32 %v7974_v19, %v7201_v14  ;;  %v7950_v19 = vld [vmem:[#allocation17 + $0xb4] sm:$0xf0] }
 0x358   :  { %v7266_v28 = vor.u32 %v7990_v31, %v7265_v40  ;;  %v7041_v54 = vld [vmem:[#allocation17 + $0x30] sm:$0xf]  ;;  %v7982_v31 = vld [vmem:[#allocation17 + $0x1b4] sm:$0xf0] }
 0x359   :  { %4259 = vmatpush.bf16.msrb.mxu0 %v6790_v39  ;;  %4272 = vmatpush.bf16.msrb.mxu1 %v6854_v26  ;;  %v7065_v39 = vld [vmem:[#allocation17 + $0x60] sm:$0xf]  ;;  %v7940_v26 = vld [vmem:[#allocation17 + $0x64] sm:$0xf0]  ;;  %v7105_v47 = vld [vmem:[#allocation17 + $0xb0] sm:$0xf] }
 0x35a   :  { %4285 = vmatpush.bf16.msrb.mxu2 %v6918_v12  ;;  %v7129_v12 = vld [vmem:[#allocation17 + $0xe0] sm:$0xf]  ;;  %v7066_v4 = vor.u32 %v7940_v26, %v7065_v39  ;;  %v7233_v40 = vld [vmem:[#allocation17 + $0x1b0] sm:$0xf]  ;;  %v7932_v39 = vld [vmem:[#allocation17 + $0x24] sm:$0xf0] }
 0x35b   :  { %4298 = vmatpush.bf16.msrb.mxu3 %v6982_v55  ;;  %v7972_v55 = vld [vmem:[#allocation17 + $0x164] sm:$0xf0]  ;;  %v7097_v26 = vld [vmem:[#allocation17 + $0xa0] sm:$0xf] }
 0x35d   :  { %4260 = vmatpush.bf16.msrb.mxu0 %v6782_v63  ;;  %4273 = vmatpush.bf16.msrb.mxu1 %v6846_v61  ;;  %v10202_v7 = vpop.f32.mrf.mxu3  ;;  %v7130_v63 = vor.u32 %v7956_v29, %v7129_v12  ;;  %v7194_v61 = vor.u32 %v7972_v55, %v7193_v17  ;;  %v3324_v49 = vpop.f32.mrf.mxu1  ;;  %v7234_v12 = vor.u32 %v7982_v31, %v7233_v40  ;;  %v7161_v29 = vld [vmem:[#allocation17 + $0x120] sm:$0xf]  ;;  %v7964_v17 = vld [vmem:[#allocation17 + $0x124] sm:$0xf0] }
 0x35e   :  { %4286 = vmatpush.bf16.msrb.mxu2 %v6910_v62  ;;  %v10200_v43 = vpop.f32.mrf.mxu2  ;;  %v3311_v62 = vpop.f32.mrf.mxu0  ;;  %v7225_v55 = vld [vmem:[#allocation17 + $0x1a0] sm:$0xf]  ;;  %v7962_v49 = vld [vmem:[#allocation17 + $0x114] sm:$0xf0]  ;;  %v8004_v31 = vld [vmem:[#allocation17 + $0x264] sm:$0xf0] }
 0x35f   :  { %4299 = vmatpush.bf16.msrb.mxu3 %v6974_v45  ;;  %v7258_v45 = vor.u32 %v7988_v35, %v7257_v18  ;;  %v7980_v18 = vld [vmem:[#allocation17 + $0x1a4] sm:$0xf0]  ;;  %v7930_v62 = vld [vmem:[#allocation17 + $0x14] sm:$0xf0]  ;;  %v7321_v40 = vld [vmem:[#allocation17 + $0x260] sm:$0xf] }
 0x360   :  { %v7226_v24 = vor.u32 %v7980_v18, %v7225_v55 }
 0x361   :  { %4261 = vmatpush.bf16.msrb.mxu0 %v6774_v56  ;;  %4274 = vmatpush.bf16.msrb.mxu1 %v6838_v59  ;;  %v7986_v56 = vld [vmem:[#allocation17 + $0x1d4] sm:$0xf0]  ;;  %v7186_v59 = vor.u32 %v7970_v8, %v7185_v50 }
 0x362   :  { %4287 = vmatpush.bf16.msrb.mxu2 %v6902_v1  ;;  %v7936_v1 = vld [vmem:[#allocation17 + $0x44] sm:$0xf0]  ;;  %v7250_v6 = vor.u32 %v7986_v56, %v7249_v37  ;;  %v7978_v50 = vld [vmem:[#allocation17 + $0x194] sm:$0xf0]  ;;  %v7017_v37 = vld [vmem:[#allocation17] sm:$0xf] }
 0x363   :  { %4300 = vmatpush.bf16.msrb.mxu3 %v6966_v22  ;;  %v7177_v22 = vld [vmem:[#allocation17 + $0x140] sm:$0xf]  ;;  %v7928_v56 = vld [vmem:[#allocation17 + $0x4] sm:$0xf0]  ;;  %v7218_v5 = vor.u32 %v7978_v50, %v7217_v13  ;;  %v3336_v13 = vadd.f32 %v10200_v43, %v770_v44 }
 0x365   :  { %4262 = vmatpush.bf16.msrb.mxu0 %v6766_v2  ;;  %4275 = vmatpush.bf16.msrb.mxu1 %v6830_v23  ;;  %v7934_v2 = vld [vmem:[#allocation17 + $0x34] sm:$0xf0]  ;;  %v7169_v23 = vld [vmem:[#allocation17 + $0x130] sm:$0xf] }
 0x366   :  { %4288 = vmatpush.bf16.msrb.mxu2 %v6894_v0  ;;  %v3337_v21 = vpop.f32.mrf.mxu2  ;;  %v7966_v0 = vld [vmem:[#allocation17 + $0x134] sm:$0xf0] }
 0x367   :  { %4301 = vmatpush.bf16.msrb.mxu3 %v6958_v41  ;;  %v7042_v41 = vor.u32 %v7934_v2, %v7041_v54  ;;  %v7018_v21 = vor.u32 %v7928_v56, %v7017_v37  ;;  %v7957_v54 = vld [vmem:[#allocation17 + $0xf4] sm:$0xf]  ;;  %v7139_v2 = vld [vmem:[#allocation17 + $0xf8] sm:$0xf0]  ;;  %v8018_v37 = vld [vmem:[#allocation17 + $0x2d4] sm:$0xf0] }
 0x368   :  { %4263 = vmatmul.bf16.vlgmr.msrb.gmra.mxu0 %v10172_v33  ;;  %4276 = vmatmul.bf16.vlgmr.msrb.gmra.mxu1 %v10174_v52  ;;  %v7049_v33 = vld [vmem:[#allocation17 + $0x40] sm:$0xf]  ;;  %v7968_v52 = vld [vmem:[#allocation17 + $0x144] sm:$0xf0]  ;;  %v7937_v56 = vld [vmem:[#allocation17 + $0x54] sm:$0xf] }
 0x369   :  { %4891 = vmatpush.bf16.msra.mxu0 %v7074_v9  ;;  %4904 = vmatpush.bf16.msra.mxu1 %v7138_v15  ;;  %v7050_v34 = vor.u32 %v7936_v1, %v7049_v33  ;;  %v7178_v10 = vor.u32 %v7968_v52, %v7177_v22  ;;  %v7106_v9 = vor.u32 %v7950_v19, %v7105_v47  ;;  %v7944_v33 = vld [vmem:[#allocation17 + $0x84] sm:$0xf0]  ;;  %v7145_v1 = vld [vmem:[#allocation17 + $0x100] sm:$0xf]  ;;  %v7329_v52 = vld [vmem:[#allocation17 + $0x270] sm:$0xf]  ;;  %v8109_v47 = vpop.eup %8108 }
 0x36a   :  { %4917 = vmatpush.bf16.msra.mxu2 %v7202_v51  ;;  %4302 = vmatmul.bf16.vlgmr.msrb.gmra.mxu3 %v10188_v16  ;;  %v3350_v16 = vpop.f32.mrf.mxu3  ;;  %v7170_v15 = vor.u32 %v7966_v0, %v7169_v23  ;;  %v7033_v51 = vld [vmem:[#allocation17 + $0x20] sm:$0xf]  ;;  %v8111_v19 = vpop.eup %8110 }
 0x36b   :  { %4930 = vmatpush.bf16.msra.mxu3 %v7266_v28  ;;  %4289 = vmatmul.bf16.vlgmr.msrb.gmra.mxu2 %v10186_v46  ;;  %v7984_v46 = vld [vmem:[#allocation17 + $0x1c4] sm:$0xf0]  ;;  %v7034_v35 = vor.u32 %v7932_v39, %v7033_v51  ;;  %v7941_v16 = vld [vmem:[#allocation17 + $0x74] sm:$0xf]  ;;  %v7939_v39 = vld [vmem:[#allocation17 + $0x64] sm:$0xf]  ;;  %v10218_v55 = vpack.c.bf16 %v8111_v19, %v8111_v19 }
 0x36c   :  { %v7242_v14 = vor.u32 %v7984_v46, %v7241_v25  ;;  %v7948_v28 = vld [vmem:[#allocation17 + $0xa4] sm:$0xf0]  ;;  %v7393_v25 = vld [vmem:[#allocation17 + $0x2f0] sm:$0xf]  ;;  %v7933_v19 = vld [vmem:[#allocation17 + $0x34] sm:$0xf] }
 0x36d   :  { %4892 = vmatpush.bf16.msra.mxu0 %v7066_v4  ;;  %4905 = vmatpush.bf16.msra.mxu1 %v7130_v63  ;;  %v7098_v4 = vor.u32 %v7948_v28, %v7097_v26  ;;  %v7162_v63 = vor.u32 %v7964_v17, %v7161_v29  ;;  %v8020_v51 = vld [vmem:[#allocation17 + $0x2e4] sm:$0xf0]  ;;  %v7067_v26 = vld [vmem:[#allocation17 + $0x68] sm:$0xf0]  ;;  %v7955_v28 = vld [vmem:[#allocation17 + $0xe4] sm:$0xf]  ;;  %v10216_v17 = vpack.c.bf16 %v8109_v47, %v8109_v47 }
 0x36e   :  { %4918 = vmatpush.bf16.msra.mxu2 %v7194_v61  ;;  %v7025_v61 = vld [vmem:[#allocation17 + $0x10] sm:$0xf]  ;;  %v7131_v29 = vld [vmem:[#allocation17 + $0xe8] sm:$0xf0]  ;;  %v7998_v47 = vld [vmem:[#allocation17 + $0x234] sm:$0xf0] }
 0x36f   :  { %4931 = vmatpush.bf16.msra.mxu3 %v7258_v45  ;;  %v7153_v45 = vld [vmem:[#allocation17 + $0x110] sm:$0xf]  ;;  %v7026_v8 = vor.u32 %v7930_v62, %v7025_v61  ;;  %v7070_v62 = vor.u32 %v7939_v39, %v7067_v26  ;;  %v7134_v50 = vor.u32 %v7955_v28, %v7131_v29  ;;  %v7289_v26 = vld [vmem:[#allocation17 + $0x220] sm:$0xf] }
 0x370   :  { %v7353_v28 = vld [vmem:[#allocation17 + $0x2a0] sm:$0xf] }
 0x371   :  { %4893 = vmatpush.bf16.msra.mxu0 %v7058_v3  ;;  %4906 = vmatpush.bf16.msra.mxu1 %v7122_v60  ;;  %v7090_v3 = vor.u32 %v7946_v53, %v7089_v38  ;;  %v7154_v60 = vor.u32 %v7962_v49, %v7153_v45  ;;  %v8002_v53 = vld [vmem:[#allocation17 + $0x254] sm:$0xf0]  ;;  %v7377_v45 = vld [vmem:[#allocation17 + $0x2d0] sm:$0xf] }
 0x372   :  { %4919 = vmatpush.bf16.msra.mxu2 %v7186_v59  ;;  %v7081_v59 = vld [vmem:[#allocation17 + $0x80] sm:$0xf]  ;;  %v7378_v44 = vor.u32 %v8018_v37, %v7377_v45 }
 0x373   :  { %4932 = vmatpush.bf16.msra.mxu3 %v7250_v6  ;;  %v7960_v6 = vld [vmem:[#allocation17 + $0x104] sm:$0xf0]  ;;  %v7082_v11 = vor.u32 %v7944_v33, %v7081_v59  ;;  %v7123_v59 = vld [vmem:[#allocation17 + $0xd8] sm:$0xf0]  ;;  %v7305_v33 = vld [vmem:[#allocation17 + $0x240] sm:$0xf] }
 0x375   :  { %4894 = vmatpush.bf16.msra.mxu0 %v7050_v34  ;;  %4907 = vmatpush.bf16.msra.mxu1 %v7114_v30  ;;  %v10212_v22 = vpop.f32.mrf.mxu0  ;;  %v10214_v46 = vpop.f32.mrf.mxu1  ;;  %v8022_v34 = vld [vmem:[#allocation17 + $0x2f4] sm:$0xf0]  ;;  %v7075_v30 = vld [vmem:[#allocation17 + $0x78] sm:$0xf0] }
 0x376   :  { %4920 = vmatpush.bf16.msra.mxu2 %v7178_v10  ;;  %v7146_v10 = vor.u32 %v7960_v6, %v7145_v1  ;;  %v7394_v23 = vor.u32 %v8022_v34, %v7393_v25  ;;  %v7078_v0 = vor.u32 %v7941_v16, %v7075_v30  ;;  %v8000_v1 = vld [vmem:[#allocation17 + $0x244] sm:$0xf0]  ;;  %v3349_v6 = vadd.f32 %v10202_v7, %v3336_v13  ;;  %v7951_v25 = vld [vmem:[#allocation17 + $0xc4] sm:$0xf]  ;;  %v7361_v7 = vld [vmem:[#allocation17 + $0x2b0] sm:$0xf] }
 0x377   :  { %4933 = vmatpush.bf16.msra.mxu3 %v7242_v14  ;;  %v7330_v14 = vor.u32 %v8006_v36, %v7329_v52  ;;  %v7935_v52 = vld [vmem:[#allocation17 + $0x44] sm:$0xf]  ;;  %v7051_v36 = vld [vmem:[#allocation17 + $0x48] sm:$0xf0]  ;;  %v7306_v30 = vor.u32 %v8000_v1, %v7305_v33  ;;  %v7281_v13 = vld [vmem:[#allocation17 + $0x210] sm:$0xf] }
 0x378   :  { %v3362_v34 = vadd.f32 %v10212_v22, %v3349_v6  ;;  %v7992_v6 = vld [vmem:[#allocation17 + $0x204] sm:$0xf0] }
 0x379   :  { %4895 = vmatpush.bf16.msra.mxu0 %v7042_v41  ;;  %4908 = vmatpush.bf16.msra.mxu1 %v7106_v9  ;;  %v7385_v41 = vld [vmem:[#allocation17 + $0x2e0] sm:$0xf]  ;;  %v8113_v9 = vpop.eup %8112 }
 0x37a   :  { %4921 = vmatpush.bf16.msra.mxu2 %v7170_v15  ;;  %v7142_v15 = vor.u32 %v7957_v54, %v7139_v2  ;;  %v7386_v61 = vor.u32 %v8020_v51, %v7385_v41  ;;  %v7054_v54 = vor.u32 %v7935_v52, %v7051_v36  ;;  %v7297_v2 = vld [vmem:[#allocation17 + $0x230] sm:$0xf]  ;;  %v3375_v22 = vadd.f32 %v10214_v46, %v3362_v34  ;;  %v7035_v46 = vld [vmem:[#allocation17 + $0x28] sm:$0xf0]  ;;  %v7337_v36 = vld [vmem:[#allocation17 + $0x280] sm:$0xf] }
 0x37b   :  { %4934 = vmatpush.bf16.msra.mxu3 %v7234_v12  ;;  %v8115_v12 = vpop.eup %8114  ;;  %v7298_v41 = vor.u32 %v7998_v47, %v7297_v2  ;;  %v7989_v2 = vld [vmem:[#allocation17 + $0x1f4] sm:$0xf] }
 0x37c   :  { %v10226_v49 = vpack.c.bf16 %v8115_v12, %v8115_v12  ;;  %v7996_v12 = vld [vmem:[#allocation17 + $0x224] sm:$0xf0] }
 0x37d   :  { %4896 = vmatpush.bf16.msra.mxu0 %v7034_v35  ;;  %4909 = vmatpush.bf16.msra.mxu1 %v7098_v4  ;;  %v7322_v35 = vor.u32 %v8004_v31, %v7321_v40  ;;  %v10222_v4 = vpack.c.bf16 %v8113_v9, %v8113_v9  ;;  %v3363_v38 = vpop.f32.mrf.mxu0  ;;  %v7107_v40 = vld [vmem:[#allocation17 + $0xb8] sm:$0xf0] }
 0x37e   :  { %4922 = vmatpush.bf16.msra.mxu2 %v7162_v63  ;;  %v10220_v18 = vpop.f32.mrf.mxu2  ;;  %v10224_v63 = vpop.f32.mrf.mxu3  ;;  %v7947_v38 = vld [vmem:[#allocation17 + $0xa4] sm:$0xf] }
 0x37f   :  { %4935 = vmatpush.bf16.msra.mxu3 %v7226_v24  ;;  %v7313_v24 = vld [vmem:[#allocation17 + $0x250] sm:$0xf]  ;;  %v3388_v29 = vadd.f32 %v10220_v18, %v3375_v22 }
 0x380   :  { %v7314_v57 = vor.u32 %v8002_v53, %v7313_v24  ;;  %v7099_v24 = vld [vmem:[#allocation17 + $0xa8] sm:$0xf0]  ;;  %v7290_v53 = vor.u32 %v7996_v12, %v7289_v26  ;;  %v7987_v12 = vld [vmem:[#allocation17 + $0x1e4] sm:$0xf] }
 0x381   :  { %4897 = vmatpush.bf16.msra.mxu0 %v7026_v8  ;;  %4910 = vmatpush.bf16.msra.mxu1 %v7090_v3  ;;  %v3376_v8 = vpop.f32.mrf.mxu1  ;;  %v7059_v3 = vld [vmem:[#allocation17 + $0x58] sm:$0xf0]  ;;  %v3401_v18 = vadd.f32 %v10224_v63, %v3388_v29  ;;  %v7102_v37 = vor.u32 %v7947_v38, %v7099_v24  ;;  %v7195_v26 = vld [vmem:[#allocation17 + $0x168] sm:$0xf0]  ;;  %v8019_v38 = vld [vmem:[#allocation17 + $0x2e4] sm:$0xf] }
 0x382   :  { %4923 = vmatpush.bf16.msra.mxu2 %v7154_v60  ;;  %v7953_v60 = vld [vmem:[#allocation17 + $0xd4] sm:$0xf]  ;;  %v7062_v43 = vor.u32 %v7937_v56, %v7059_v3  ;;  %v7345_v8 = vld [vmem:[#allocation17 + $0x290] sm:$0xf]  ;;  %v8010_v56 = vld [vmem:[#allocation17 + $0x294] sm:$0xf0] }
 0x383   :  { %4936 = vmatpush.bf16.msra.mxu3 %v7218_v5  ;;  %v7369_v5 = vld [vmem:[#allocation17 + $0x2c0] sm:$0xf]  ;;  %v7126_v32 = vor.u32 %v7953_v60, %v7123_v59  ;;  %v7929_v3 = vld [vmem:[#allocation17 + $0x14] sm:$0xf]  ;;  %v7027_v60 = vld [vmem:[#allocation17 + $0x18] sm:$0xf0]  ;;  %v7346_v63 = vor.u32 %v8010_v56, %v7345_v8 }
 0x384   :  { %v7030_v52 = vor.u32 %v7929_v3, %v7027_v60  ;;  %v7387_v24 = vld [vmem:[#allocation17 + $0x2e8] sm:$0xf0]  ;;  %v7187_v8 = vld [vmem:[#allocation17 + $0x158] sm:$0xf0]  ;;  %v8001_v3 = vld [vmem:[#allocation17 + $0x254] sm:$0xf] }
 0x385   :  { %4898 = vmatpush.bf16.msra.mxu0 %v7018_v21  ;;  %4911 = vmatpush.bf16.msra.mxu1 %v7082_v11  ;;  %v7115_v21 = vld [vmem:[#allocation17 + $0xc8] sm:$0xf0]  ;;  %v3483_v31 = vpop.f32.mrf.mxu0  ;;  %v7251_v56 = vld [vmem:[#allocation17 + $0x1d8] sm:$0xf0] }
 0x386   :  { %4924 = vmatpush.bf16.msra.mxu2 %v7146_v10  ;;  %v3389_v16 = vpop.f32.mrf.mxu2  ;;  %v3402_v11 = vpop.f32.mrf.mxu3  ;;  %v7370_v10 = vor.u32 %v8016_v48, %v7369_v5  ;;  %v7273_v5 = vld [vmem:[#allocation17 + $0x200] sm:$0xf]  ;;  %v7315_v60 = vld [vmem:[#allocation17 + $0x258] sm:$0xf0] }
 0x387   :  { %4937 = vmatpush.bf16.msra.mxu3 %v7210_v20  ;;  %v7118_v20 = vor.u32 %v7951_v25, %v7115_v21  ;;  %v8008_v25 = vld [vmem:[#allocation17 + $0x284] sm:$0xf0]  ;;  %v7927_v21 = vld [vmem:[#allocation17 + $0x4] sm:$0xf]  ;;  %v7019_v16 = vld [vmem:[#allocation17 + $0x8] sm:$0xf0]  ;;  %v7274_v47 = vor.u32 %v7992_v6, %v7273_v5 }
 0x388   :  { %4899 = vmatmul.bf16.vlgmr.msra.gmra.mxu0 %v10216_v17  ;;  %4912 = vmatmul.bf16.vlgmr.msra.gmra.mxu1 %v10218_v55  ;;  %v7083_v11 = vld [vmem:[#allocation17 + $0x88] sm:$0xf0]  ;;  %v7983_v6 = vld [vmem:[#allocation17 + $0x1c4] sm:$0xf] }
 0x389   :  { %4943 = vmatpush.bf16.msrb.mxu0 %v7330_v14  ;;  %4956 = vmatpush.bf16.msrb.mxu1 %v7394_v23  ;;  %v8014_v14 = vld [vmem:[#allocation17 + $0x2b4] sm:$0xf0]  ;;  %v7043_v23 = vld [vmem:[#allocation17 + $0x38] sm:$0xf0]  ;;  %v3496_v9 = vpop.f32.mrf.mxu1  ;;  %v7179_v5 = vld [vmem:[#allocation17 + $0x148] sm:$0xf0] }
 0x38a   :  { %4969 = vmatpush.bf16.msrb.mxu2 %v7078_v0  ;;  %4938 = vmatmul.bf16.vlgmr.msra.gmra.mxu3 %v10226_v49  ;;  %v7949_v0 = vld [vmem:[#allocation17 + $0xb4] sm:$0xf]  ;;  %v7362_v51 = vor.u32 %v8014_v14, %v7361_v7  ;;  %v7046_v39 = vor.u32 %v7933_v19, %v7043_v23  ;;  %v7267_v7 = vld [vmem:[#allocation17 + $0x1f8] sm:$0xf0]  ;;  %v7338_v19 = vor.u32 %v8008_v25, %v7337_v36  ;;  %v7307_v36 = vld [vmem:[#allocation17 + $0x248] sm:$0xf0] }
 0x38b   :  { %4982 = vmatpush.bf16.msrb.mxu3 %v7142_v15  ;;  %4925 = vmatmul.bf16.vlgmr.msra.gmra.mxu2 %v10222_v4  ;;  %v3310_v15 = vadd.f32 %v10196_v58, %v10193_v42  ;;  %v7331_v14 = vld [vmem:[#allocation17 + $0x278] sm:$0xf0]  ;;  %v7022_v23 = vor.u32 %v7927_v21, %v7019_v16  ;;  %v7371_v21 = vld [vmem:[#allocation17 + $0x2c8] sm:$0xf0] }
 0x38d   :  { %4944 = vmatpush.bf16.msrb.mxu0 %v7322_v35  ;;  %4957 = vmatpush.bf16.msrb.mxu1 %v7386_v61  ;;  %v7110_v35 = vor.u32 %v7949_v0, %v7107_v40  ;;  %v8012_v61 = vld [vmem:[#allocation17 + $0x2a4] sm:$0xf0]  ;;  %v3323_v42 = vadd.f32 %v10198_v27, %v3310_v15  ;;  %v3485_v33 = vpop.f32.mrf.mxu0  ;;  %v8021_v0 = vld [vmem:[#allocation17 + $0x2f4] sm:$0xf]  ;;  %v7395_v40 = vld [vmem:[#allocation17 + $0x2f8] sm:$0xf0]  ;;  %v7270_v15 = vor.u32 %v7989_v2, %v7267_v7 }
 0x38e   :  { %4970 = vmatpush.bf16.msrb.mxu2 %v7070_v62  ;;  %v7931_v62 = vld [vmem:[#allocation17 + $0x24] sm:$0xf]  ;;  %v7354_v58 = vor.u32 %v8012_v61, %v7353_v28  ;;  %v3552_v59 = vpop.f32.mrf.mxu2  ;;  %v3565_v27 = vpop.f32.mrf.mxu3  ;;  %v7259_v61 = vld [vmem:[#allocation17 + $0x1e8] sm:$0xf0]  ;;  %v7318_v33 = vor.u32 %v8001_v3, %v7315_v60  ;;  %v7981_v2 = vld [vmem:[#allocation17 + $0x1b4] sm:$0xf] }
 0x38f   :  { %4983 = vmatpush.bf16.msrb.mxu3 %v7134_v50  ;;  %v7038_v45 = vor.u32 %v7931_v62, %v7035_v46  ;;  %v7994_v50 = vld [vmem:[#allocation17 + $0x214] sm:$0xf0]  ;;  %8116 = vtanh.f32 %v3323_v42  ;;  %v8003_v62 = vld [vmem:[#allocation17 + $0x264] sm:$0xf]  ;;  %v7323_v46 = vld [vmem:[#allocation17 + $0x268] sm:$0xf0] }
 0x390   :  { %v7282_v1 = vor.u32 %v7994_v50, %v7281_v13  ;;  %8118 = vtanh.f32 %v3401_v18  ;;  %v7326_v13 = vor.u32 %v8003_v62, %v7323_v46  ;;  %v7969_v50 = vld [vmem:[#allocation17 + $0x154] sm:$0xf]  ;;  %v7235_v7 = vld [vmem:[#allocation17 + $0x1b8] sm:$0xf0]  ;;  %v7355_v62 = vld [vmem:[#allocation17 + $0x2a8] sm:$0xf0] }
 0x391   :  { %4945 = vmatpush.bf16.msrb.mxu0 %v7314_v57  ;;  %4958 = vmatpush.bf16.msrb.mxu1 %v7378_v44  ;;  %v7945_v57 = vld [vmem:[#allocation17 + $0x94] sm:$0xf]  ;;  %v7091_v44 = vld [vmem:[#allocation17 + $0x98] sm:$0xf0]  ;;  %v3498_v48 = vpop.f32.mrf.mxu1 }
 0x392   :  { %4971 = vmatpush.bf16.msrb.mxu2 %v7062_v43  ;;  %v10243_v43 = vadd.f32 %v3552_v59, %v3483_v31  ;;  %v7094_v34 = vor.u32 %v7945_v57, %v7091_v44  ;;  %v7985_v18 = vld [vmem:[#allocation17 + $0x1d4] sm:$0xf]  ;;  %v7379_v57 = vld [vmem:[#allocation17 + $0x2d8] sm:$0xf0]  ;;  %v7190_v44 = vor.u32 %v7969_v50, %v7187_v8 }
 0x393   :  { %4984 = vmatpush.bf16.msrb.mxu3 %v7126_v32  ;;  %v10245_v32 = vadd.f32 %v3565_v27, %v3496_v9  ;;  %v8017_v59 = vld [vmem:[#allocation17 + $0x2d4] sm:$0xf]  ;;  %v7254_v27 = vor.u32 %v7985_v18, %v7251_v56  ;;  %v7155_v50 = vld [vmem:[#allocation17 + $0x118] sm:$0xf0] }
 0x394   :  { %v7382_v48 = vor.u32 %v8017_v59, %v7379_v57  ;;  %v7977_v8 = vld [vmem:[#allocation17 + $0x194] sm:$0xf]  ;;  %v7283_v3 = vld [vmem:[#allocation17 + $0x218] sm:$0xf0] }
 0x395   :  { %4946 = vmatpush.bf16.msrb.mxu0 %v7306_v30  ;;  %4959 = vmatpush.bf16.msrb.mxu1 %v7370_v10  ;;  %v7943_v30 = vld [vmem:[#allocation17 + $0x84] sm:$0xf]  ;;  %v7973_v10 = vld [vmem:[#allocation17 + $0x174] sm:$0xf]  ;;  %v8117_v9 = vpop.eup %8116  ;;  %v7347_v59 = vld [vmem:[#allocation17 + $0x298] sm:$0xf0] }
 0x396   :  { %4972 = vmatpush.bf16.msrb.mxu2 %v7054_v54  ;;  %v7203_v54 = vld [vmem:[#allocation17 + $0x178] sm:$0xf0]  ;;  %v7086_v31 = vor.u32 %v7943_v30, %v7083_v11  ;;  %v3567_v28 = vpop.f32.mrf.mxu3  ;;  %v8119_v29 = vpop.eup %8118  ;;  %v7993_v56 = vld [vmem:[#allocation17 + $0x214] sm:$0xf] }
 0x397   :  { %4985 = vmatpush.bf16.msrb.mxu3 %v7118_v20  ;;  %v8005_v20 = vld [vmem:[#allocation17 + $0x274] sm:$0xf]  ;;  %v7206_v22 = vor.u32 %v7973_v10, %v7203_v54  ;;  %v7171_v54 = vld [vmem:[#allocation17 + $0x138] sm:$0xf0] }
 0x398   :  { %v7965_v10 = vld [vmem:[#allocation17 + $0x134] sm:$0xf] }
 0x399   :  { %4947 = vmatpush.bf16.msrb.mxu0 %v7298_v41  ;;  %4960 = vmatpush.bf16.msrb.mxu1 %v7362_v51  ;;  %v3554_v41 = vpop.f32.mrf.mxu2  ;;  %v7334_v51 = vor.u32 %v8005_v20, %v7331_v14  ;;  %v7997_v20 = vld [vmem:[#allocation17 + $0x234] sm:$0xf]  ;;  %v7299_v14 = vld [vmem:[#allocation17 + $0x238] sm:$0xf0] }
 0x39a   :  { %4973 = vmatpush.bf16.msrb.mxu2 %v7046_v39  ;;  %v7971_v39 = vld [vmem:[#allocation17 + $0x164] sm:$0xf]  ;;  %v7163_v41 = vld [vmem:[#allocation17 + $0x128] sm:$0xf0]  ;;  %v8009_v60 = vld [vmem:[#allocation17 + $0x294] sm:$0xf] }
 0x39b   :  { %4986 = vmatpush.bf16.msrb.mxu3 %v7110_v35  ;;  %v7398_v35 = vor.u32 %v8021_v0, %v7395_v40  ;;  %v7198_v42 = vor.u32 %v7971_v39, %v7195_v26  ;;  %v7174_v0 = vor.u32 %v7965_v10, %v7171_v54  ;;  %v7238_v40 = vor.u32 %v7981_v2, %v7235_v7  ;;  %v7227_v39 = vld [vmem:[#allocation17 + $0x1a8] sm:$0xf0]  ;;  %v7995_v26 = vld [vmem:[#allocation17 + $0x224] sm:$0xf] }
 0x39d   :  { %4948 = vmatpush.bf16.msrb.mxu0 %v7290_v53  ;;  %4961 = vmatpush.bf16.msrb.mxu1 %v7354_v58  ;;  %v10247_v53 = vpack.c.bf16 %v8117_v9, %v8117_v9  ;;  %v10249_v58 = vpack.c.bf16 %v8119_v29, %v8119_v29  ;;  %v7979_v9 = vld [vmem:[#allocation17 + $0x1a4] sm:$0xf] }
 0x39e   :  { %4974 = vmatpush.bf16.msrb.mxu2 %v7038_v45  ;;  %v7262_v45 = vor.u32 %v7987_v12, %v7259_v61  ;;  %v7291_v12 = vld [vmem:[#allocation17 + $0x228] sm:$0xf0]  ;;  %v8011_v61 = vld [vmem:[#allocation17 + $0x2a4] sm:$0xf] }
 0x39f   :  { %4987 = vmatpush.bf16.msrb.mxu3 %v7102_v37  ;;  %v7390_v37 = vor.u32 %v8019_v38, %v7387_v24  ;;  %v7358_v18 = vor.u32 %v8011_v61, %v7355_v62  ;;  %v8026_v61 = vld [vmem:[#allocation20 + $0x18] sm:$0xff] }
 0x3a1   :  { %4949 = vmatpush.bf16.msrb.mxu0 %v7282_v1  ;;  %4962 = vmatpush.bf16.msrb.mxu1 %v7346_v63  ;;  %v7967_v1 = vld [vmem:[#allocation17 + $0x144] sm:$0xf]  ;;  %v7243_v63 = vld [vmem:[#allocation17 + $0x1c8] sm:$0xf0] }
 0x3a2   :  { %4975 = vmatpush.bf16.msrb.mxu2 %v7030_v52  ;;  %v7999_v52 = vld [vmem:[#allocation17 + $0x244] sm:$0xf]  ;;  %v7246_v30 = vor.u32 %v7983_v6, %v7243_v63  ;;  %v7350_v6 = vor.u32 %v8009_v60, %v7347_v59  ;;  %v7211_v63 = vld [vmem:[#allocation17 + $0x188] sm:$0xf0] }
 0x3a3   :  { %4988 = vmatpush.bf16.msrb.mxu3 %v7094_v34  ;;  %v7310_v11 = vor.u32 %v7999_v52, %v7307_v36  ;;  %v7991_v52 = vld [vmem:[#allocation17 + $0x204] sm:$0xf]  ;;  %v7275_v36 = vld [vmem:[#allocation17 + $0x208] sm:$0xf0] }
 0x3a5   :  { %4950 = vmatpush.bf16.msrb.mxu0 %v7274_v47  ;;  %4963 = vmatpush.bf16.msrb.mxu1 %v7338_v19  ;;  %v4160_v25 = vpop.f32.mrf.mxu0  ;;  %v4173_v34 = vpop.f32.mrf.mxu1  ;;  %v8013_v19 = vld [vmem:[#allocation17 + $0x2b4] sm:$0xf] }
 0x3a6   :  { %4976 = vmatpush.bf16.msrb.mxu2 %v7022_v23  ;;  %v4174_v16 = vadd.f32 %v4173_v34, %v4160_v25  ;;  %v7363_v23 = vld [vmem:[#allocation17 + $0x2b8] sm:$0xf0] }
 0x3a7   :  { %4989 = vmatpush.bf16.msrb.mxu3 %v7086_v31  ;;  %v7302_v31 = vor.u32 %v7997_v20, %v7299_v14 }
 0x3a8   :  { %4951 = vmatmul.bf16.vlgmr.msrb.gmra.mxu0 %v10247_v53  ;;  %4964 = vmatmul.bf16.vlgmr.msrb.gmra.mxu1 %v10249_v58 }
 0x3a9   :  { %4995 = vmatpush.bf16.msra.mxu0 %v7206_v22  ;;  %5008 = vmatpush.bf16.msra.mxu1 %v7270_v15  ;;  %v7963_v22 = vld [vmem:[#allocation17 + $0x124] sm:$0xf]  ;;  %v7366_v15 = vor.u32 %v8013_v19, %v7363_v23 }
 0x3aa   :  { %5021 = vmatpush.bf16.msra.mxu2 %v7334_v51  ;;  %4990 = vmatmul.bf16.vlgmr.msrb.gmra.mxu3 %v10218_v55  ;;  %v7182_v55 = vor.u32 %v7967_v1, %v7179_v5  ;;  %v7166_v38 = vor.u32 %v7963_v22, %v7163_v41  ;;  %v7147_v1 = vld [vmem:[#allocation17 + $0x108] sm:$0xf0]  ;;  %v7975_v5 = vld [vmem:[#allocation17 + $0x184] sm:$0xf] }
 0x3ab   :  { %5034 = vmatpush.bf16.msra.mxu3 %v7398_v35  ;;  %4977 = vmatmul.bf16.vlgmr.msrb.gmra.mxu2 %v10216_v17  ;;  %v8015_v17 = vld [vmem:[#allocation17 + $0x2c4] sm:$0xf] }
 0x3ac   :  { %v7374_v47 = vor.u32 %v8015_v17, %v7371_v21  ;;  %v8007_v17 = vld [vmem:[#allocation17 + $0x284] sm:$0xf]  ;;  %v7339_v21 = vld [vmem:[#allocation17 + $0x288] sm:$0xf0] }
 0x3ad   :  { %4996 = vmatpush.bf16.msra.mxu0 %v7198_v42  ;;  %5009 = vmatpush.bf16.msra.mxu1 %v7262_v45  ;;  %v4199_v29 = vpop.f32.mrf.mxu3  ;;  %v4162_v35 = vpop.f32.mrf.mxu0  ;;  %v7230_v42 = vor.u32 %v7979_v9, %v7227_v39  ;;  %v7294_v45 = vor.u32 %v7995_v26, %v7291_v12  ;;  %v8029_v26 = vld [vmem:[#allocation20 + $0x30] sm:$0xff] }
 0x3ae   :  { %5022 = vmatpush.bf16.msra.mxu2 %v7326_v13  ;;  %v4186_v51 = vpop.f32.mrf.mxu2  ;;  %v4175_v46 = vpop.f32.mrf.mxu1  ;;  %v7961_v13 = vld [vmem:[#allocation17 + $0x114] sm:$0xf]  ;;  %v8027_v35 = vld [vmem:[#allocation20 + $0x20] sm:$0xff] }
 0x3af   :  { %5035 = vmatpush.bf16.msra.mxu3 %v7390_v37  ;;  %v4187_v28 = vadd.f32 %v4186_v51, %v4174_v16  ;;  %v7219_v37 = vld [vmem:[#allocation17 + $0x198] sm:$0xf0]  ;;  %v7158_v57 = vor.u32 %v7961_v13, %v7155_v50  ;;  %v7278_v16 = vor.u32 %v7991_v52, %v7275_v36  ;;  %v8025_v46 = vld [vmem:[#allocation20 + $0x10] sm:$0xff]  ;;  %v8023_v13 = vld [vmem:[#allocation20] sm:$0xff] }
 0x3b0   :  { %v8033_v36 = vld [vmem:[#allocation20 + $0x50] sm:$0xff] }
 0x3b1   :  { %4997 = vmatpush.bf16.msra.mxu0 %v7190_v44  ;;  %5010 = vmatpush.bf16.msra.mxu1 %v7254_v27  ;;  %v4200_v24 = vadd.f32 %v4199_v29, %v4187_v28  ;;  %v7222_v44 = vor.u32 %v7977_v8, %v7219_v37  ;;  %v7286_v27 = vor.u32 %v7993_v56, %v7283_v3  ;;  %v8028_v29 = vld [vmem:[#allocation20 + $0x28] sm:$0xff]  ;;  %v8038_v8 = vld [vmem:[#allocation20 + $0x78] sm:$0xff]  ;;  %v8037_v56 = vld [vmem:[#allocation20 + $0x70] sm:$0xff] }
 0x3b2   :  { %5023 = vmatpush.bf16.msra.mxu2 %v7318_v33  ;;  %v7959_v33 = vld [vmem:[#allocation17 + $0x104] sm:$0xf]  ;;  %v8036_v3 = vld [vmem:[#allocation20 + $0x68] sm:$0xff] }
 0x3b3   :  { %5036 = vmatpush.bf16.msra.mxu3 %v7382_v48  ;;  %v7150_v34 = vor.u32 %v7959_v33, %v7147_v1  ;;  %v5049_v33 = vld [vmem:[#allocation19] sm:$0x3] }
 0x3b4   :  { %v8034_v1 = vld [vmem:[#allocation20 + $0x58] sm:$0xff] }
 0x3b5   :  { %4998 = vmatpush.bf16.msra.mxu0 %v7182_v55  ;;  %5011 = vmatpush.bf16.msra.mxu1 %v7246_v30  ;;  %v4201_v25 = vpop.f32.mrf.mxu3  ;;  %v7214_v55 = vor.u32 %v7975_v5, %v7211_v63  ;;  %v7342_v30 = vor.u32 %v8007_v17, %v7339_v21  ;;  %v5051_v63 = vperm.slane %v5049_v33, 0 }
 0x3b6   :  { %5024 = vmatpush.bf16.msra.mxu2 %v7310_v11  ;;  %v4188_v48 = vpop.f32.mrf.mxu2 }
 0x3b7   :  { %5037 = vmatpush.bf16.msra.mxu3 %v7374_v47 }
 0x3b9   :  { %4999 = vmatpush.bf16.msra.mxu0 %v7174_v0  ;;  %5012 = vmatpush.bf16.msra.mxu1 %v7238_v40 }
 0x3ba   :  { %5025 = vmatpush.bf16.msra.mxu2 %v7302_v31 }
 0x3bb   :  { %5038 = vmatpush.bf16.msra.mxu3 %v7366_v15  ;;  %v8030_v15 = vld [vmem:[#allocation20 + $0x38] sm:$0xff] }
 0x3bd   :  { %5000 = vmatpush.bf16.msra.mxu0 %v7166_v38  ;;  %5013 = vmatpush.bf16.msra.mxu1 %v7230_v42 }
 0x3be   :  { %5026 = vmatpush.bf16.msra.mxu2 %v7294_v45 }
 0x3bf   :  { %5039 = vmatpush.bf16.msra.mxu3 %v7358_v18 }
 0x3c1   :  { %5001 = vmatpush.bf16.msra.mxu0 %v7158_v57  ;;  %5014 = vmatpush.bf16.msra.mxu1 %v7222_v44  ;;  %v8035_v57 = vld [vmem:[#allocation20 + $0x60] sm:$0xff] }
 0x3c2   :  { %5027 = vmatpush.bf16.msra.mxu2 %v7286_v27 }
 0x3c3   :  { %5040 = vmatpush.bf16.msra.mxu3 %v7350_v6 }
 0x3c5   :  { %5002 = vmatpush.bf16.msra.mxu0 %v7150_v34  ;;  %5015 = vmatpush.bf16.msra.mxu1 %v7214_v55  ;;  %v4212_v11 = vpop.f32.mrf.mxu0  ;;  %v4225_v54 = vpop.f32.mrf.mxu1 }
 0x3c6   :  { %5028 = vmatpush.bf16.msra.mxu2 %v7278_v16  ;;  %v4213_v10 = vadd.f32 %v4212_v11, %v4200_v24  ;;  %v8024_v24 = vld [vmem:[#allocation20 + $0x8] sm:$0xff] }
 0x3c7   :  { %5041 = vmatpush.bf16.msra.mxu3 %v7342_v30  ;;  %v8032_v30 = vld [vmem:[#allocation20 + $0x48] sm:$0xff] }
 0x3c8   :  { %5003 = vmatmul.bf16.vlgmr.msra.gmra.mxu0 %v10222_v4  ;;  %5016 = vmatmul.bf16.vlgmr.msra.gmra.mxu1 %v10226_v49  ;;  %v4226_v2 = vadd.f32 %v4225_v54, %v4213_v10  ;;  %v8031_v10 = vld [vmem:[#allocation20 + $0x40] sm:$0xff] }
 0x3c9   :  { %5029 = vmatmul.bf16.vlgmr.msra.gmra.mxu2 %v10247_v53  ;;  %5193 = vmatpush.bf16.msrb.mxu0 %v8030_v15 }
 0x3ca   :  { %5042 = vmatmul.bf16.vlgmr.msra.gmra.mxu3 %v10249_v58  ;;  %v10260_v47 = vadd.f32 %v4226_v2, %v10243_v43  ;;  %5206 = vmatpush.bf16.msrb.mxu1 %v8038_v8 }
 0x3cd   :  { %v4251_v20 = vpop.f32.mrf.mxu3  ;;  %v4214_v14 = vpop.f32.mrf.mxu0  ;;  %5194 = vmatpush.bf16.msrb.mxu0 %v8029_v26  ;;  %v8045_v26 = vld [vmem:[#allocation23 + $0x30] sm:$0xff] }
 0x3ce   :  { %v4238_v7 = vpop.f32.mrf.mxu2  ;;  %v4227_v23 = vpop.f32.mrf.mxu1  ;;  %5207 = vmatpush.bf16.msrb.mxu1 %v8037_v56 }
 0x3cf   :  { %v4252_v19 = vadd.f32 %v4251_v20, %v4238_v7 }
 0x3d1   :  { %5195 = vmatpush.bf16.msrb.mxu0 %v8028_v29  ;;  %v8042_v29 = vld [vmem:[#allocation23 + $0x18] sm:$0xff] }
 0x3d2   :  { %5208 = vmatpush.bf16.msrb.mxu1 %v8036_v3 }
 0x3d5   :  { %v4253_v4 = vpop.f32.mrf.mxu3  ;;  %5196 = vmatpush.bf16.msrb.mxu0 %v8027_v35  ;;  %v8041_v35 = vld [vmem:[#allocation23 + $0x10] sm:$0xff] }
 0x3d6   :  { %v4240_v0 = vpop.f32.mrf.mxu2  ;;  %5209 = vmatpush.bf16.msrb.mxu1 %v8035_v57  ;;  %v8047_v57 = vld [vmem:[#allocation26] sm:$0xff] }
 0x3d9   :  { %5197 = vmatpush.bf16.msrb.mxu0 %v8026_v61 }
 0x3da   :  { %5210 = vmatpush.bf16.msrb.mxu1 %v8034_v1 }
 0x3dd   :  { %5198 = vmatpush.bf16.msrb.mxu0 %v8025_v46 }
 0x3de   :  { %5211 = vmatpush.bf16.msrb.mxu1 %v8033_v36 }
 0x3e1   :  { %5199 = vmatpush.bf16.msrb.mxu0 %v8024_v24  ;;  %v8053_v24 = vld [vmem:[#allocation26 + $0x30] sm:$0xff] }
 0x3e2   :  { %5212 = vmatpush.bf16.msrb.mxu1 %v8032_v30 }
 0x3e5   :  { %v4264_v40 = vpop.f32.mrf.mxu0  ;;  %v4277_v31 = vpop.f32.mrf.mxu1  ;;  %5200 = vmatpush.bf16.msrb.mxu0 %v8023_v13  ;;  %v8049_v13 = vld [vmem:[#allocation26 + $0x10] sm:$0xff] }
 0x3e6   :  { %v4265_v49 = vadd.f32 %v4264_v40, %v4252_v19  ;;  %5213 = vmatpush.bf16.msrb.mxu1 %v8031_v10 }
 0x3e8   :  { %v4278_v53 = vadd.f32 %v4277_v31, %v4265_v49 }
 0x3ed   :  { %v4303_v41 = vpop.f32.mrf.mxu3  ;;  %v4266_v9 = vpop.f32.mrf.mxu0 }
 0x3ee   :  { %v4290_v22 = vpop.f32.mrf.mxu2  ;;  %v4279_v51 = vpop.f32.mrf.mxu1 }
 0x3ef   :  { %v4291_v58 = vadd.f32 %v4290_v22, %v4278_v53  ;;  %v5052_v53 = vperm.slane %v5049_v33, 1 }
 0x3f1   :  { %v4304_v39 = vadd.f32 %v4303_v41, %v4291_v58 }
 0x3f3   :  { %v10263_v43 = vadd.f32 %v4304_v39, %v10245_v32  ;;  %v8046_v39 = vld [vmem:[#allocation23 + $0x38] sm:$0xff] }
 0x3f4   :  { %5289 = vmatpush.bf16.msrb.mxu2 %v8046_v39 }
 0x3f5   :  { %v4305_v28 = vpop.f32.mrf.mxu3 }
 0x3f6   :  { %v4292_v12 = vpop.f32.mrf.mxu2  ;;  %v8043_v28 = vld [vmem:[#allocation23 + $0x20] sm:$0xff] }
 0x3f7   :  { %v8044_v12 = vld [vmem:[#allocation23 + $0x28] sm:$0xff] }
 0x3f8   :  { %5290 = vmatpush.bf16.msrb.mxu2 %v8045_v26 }
 0x3fc   :  { %5291 = vmatpush.bf16.msrb.mxu2 %v8044_v12 }
 0x400   :  { %5292 = vmatpush.bf16.msrb.mxu2 %v8043_v28 }
 0x404   :  { %5293 = vmatpush.bf16.msrb.mxu2 %v8042_v29 }
 0x405   :  { %v4900_v62 = vpop.f32.mrf.mxu0  ;;  %v4913_v38 = vpop.f32.mrf.mxu1 }
 0x406   :  { %v4914_v60 = vadd.f32 %v4913_v38, %v4900_v62  ;;  %v8039_v62 = vld [vmem:[#allocation23] sm:$0xff] }
 0x407   :  { %v8054_v38 = vld [vmem:[#allocation26 + $0x38] sm:$0xff] }
 0x408   :  { %5294 = vmatpush.bf16.msrb.mxu2 %v8041_v35  ;;  %5372 = vmatpush.bf16.msrb.mxu3 %v8054_v38 }
 0x40c   :  { %5373 = vmatpush.bf16.msrb.mxu3 %v8053_v24 }
 0x40d   :  { %v4939_v45 = vpop.f32.mrf.mxu3  ;;  %v4902_v32 = vpop.f32.mrf.mxu0 }
 0x40e   :  { %v4926_v42 = vpop.f32.mrf.mxu2  ;;  %v4915_v50 = vpop.f32.mrf.mxu1  ;;  %v8050_v32 = vld [vmem:[#allocation26 + $0x18] sm:$0xff] }
 0x40f   :  { %v4927_v59 = vadd.f32 %v4926_v42, %v4914_v60  ;;  %v8052_v42 = vld [vmem:[#allocation26 + $0x28] sm:$0xff]  ;;  %v8085_v50 = vld [vmem:[#allocation22] ss:$0 sm:$0xff] }
 0x410   :  { %5374 = vmatpush.bf16.msrb.mxu3 %v8052_v42 }
 0x411   :  { %v4940_v44 = vadd.f32 %v4939_v45, %v4927_v59  ;;  %v8051_v45 = vld [vmem:[#allocation26 + $0x20] sm:$0xff]  ;;  %v8048_v59 = vld [vmem:[#allocation26 + $0x8] sm:$0xff] }
 0x414   :  { %5375 = vmatpush.bf16.msrb.mxu3 %v8051_v45 }
 0x415   :  { %v4941_v37 = vpop.f32.mrf.mxu3 }
 0x416   :  { %v4928_v18 = vpop.f32.mrf.mxu2 }
 0x418   :  { %5376 = vmatpush.bf16.msrb.mxu3 %v8050_v32 }
 0x41c   :  { %5377 = vmatpush.bf16.msrb.mxu3 %v8049_v13 }
 0x420   :  { %5378 = vmatpush.bf16.msrb.mxu3 %v8048_v59 }
 0x424   :  { %5379 = vmatpush.bf16.msrb.mxu3 %v8047_v57 }
 0x425   :  { %v4952_v27 = vpop.f32.mrf.mxu0  ;;  %v4965_v6 = vpop.f32.mrf.mxu1 }
 0x426   :  { %v4953_v5 = vadd.f32 %v4952_v27, %v4940_v44  ;;  %v8086_v44 = vld [vmem:[#allocation25] ss:$0 sm:$0xff] }
 0x428   :  { %v4966_v48 = vadd.f32 %v4965_v6, %v4953_v5 }
 0x42a   :  { %v5047_v52 = vadd.f32 %v4966_v48, %v10260_v47  ;;  %v8087_v48 = vld [vmem:[#allocation28] ss:$0 sm:$0xff] }
 0x42c   :  { %v5055_v25 = vadd.f32 %v5051_v63, %v5047_v52 }
 0x42d   :  { %v4991_v21 = vpop.f32.mrf.mxu3  ;;  %v4954_v34 = vpop.f32.mrf.mxu0 }
 0x42e   :  { %v4978_v17 = vpop.f32.mrf.mxu2  ;;  %v5057_v55 = vmax.f32 %v5055_v25, 0.0  ;;  %v4967_v16 = vpop.f32.mrf.mxu1 }
 0x42f   :  { %v4992_v7 = vadd.f32 %v4991_v21, %v4978_v17 }
 0x430   :  { %v5059_v11 = vpack.c.bf16 %v5057_v55, %v5057_v55 }
 0x432   :  { %5201 = vmatmul.bf16.vlgmr.msrb.gmra.mxu0 %v5059_v11 }
 0x435   :  { %v4993_v2 = vpop.f32.mrf.mxu3 }
 0x436   :  { %v4980_v54 = vpop.f32.mrf.mxu2 }
 0x445   :  { %v5004_v20 = vpop.f32.mrf.mxu0  ;;  %v5017_v14 = vpop.f32.mrf.mxu1 }
 0x446   :  { %v5005_v47 = vadd.f32 %v5004_v20, %v4992_v7 }
 0x448   :  { %v5018_v19 = vadd.f32 %v5017_v14, %v5005_v47 }
 0x44c   :  { %v5030_v23 = vpop.f32.mrf.mxu2 }
 0x44d   :  { %v5031_v0 = vadd.f32 %v5030_v23, %v5018_v19  ;;  %v5043_v4 = vpop.f32.mrf.mxu3  ;;  %v5006_v40 = vpop.f32.mrf.mxu0 }
 0x44e   :  { %v5019_v49 = vpop.f32.mrf.mxu1 }
 0x44f   :  { %v5044_v31 = vadd.f32 %v5043_v4, %v5031_v0 }
 0x451   :  { %v5048_v22 = vadd.f32 %v5044_v31, %v10263_v43  ;;  %v8040_v43 = vld [vmem:[#allocation23 + $0x8] sm:$0xff] }
 0x452   :  { %5295 = vmatpush.bf16.msrb.mxu2 %v8040_v43 }
 0x453   :  { %v5056_v58 = vadd.f32 %v5052_v53, %v5048_v22 }
 0x454   :  { %v5032_v41 = vpop.f32.mrf.mxu2 }
 0x455   :  { %v5058_v9 = vmax.f32 %v5056_v58, 0.0  ;;  %v5045_v15 = vpop.f32.mrf.mxu3 }
 0x456   :  { %5296 = vmatpush.bf16.msrb.mxu2 %v8039_v62 }
 0x457   :  { %v5060_v51 = vpack.c.bf16 %v5058_v9, %v5058_v9 }
 0x459   :  { %5214 = vmatmul.bf16.vlgmr.msrb.gmra.mxu1 %v5060_v51 }
 0x4af   :  { %v5202_v61 = vpop.f32.mrf.mxu0 }
 0x4b0   :  { %v5203_v8 = vadd.f32 %v8085_v50, %v5202_v61 }
 0x4b7   :  { %v5204_v46 = vpop.f32.mrf.mxu0 }
 0x4d6   :  { %v5215_v18 = vpop.f32.mrf.mxu1 }
 0x4d7   :  { %v5216_v37 = vadd.f32 %v5215_v18, %v5203_v8 }
 0x4d9   :  { %v5219_v56 = vmax.f32 %v5216_v37, 0.0 }
 0x4db   :  { %v5220_v3 = vpack.c.bf16 %v5219_v56, %v5219_v56 }
 0x4dd   :  { %5297 = vmatmul.bf16.vlgmr.msrb.gmra.mxu2 %v5220_v3 }
 0x4de   :  { %v5217_v60 = vpop.f32.mrf.mxu1 }
 0x560   :  { %v5298_v27 = vpop.f32.mrf.mxu2 }
 0x561   :  { %v5299_v33 = vadd.f32 %v8086_v44, %v5298_v27 }
 0x563   :  { %v5302_v1 = vmax.f32 %v5299_v33, 0.0 }
 0x565   :  { %v5303_v5 = vpack.c.bf16 %v5302_v1, %v5302_v1 }
 0x567   :  { %5380 = vmatmul.bf16.vlgmr.msrb.gmra.mxu3 %v5303_v5 }
 0x568   :  { %v5300_v6 = vpop.f32.mrf.mxu2 }
 0x5ea   :  { %v5381_v63 = vpop.f32.mrf.mxu3 }
 0x5eb   :  { %v5382_v52 = vadd.f32 %v8087_v48, %v5381_v63 }
 0x5ed   :  { %5385 = vst [vmem:[#allocation29] sm:$0x3] %v5382_v52 }
 0x5ee   :  { %5396 = dma.vmem_to_hbm [thread:$0]  %s5392_s5, 32, %s5394_s13, [#allocation4]  }
 0x5f2   :  { %v5383_v36 = vpop.f32.mrf.mxu3 }
 0x5f3   :  { %8571 = dma.done.wait [#allocation4], 32  }
 0x5f4   :  { %8572 = vsyncadd [#allocation4], 4294967264 }
 0x5f5   :  { %5401 = vsyncpa [#allocation3], 1 }
 0x5f6   :  { %5402 = vsyncpa [#allocation6], 1 }
 0x5f7   :  { %5403 = vsyncpa [#allocation9], 1 }
 0x5f8   :  { %5404 = vsyncpa [#allocation12], 1 }
 0x5f9   :  { %5405 = vsyncpa [#allocation15], 1 }
 0x5fa   :  { %5406 = vsyncpa [#allocation18], 1 }
 0x5fb   :  { %5407 = vsyncpa [#allocation21], 1 }
 0x5fc   :  { %5408 = vsyncpa [#allocation24], 1 }
 0x5fd   :  { %5409 = vsyncpa [#allocation27], 1 }
 0x5fe   :  { %5410 = vsyncpa [#allocation4], 1 }

</bundles_post_ra>
